<compile_context>
chip_gen: v7x
topology: tpu7x:2x2x1
jax: 0.10.0
libtpu: 0.0.40
codegen_flags: <defaults>
</compile_context>

<pallas_src>
import functools

import jax
import jax.numpy as jnp
from jax.experimental import pallas as pl
from jax.experimental.pallas import tpu as pltpu

_LANE = 128
_SUBLANE = 8


def _pad_amount(n, mult):
    return (-n) % mult


def _pad_axis(a, axis, mult):
    pad = _pad_amount(a.shape[axis], mult)
    if pad == 0:
        return a
    widths = [(0, 0)] * a.ndim
    widths[axis] = (0, pad)
    return jnp.pad(a, widths)


def _pick_block_graphs(batch, n, target, vmem_budget=12 * 1024 * 1024):
    """Graphs per grid step.

    Must divide `batch`, be a multiple of 8 (or the whole batch) so the
    (Bt, F) output blocks satisfy sublane tiling, and keep the block-diagonal
    adjacency tile (Bt*N)^2 bf16 x 2 pipeline buffers inside a conservative
    VMEM budget (v7x: 64 MiB physical / 32 MiB default scoped).  Prefers an
    even number of grid steps (v7x dual TensorCore)."""

    def fits(bt):
        return 2 * 2 * (bt * n) ** 2 <= vmem_budget

    def valid(bt):
        return batch % bt == 0 and (bt % _SUBLANE == 0 or bt == batch) and fits(bt)

    candidates = [bt for bt in range(1, min(target, batch) + 1) if valid(bt)]
    if not candidates:
        return batch if fits(batch) else min(_SUBLANE, batch)
    even = [bt for bt in candidates if (batch // bt) % 2 == 0]
    return max(even) if even else max(candidates)


def _gnn_kernel(a_ref, x_ref, w1_ref, b1_ref, w2_ref, b2_ref, wh_ref, bh_ref,
                feat_ref, logit_ref, *, bt, n):
    # a_ref: (Bt*N, Bt*N) bf16 block-diagonal adjacency with self-loops.
    # Symmetric normalization D^{-1/2} A_hat D^{-1/2}; the off-diagonal blocks
    # are zero, so the big-matrix row/col sums equal the per-graph degrees.
    a_f32 = a_ref[...].astype(jnp.float32)
    d_col = jax.lax.rsqrt(jnp.sum(a_f32, axis=-1, keepdims=True))   # (Bt*N, 1)
    d_row = jax.lax.rsqrt(jnp.sum(a_f32, axis=-2, keepdims=True))   # (1, Bt*N)
    a_norm = (d_col * a_f32 * d_row).astype(jnp.bfloat16)           # bf16 MXU operand

    def gcn_layer(h_bf, w_ref, b_ref):
        # h_bf: (Bt*N, f_in) bf16 ; w: (f_in, f_out) bf16 ; b: (1, f_out) f32
        f_in, f_out = w_ref.shape
        w = w_ref[...]
        if f_in > f_out:
            # Transform first (fewer FLOPs): A_norm @ (H W)
            hw = jnp.dot(h_bf, w, preferred_element_type=jnp.float32)
            out = jnp.dot(a_norm, hw.astype(jnp.bfloat16),
                          preferred_element_type=jnp.float32)
        else:
            # Aggregate first: (A_norm @ H) @ W — one 256-wide MXU matmul each.
            agg = jnp.dot(a_norm, h_bf, preferred_element_type=jnp.float32)
            out = jnp.dot(agg.astype(jnp.bfloat16), w,
                          preferred_element_type=jnp.float32)
        out = out + b_ref[...]                         # f32 bias broadcast
        return jax.nn.gelu(out, approximate=True)      # f32 elementwise (v5e-safe)

    h = gcn_layer(x_ref[...], w1_ref, b1_ref)                       # (Bt*N, Hp) f32
    h = gcn_layer(h.astype(jnp.bfloat16), w2_ref, b2_ref)           # (Bt*N, Op) f32

    # Global mean pooling over the N nodes of each graph -> (Bt, Op) f32.
    f_out = h.shape[-1]
    feat = jnp.mean(h.reshape(bt, n, f_out), axis=1)
    feat_ref[...] = feat.astype(feat_ref.dtype)

    # Classification head at the true class count (tiny masked store).
    logits = jnp.dot(feat.astype(jnp.bfloat16), wh_ref[...],
                     preferred_element_type=jnp.float32) + bh_ref[...]
    logit_ref[...] = logits.astype(logit_ref.dtype)


def gnn_forward(adj, x, params, *, prefix="cell_gnn", block_graphs=16):
    """adj: [B, N, N] float symmetric (no self loops), x: [B, N, F_in] float."""
    B, N, F_in = x.shape
    assert adj.shape == (B, N, N)
    assert N % _SUBLANE == 0, "node count must be a multiple of 8 (sublane tiling)"
    # TODO(synk): ragged/padded graph batches would need a per-graph node-count
    # mask for the degree normalization and the mean-pool denominator; all N
    # node slots are assumed valid here (same semantics as the reference).

    H = params["w1"].shape[1]
    O = params["w2"].shape[1]
    C = params["wh"].shape[1]

    # Pad only the GEMM *output* feature dims to the 128-lane tile (keeps the
    # intermediate activations and the feature output lane-dense).  F_in and
    # the class count are left unpadded: block last dim == full array dim is
    # legal and the MXU pass time does not improve from K/N zero padding.
    Hp = H + _pad_amount(H, _LANE)
    Op = O + _pad_amount(O, _LANE)

    w1 = _pad_axis(params["w1"], 1, _LANE).astype(jnp.bfloat16)      # (F_in, Hp)
    b1 = _pad_axis(params["b1"], 1, _LANE).astype(jnp.float32)       # (1, Hp)
    w2 = _pad_axis(_pad_axis(params["w2"], 0, _LANE), 1, _LANE).astype(jnp.bfloat16)
    b2 = _pad_axis(params["b2"], 1, _LANE).astype(jnp.float32)       # (1, Op)
    wh = _pad_axis(params["wh"], 0, _LANE).astype(jnp.bfloat16)      # (Op, C)
    bh = params["bh"].astype(jnp.float32)                            # (1, C)

    Bt = _pick_block_graphs(B, N, block_graphs)
    G = B // Bt
    BtN = Bt * N

    # Self-loops folded in once, then scattered into per-grid-step
    # block-diagonal adjacency (Bt*N, Bt*N) so aggregation is one wide matmul.
    adj_hat = adj.astype(jnp.float32) + jnp.eye(N, dtype=jnp.float32)[None]
    adj_g = adj_hat.reshape(G, Bt, N, N)
    a_blk = jnp.einsum("gbij,bc->gbicj", adj_g, jnp.eye(Bt, dtype=jnp.float32))
    a_blk = a_blk.reshape(G * BtN, BtN).astype(jnp.bfloat16)

    # Node features flattened to 2-D, bf16 (halves the per-step DMA).
    x2d = x.reshape(B * N, F_in).astype(jnp.bfloat16)

    kernel = functools.partial(_gnn_kernel, bt=Bt, n=N)
    const2d = lambda shape: pl.BlockSpec(shape, lambda g: (0, 0))

    feats, logits = pl.pallas_call(
        kernel,
        out_shape=(
            jax.ShapeDtypeStruct((B, Op), jnp.float32),
            jax.ShapeDtypeStruct((B, C), jnp.float32),
        ),
        grid_spec=pltpu.PrefetchScalarGridSpec(
            num_scalar_prefetch=0,
            grid=(G,),
            in_specs=[
                pl.BlockSpec((BtN, BtN), lambda g: (g, 0)),   # block-diag A_hat
                pl.BlockSpec((BtN, F_in), lambda g: (g, 0)),  # node features
                const2d((F_in, Hp)),   # w1
                const2d((1, Hp)),      # b1
                const2d((Hp, Op)),     # w2
                const2d((1, Op)),      # b2
                const2d((Op, C)),      # w_head
                const2d((1, C)),       # b_head
            ],
            out_specs=[
                pl.BlockSpec((Bt, Op), lambda g: (g, 0)),
                pl.BlockSpec((Bt, C), lambda g: (g, 0)),
            ],
        ),
        compiler_params=pltpu.CompilerParams(
            dimension_semantics=("parallel",)),
    )(a_blk, x2d, w1, b1, w2, b2, wh, bh)

    features = feats[:, :O]
    logit = logits
    # Mirror the PyTorch module's output dict structure.
    return {prefix: {"logits": logit, "features": features}}


def init_params(key, in_features, hidden_features, out_features, num_classes):
    k1, k2, k3 = jax.random.split(key, 3)
    s1 = 1.0 / jnp.sqrt(in_features)
    s2 = 1.0 / jnp.sqrt(hidden_features)
    s3 = 1.0 / jnp.sqrt(out_features)
    return {
        "w1": jax.random.normal(k1, (in_features, hidden_features), jnp.float32) * s1,
        "b1": jnp.zeros((1, hidden_features), jnp.float32),
        "w2": jax.random.normal(k2, (hidden_features, out_features), jnp.float32) * s2,
        "b2": jnp.zeros((1, out_features), jnp.float32),
        "wh": jax.random.normal(k3, (out_features, num_classes), jnp.float32) * s3,
        "bh": jnp.zeros((1, num_classes), jnp.float32),
    }


if __name__ == "__main__":
    # 32 graphs x 16 nodes, 32 input features, hidden/out 128, 4 classes.
    # Bt=16 graphs per grid step -> one 256x256 block-diag aggregation matmul
    # per layer per step; grid=(2,) (even -> both v7x TensorCores busy).
    B, N = 32, 16
    in_features, hidden_features, out_features, num_classes = 32, 128, 128, 4

    key = jax.random.PRNGKey(0)
    k_adj, k_x, k_p = jax.random.split(key, 3)

    # Random symmetric adjacency (no self loops; wrapper adds them).
    a_rand = (jax.random.uniform(k_adj, (B, N, N)) > 0.7).astype(jnp.float32)
    adj = jnp.maximum(a_rand, jnp.transpose(a_rand, (0, 2, 1)))
    eye = jnp.eye(N, dtype=jnp.float32)[None]
    adj = adj * (1.0 - eye)

    x = jax.random.normal(k_x, (B, N, in_features), jnp.float32)
    params = init_params(k_p, in_features, hidden_features, out_features,
                         num_classes)

    out = gnn_forward(adj, x, params, prefix="cell_gnn")
    jax.block_until_ready(out)

    assert out["cell_gnn"]["features"].shape == (B, out_features)
    assert out["cell_gnn"]["logits"].shape == (B, num_classes)
    print("KERNEL_OK")
</pallas_src>

<mosaic_0001>
module attributes {stable_mosaic.version = 11 : i64} {
  func.func @_gnn_kernel(%arg0: i32, %arg1: memref<256x256xbf16, #tpu.memory_space<vmem>>, %arg2: memref<256x32xbf16, #tpu.memory_space<vmem>>, %arg3: memref<32x128xbf16, #tpu.memory_space<vmem>>, %arg4: memref<1x128xf32, #tpu.memory_space<vmem>>, %arg5: memref<128x128xbf16, #tpu.memory_space<vmem>>, %arg6: memref<1x128xf32, #tpu.memory_space<vmem>>, %arg7: memref<128x4xbf16, #tpu.memory_space<vmem>>, %arg8: memref<1x4xf32, #tpu.memory_space<vmem>>, %arg9: memref<16x128xf32, #tpu.memory_space<vmem>>, %arg10: memref<16x4xf32, #tpu.memory_space<vmem>>) attributes {dimension_semantics = [#tpu.dimension_semantics<parallel>], iteration_bounds = array<i64: 2>, scalar_prefetch = 0 : i64, scratch_operands = 0 : i64, tpu.core_type = #tpu.core_type<tc>, window_params = [{transform_indices = @transform_0, window_bounds = array<i64: 256, 256>}, {transform_indices = @transform_1, window_bounds = array<i64: 256, 32>}, {pipeline_mode = #tpu.pipeline_mode<synchronous>, transform_indices = @transform_2, window_bounds = array<i64: 32, 128>}, {pipeline_mode = #tpu.pipeline_mode<synchronous>, transform_indices = @transform_3, window_bounds = array<i64: 1, 128>}, {pipeline_mode = #tpu.pipeline_mode<synchronous>, transform_indices = @transform_4, window_bounds = array<i64: 128, 128>}, {pipeline_mode = #tpu.pipeline_mode<synchronous>, transform_indices = @transform_5, window_bounds = array<i64: 1, 128>}, {pipeline_mode = #tpu.pipeline_mode<synchronous>, transform_indices = @transform_6, window_bounds = array<i64: 128, 4>}, {pipeline_mode = #tpu.pipeline_mode<synchronous>, transform_indices = @transform_7, window_bounds = array<i64: 1, 4>}, {transform_indices = @transform_8, window_bounds = array<i64: 16, 128>}, {transform_indices = @transform_9, window_bounds = array<i64: 16, 4>}]} {
    %c0 = arith.constant 0 : index
    %c0_0 = arith.constant 0 : index
    %0 = vector.load %arg1[%c0, %c0_0] : memref<256x256xbf16, #tpu.memory_space<vmem>>, vector<256x256xbf16>
    %1 = arith.extf %0 : vector<256x256xbf16> to vector<256x256xf32>
    %cst = arith.constant dense<0.000000e+00> : vector<256xf32>
    %2 = vector.multi_reduction <add>, %1, %cst [1] : vector<256x256xf32> to vector<256xf32>
    %3 = vector.shape_cast %2 : vector<256xf32> to vector<256x1xf32>
    %4 = math.rsqrt %3 : vector<256x1xf32>
    %cst_1 = arith.constant dense<0.000000e+00> : vector<256xf32>
    %5 = vector.multi_reduction <add>, %1, %cst_1 [0] : vector<256x256xf32> to vector<256xf32>
    %6 = vector.shape_cast %5 : vector<256xf32> to vector<1x256xf32>
    %7 = math.rsqrt %6 : vector<1x256xf32>
    %8 = vector.broadcast %4 : vector<256x1xf32> to vector<256x256xf32>
    %9 = arith.mulf %8, %1 : vector<256x256xf32>
    %10 = vector.broadcast %7 : vector<1x256xf32> to vector<256x256xf32>
    %11 = arith.mulf %9, %10 : vector<256x256xf32>
    %12 = arith.truncf %11 : vector<256x256xf32> to vector<256x256xbf16>
    %c0_2 = arith.constant 0 : index
    %c0_3 = arith.constant 0 : index
    %13 = vector.load %arg2[%c0_2, %c0_3] : memref<256x32xbf16, #tpu.memory_space<vmem>>, vector<256x32xbf16>
    %c0_4 = arith.constant 0 : index
    %c0_5 = arith.constant 0 : index
    %14 = vector.load %arg3[%c0_4, %c0_5] : memref<32x128xbf16, #tpu.memory_space<vmem>>, vector<32x128xbf16>
    %cst_6 = arith.constant dense<0.000000e+00> : vector<256x32xf32>
    %15 = tpu.matmul %12, %13, %cst_6 {dimension_numbers = #tpu.dot_dimension_numbers<[1], [0], [0], [1], [0, 0, 1, 1], [], []>} : vector<256x256xbf16>, vector<256x32xbf16>, vector<256x32xf32> -> vector<256x32xf32>
    %16 = arith.truncf %15 : vector<256x32xf32> to vector<256x32xbf16>
    %cst_7 = arith.constant dense<0.000000e+00> : vector<256x128xf32>
    %17 = tpu.matmul %16, %14, %cst_7 {dimension_numbers = #tpu.dot_dimension_numbers<[1], [0], [0], [1], [0, 0, 1, 1], [], []>} : vector<256x32xbf16>, vector<32x128xbf16>, vector<256x128xf32> -> vector<256x128xf32>
    %c0_8 = arith.constant 0 : index
    %c0_9 = arith.constant 0 : index
    %18 = vector.load %arg4[%c0_8, %c0_9] : memref<1x128xf32, #tpu.memory_space<vmem>>, vector<1x128xf32>
    %19 = vector.broadcast %18 : vector<1x128xf32> to vector<256x128xf32>
    %20 = arith.addf %17, %19 : vector<256x128xf32>
    %21 = arith.mulf %20, %20 : vector<256x128xf32>
    %22 = arith.mulf %20, %21 : vector<256x128xf32>
    %cst_10 = arith.constant 4.471500e-02 : f32
    %23 = vector.broadcast %cst_10 : f32 to vector<256x128xf32>
    %24 = arith.mulf %23, %22 : vector<256x128xf32>
    %25 = arith.addf %20, %24 : vector<256x128xf32>
    %cst_11 = arith.constant 0.797884583 : f32
    %26 = vector.broadcast %cst_11 : f32 to vector<256x128xf32>
    %27 = arith.mulf %26, %25 : vector<256x128xf32>
    %28 = math.tanh %27 : vector<256x128xf32>
    %cst_12 = arith.constant 1.000000e+00 : f32
    %29 = vector.broadcast %cst_12 : f32 to vector<256x128xf32>
    %30 = arith.addf %29, %28 : vector<256x128xf32>
    %cst_13 = arith.constant 5.000000e-01 : f32
    %31 = vector.broadcast %cst_13 : f32 to vector<256x128xf32>
    %32 = arith.mulf %31, %30 : vector<256x128xf32>
    %33 = arith.mulf %20, %32 : vector<256x128xf32>
    %34 = arith.truncf %33 : vector<256x128xf32> to vector<256x128xbf16>
    %c0_14 = arith.constant 0 : index
    %c0_15 = arith.constant 0 : index
    %35 = vector.load %arg5[%c0_14, %c0_15] : memref<128x128xbf16, #tpu.memory_space<vmem>>, vector<128x128xbf16>
    %cst_16 = arith.constant dense<0.000000e+00> : vector<256x128xf32>
    %36 = tpu.matmul %12, %34, %cst_16 {dimension_numbers = #tpu.dot_dimension_numbers<[1], [0], [0], [1], [0, 0, 1, 1], [], []>} : vector<256x256xbf16>, vector<256x128xbf16>, vector<256x128xf32> -> vector<256x128xf32>
    %37 = arith.truncf %36 : vector<256x128xf32> to vector<256x128xbf16>
    %cst_17 = arith.constant dense<0.000000e+00> : vector<256x128xf32>
    %38 = tpu.matmul %37, %35, %cst_17 {dimension_numbers = #tpu.dot_dimension_numbers<[1], [0], [0], [1], [0, 0, 1, 1], [], []>} : vector<256x128xbf16>, vector<128x128xbf16>, vector<256x128xf32> -> vector<256x128xf32>
    %c0_18 = arith.constant 0 : index
    %c0_19 = arith.constant 0 : index
    %39 = vector.load %arg6[%c0_18, %c0_19] : memref<1x128xf32, #tpu.memory_space<vmem>>, vector<1x128xf32>
    %40 = vector.broadcast %39 : vector<1x128xf32> to vector<256x128xf32>
    %41 = arith.addf %38, %40 : vector<256x128xf32>
    %42 = arith.mulf %41, %41 : vector<256x128xf32>
    %43 = arith.mulf %41, %42 : vector<256x128xf32>
    %cst_20 = arith.constant 4.471500e-02 : f32
    %44 = vector.broadcast %cst_20 : f32 to vector<256x128xf32>
    %45 = arith.mulf %44, %43 : vector<256x128xf32>
    %46 = arith.addf %41, %45 : vector<256x128xf32>
    %cst_21 = arith.constant 0.797884583 : f32
    %47 = vector.broadcast %cst_21 : f32 to vector<256x128xf32>
    %48 = arith.mulf %47, %46 : vector<256x128xf32>
    %49 = math.tanh %48 : vector<256x128xf32>
    %cst_22 = arith.constant 1.000000e+00 : f32
    %50 = vector.broadcast %cst_22 : f32 to vector<256x128xf32>
    %51 = arith.addf %50, %49 : vector<256x128xf32>
    %cst_23 = arith.constant 5.000000e-01 : f32
    %52 = vector.broadcast %cst_23 : f32 to vector<256x128xf32>
    %53 = arith.mulf %52, %51 : vector<256x128xf32>
    %54 = arith.mulf %41, %53 : vector<256x128xf32>
    %55 = vector.shape_cast %54 : vector<256x128xf32> to vector<16x16x128xf32>
    %cst_24 = arith.constant dense<0.000000e+00> : vector<16x128xf32>
    %56 = vector.multi_reduction <add>, %55, %cst_24 [1] : vector<16x16x128xf32> to vector<16x128xf32>
    %cst_25 = arith.constant 1.600000e+01 : f32
    %57 = vector.broadcast %cst_25 : f32 to vector<16x128xf32>
    %58 = arith.divf %56, %57 : vector<16x128xf32>
    %c0_26 = arith.constant 0 : index
    %c0_27 = arith.constant 0 : index
    %59 = vector.load %arg9[%c0_26, %c0_27] : memref<16x128xf32, #tpu.memory_space<vmem>>, vector<16x128xf32>
    tpu.vector_store %arg9[%c0_26, %c0_27], %58 {strides = array<i32>} : memref<16x128xf32, #tpu.memory_space<vmem>>, vector<16x128xf32>,
    %60 = arith.truncf %58 : vector<16x128xf32> to vector<16x128xbf16>
    %c0_28 = arith.constant 0 : index
    %c0_29 = arith.constant 0 : index
    %61 = vector.load %arg7[%c0_28, %c0_29] : memref<128x4xbf16, #tpu.memory_space<vmem>>, vector<128x4xbf16>
    %cst_30 = arith.constant dense<0.000000e+00> : vector<16x4xf32>
    %62 = tpu.matmul %60, %61, %cst_30 {dimension_numbers = #tpu.dot_dimension_numbers<[1], [0], [0], [1], [0, 0, 1, 1], [], []>} : vector<16x128xbf16>, vector<128x4xbf16>, vector<16x4xf32> -> vector<16x4xf32>
    %c0_31 = arith.constant 0 : index
    %c0_32 = arith.constant 0 : index
    %63 = vector.load %arg8[%c0_31, %c0_32] : memref<1x4xf32, #tpu.memory_space<vmem>>, vector<1x4xf32>
    %64 = vector.broadcast %63 : vector<1x4xf32> to vector<16x4xf32>
    %65 = arith.addf %62, %64 : vector<16x4xf32>
    %c0_33 = arith.constant 0 : index
    %c0_34 = arith.constant 0 : index
    %66 = vector.load %arg10[%c0_33, %c0_34] : memref<16x4xf32, #tpu.memory_space<vmem>>, vector<16x4xf32>
    tpu.vector_store %arg10[%c0_33, %c0_34], %65 {strides = array<i32>} : memref<16x4xf32, #tpu.memory_space<vmem>>, vector<16x4xf32>,
    return
  }
  func.func @transform_0(%arg0: i32) -> (i32, i32) {
    %c0_i32 = arith.constant 0 : i32
    %c0_i32_0 = arith.constant 0 : i32
    return %arg0, %c0_i32 : i32, i32
  }
  func.func @transform_1(%arg0: i32) -> (i32, i32) {
    %c0_i32 = arith.constant 0 : i32
    %c0_i32_0 = arith.constant 0 : i32
    return %arg0, %c0_i32 : i32, i32
  }
  func.func @transform_2(%arg0: i32) -> (i32, i32) {
    %c0_i32 = arith.constant 0 : i32
    %c0_i32_0 = arith.constant 0 : i32
    %c0_i32_1 = arith.constant 0 : i32
    return %c0_i32, %c0_i32_0 : i32, i32
  }
  func.func @transform_3(%arg0: i32) -> (i32, i32) {
    %c0_i32 = arith.constant 0 : i32
    %c0_i32_0 = arith.constant 0 : i32
    %c0_i32_1 = arith.constant 0 : i32
    return %c0_i32, %c0_i32_0 : i32, i32
  }
  func.func @transform_4(%arg0: i32) -> (i32, i32) {
    %c0_i32 = arith.constant 0 : i32
    %c0_i32_0 = arith.constant 0 : i32
    %c0_i32_1 = arith.constant 0 : i32
    return %c0_i32, %c0_i32_0 : i32, i32
  }
  func.func @transform_5(%arg0: i32) -> (i32, i32) {
    %c0_i32 = arith.constant 0 : i32
    %c0_i32_0 = arith.constant 0 : i32
    %c0_i32_1 = arith.constant 0 : i32
    return %c0_i32, %c0_i32_0 : i32, i32
  }
  func.func @transform_6(%arg0: i32) -> (i32, i32) {
    %c0_i32 = arith.constant 0 : i32
    %c0_i32_0 = arith.constant 0 : i32
    %c0_i32_1 = arith.constant 0 : i32
    return %c0_i32, %c0_i32_0 : i32, i32
  }
  func.func @transform_7(%arg0: i32) -> (i32, i32) {
    %c0_i32 = arith.constant 0 : i32
    %c0_i32_0 = arith.constant 0 : i32
    %c0_i32_1 = arith.constant 0 : i32
    return %c0_i32, %c0_i32_0 : i32, i32
  }
  func.func @transform_8(%arg0: i32) -> (i32, i32) {
    %c0_i32 = arith.constant 0 : i32
    %c0_i32_0 = arith.constant 0 : i32
    return %arg0, %c0_i32 : i32, i32
  }
  func.func @transform_9(%arg0: i32) -> (i32, i32) {
    %c0_i32 = arith.constant 0 : i32
    %c0_i32_0 = arith.constant 0 : i32
    return %arg0, %c0_i32 : i32, i32
  }
}

</mosaic_0001>

<bundles_post_ra>
// kernel: tpu_custom_call.1
= control target key start
LH: loop header
LB: loop body
LE: loop exit
PB: predicated region body
PF: predicated region fallthrough
CT: control target
= control target key end

     0   :  { %s5243_s0 = inlined_call_operand.hbm [shape: bf16[512,256], index: 0, kind: input, shape index: {}]   ;;  %s5244_s1 = inlined_call_operand.vmem [shape: bf16[512,32], index: 1, kind: input, shape index: {}]   ;;  %s5245_s2 = inlined_call_operand.vmem [shape: bf16[32,128], index: 2, kind: input, shape index: {}]   ;;  %s5246_s3 = inlined_call_operand.vmem [shape: f32[1,128], index: 3, kind: input, shape index: {}]   ;;  %s5247_s4 = inlined_call_operand.vmem [shape: bf16[128,128], index: 4, kind: input, shape index: {}]   ;;  %s5248_s5 = inlined_call_operand.vmem [shape: f32[1,128], index: 5, kind: input, shape index: {}]   ;;  %s5249_s6 = inlined_call_operand.vmem [shape: bf16[128,4], index: 6, kind: input, shape index: {}]   ;;  %s5250_s7 = inlined_call_operand.vmem [shape: f32[1,4], index: 7, kind: input, shape index: {}]   ;;  %s5251_s8 = inlined_call_operand.hbm [shape: f32[32,128], index: 8, kind: output, shape index: {0}]   ;;  %s5252_s9 = inlined_call_operand.vmem [shape: f32[32,4], index: 9, kind: output, shape index: {1}]  }
   0x1   :  { %5288 = sst [smem:[#allocation27_spill]] %s5243_s0 }
   0x2   :  { %15 = vsyncpa [#allocation3], 0 }
   0x3   :  { %17 = vsyncpa [#allocation3 + $0x1], 0 }
   0x4   :  { %18 = vsyncpa [#allocation4], 0 }
   0x5   :  { %20 = vsyncpa [#allocation4 + $0x1], 0  ;;  %s3764_s30 = smov 0   ;;  %s3766_s10 = smov 0  }
   0x6   :  { %s3768_s11 = smov 0   ;;  %s3770_s12 = smov 0  }
   0x7 LB: > { %s3785_s13 = sadd.s32 4294967295, %s3704_s12   ;;  %s2872_s14 = sadd.s32 4294967294, %s3704_s12   ;;  %s3704_s12 = sphi %s3770_s12, %s5377_s12   ;;  %s3700_s11 = sphi %s3768_s11, %s5376_s11   ;;  %s3696_s10 = sphi %s3766_s10, %s5375_s10   ;;  %s3692_s30 = sphi %s3764_s30, %s5374_s30  }
   0x8   : > { %s3789_s15 = sadd.s32 1, %s3704_s12   ;;  %s33_s16 = sadd.s32 1, %s3700_s11 }
   0x9   : > { %s30_s17 = ssub.s32 %s3704_s12, %s3789_s15  ;;  %p40_p0 = scmp.ne.s32.totalorder %s3700_s11, %s3696_s10 }
   0xa   : > { %p31_p1 = scmp.eq.s32.totalorder %s30_s17, 0  ;;  %p41_p2 = scmp.eq.s32.totalorder %s3704_s12, 0 }
   0xb   : > { %p46_p3 = scmp.ne.s32.totalorder %s3696_s10, %s3692_s30  ;;  %p47_p4 = scmp.eq.s32.totalorder %s3785_s13, 0 }
   0xc   : > { %s3801_s18 = scalar_select %p31_p1, %s3700_s11, %s33_s16  }
   0xd   : > { %p3803_p5 = por %p41_p2, %p40_p0  ;;  %p3807_p6 = por %p47_p4, %p46_p3 }
   0xe   : > { %p222_p7 = scmp.eq.s32.totalorder %s3785_s13, 1  ;;  %p228_p8 = scmp.eq.s32.totalorder %s2872_s14, 1 }
   0xf   : > { %p3338_p10 = scmp.lt.s32.totalorder %s3704_s12, 2  ;;  %s292_s23 = sand.u32 1, %s3700_s11  }
  0x10   : > { %p3814_p11 = por %p222_p7, %p40_p0  ;;  %p3818_p12 = por %p228_p8, %p46_p3 }
  0x11   : > { %s2945_s24 = sshll.u32 %s3704_s12, 12  ;;  %s2875_s25 = sshll.u32 %s292_s23, 8 }
  0x12   : > { %s5291_s21 = scalar_select %p3814_p11, 1, 0 }
  0x13   : > { %s5292_s22 = scalar_select %p3818_p12, 1, 0 }
  0x14   : > { %s5293_s0 = sld [smem:[#allocation27_spill]]  ;;  %s296_s29 = scalar_lea.vmem [#allocation2], %s2875_s25 }
  0x15   : > { %s304_s14 = sshll.u32 %s296_s29, 4  ;;  %p3831_p13 = pnand %p3338_p10, %p3803_p5  ;;  %s3835_s14 = int_to_ptr.vmem [resolvable:$true] %s304_s14 }
  0x16   : > { %s3837_s17 = scalar_lea.sflag [#allocation3], %s292_s23 }
  0x17   : > { %p3610_p1 = pneg %p3831_p13 }
  0x1a   : > { %s3827_s28 = scalar_lea.hbm %s5293_s0, %s2945_s24  ;;  %s3613_s25 = scalar_lea.hbm %s5293_s0, 8192 }
  0x1b   : > { %s3608_s26 = scalar_lea.hbm %s3827_s28, 4096  ;;  %p3614_p4 = scmp.lt.u32.totalorder %s3827_s28, %s5293_s0 }
  0x1c   : > { %p3609_p0 = scmp.ne.s32.totalorder %s3827_s28, %s3608_s26  ;;  %p3615_p5 = scmp.lt.u32.totalorder %s3613_s25, %s3608_s26 }
  0x1d   : > { %p3617_p8 = scmp.lt.u32.totalorder %s3608_s26, %s3827_s28 }
  0x1e   : > { %p3611_p2 = pnand %p3610_p1, %p3609_p0  ;;  %p3616_p7 = por %p3615_p5, %p3614_p4 }
  0x20   : > { %p3612_p3 = pneg %p3611_p2  ;;  %p3618_p10 = por %p3617_p8, %p3616_p7 }
  0x22   : > { %p3619_p9 = pnand %p3618_p10, %p3612_p3 }
  0x24   : > { %3622 = shalt.err (!%p3619_p9)
}
  0x25   : > { %s3623_s23 = scalar_lea.vmem %s3835_s14, 4096  ;;  %s3706_s24 = smov [#allocation2]  }
  0x26   : > { %p3624_p0 = scmp.ne.s32.totalorder %s3835_s14, %s3623_s23  ;;  %s3628_s19 = sshll.u32 %s3706_s24, 4  ;;  %s3629_s19 = int_to_ptr.vmem [resolvable:$false] %s3628_s19 }
  0x27   : > { %s3630_s27 = scalar_lea.vmem %s3629_s19, 8192  ;;  %p3631_p11 = scmp.lt.s32.totalorder %s3835_s14, %s3629_s19 }
  0x28   : > { %p3626_p2 = pnand %p3624_p0, %p3610_p1  ;;  %p3632_p4 = scmp.lt.s32.totalorder %s3630_s27, %s3623_s23 }
  0x2a   : > { %p3627_p12 = pneg %p3626_p2  ;;  %p3633_p5 = por %p3632_p4, %p3631_p11 }
  0x2c   : > { %p3634_p7 = pnand %p3633_p5, %p3627_p12 }
  0x2e   : > { %3637 = shalt.err (!%p3634_p7)
}
  0x2f   : > { %s3707_s26 = smov 128   ;;  %s3708_s25 = smov 8  }
  0x30   : > { %3333 = dma.hbm_to_vmem [thread:$0]  (!%p3831_p13), %s3827_s28, 4096, %s3835_s14, %s3837_s17, %s3707_s26, %s3707_s26, %s3708_s25  }
  0x31   : > { %p2879_p9 = scmp.ge.s32.totalorder %s3704_s12, 1  ;;  %p321_p1 = scmp.lt.s32.totalorder %s3704_s12, 3 }
  0x33   : > { %p322_p3 = pnand %p2879_p9, %p321_p1 }
  0x35   : > { %325 = sbr.rel (%p322_p3) target bundleno = 1657 (0x679), region = 52 }
  0x3c   : > { %s3868_s29 = sand.u32 1, %s3696_s10  }
  0x3d   : > { %s2880_s23 = sshll.u32 %s3868_s29, 8  ;;  %s328_s24 = scalar_lea.sflag [#allocation3], %s3868_s29 }
  0x3e   : > { %s3872_s19 = scalar_lea.vmem [#allocation2], %s2880_s23 }
  0x3f   : > { %3683 = dma.done.wait (%p3807_p6), %s328_s24, 4096  }
  0x40   : > { %3685 = vsyncadd (%p3807_p6), %s328_s24, 4294963200  ;;  %s2882_s28 = sshll.u32 %s3785_s13, 5  ;;  %v391_v0 = vld [vmem:[%s3872_s19] sm:$0xff]  ;;  %v393_v1 = vld [vmem:[%s3872_s19 + $0x10] sm:$0xff]  ;;  %vm1179_vm0 = vcmask 261120   ;;  %vm2535_vm1 = vcmask 1041409  }
  0x41   : > { %p378_p11 = scmp.lt.s32.totalorder %s2882_s28, 63  ;;  %v392_v2 = vld [vmem:[%s3872_s19 + $0x8] sm:$0xff]  ;;  %v3882_v3 = vunpack.c.l.bf16 %v391_v0  ;;  %v3884_v4 = vunpack.c.h.bf16 %v391_v0  ;;  %v3886_v5 = vunpack.c.l.bf16 %v393_v1  ;;  %v3888_v6 = vunpack.c.h.bf16 %v393_v1  ;;  %v394_v7 = vld [vmem:[%s3872_s19 + $0x18] sm:$0xff]  ;;  %v395_v13 = vld [vmem:[%s3872_s19 + $0x20] sm:$0xff]  ;;  %s2946_s16 = sshll.u32 %s3785_s13, 8 }
  0x42   : > { %v396_v8 = vld [vmem:[%s3872_s19 + $0x28] sm:$0xff]  ;;  %v3892_v9 = vunpack.c.l.bf16 %v392_v2  ;;  %v3894_v10 = vunpack.c.h.bf16 %v392_v2  ;;  %v3896_v11 = vunpack.c.l.bf16 %v394_v7  ;;  %v3898_v12 = vunpack.c.h.bf16 %v394_v7  ;;  %v398_v24 = vld [vmem:[%s3872_s19 + $0x38] sm:$0xff]  ;;  %v397_v27 = vld [vmem:[%s3872_s19 + $0x30] sm:$0xff]  ;;  %s5189_s26 = scalar_lea.hbm %s5251_s8, %s2946_s16  ;;  %s2740_s23 = scalar_lea.sflag [#allocation4], %s3868_s29 }
  0x43   : > { %s5379_s28 = smov (!%p378_p11, %s2882_s28), 63  ;;  %v487_v14 = vadd.f32 %v3884_v4, %v3882_v3  ;;  %v493_v15 = vadd.f32 %v3888_v6, %v3886_v5  ;;  %v3909_v18 = vunpack.c.l.bf16 %v396_v8  ;;  %v3911_v19 = vunpack.c.h.bf16 %v396_v8  ;;  %v400_v35 = vld [vmem:[%s3872_s19 + $0x48] sm:$0xff]  ;;  %v399_v37 = vld [vmem:[%s3872_s19 + $0x40] sm:$0xff]  ;;  %v402_v38 = vld [vmem:[%s3872_s19 + $0x58] sm:$0xff]  ;;  %p5371_p12 = scmp.ne.s32.totalorder %s5291_s21, 0 }
  0x44   : > { %v615_v16 = vadd.f32 %v3892_v9, %v3882_v3  ;;  %v652_v17 = vadd.f32 %v3894_v10, %v3884_v4  ;;  %v490_v20 = vadd.f32 %v3894_v10, %v3892_v9  ;;  %v496_v21 = vadd.f32 %v3898_v12, %v3896_v11  ;;  %s2883_s20 = sshll.u32 %s5379_s28, 2  ;;  %v401_v50 = vld [vmem:[%s3872_s19 + $0x50] sm:$0xff]  ;;  %v404_v51 = vld [vmem:[%s3872_s19 + $0x68] sm:$0xff]  ;;  %v403_v56 = vld [vmem:[%s3872_s19 + $0x60] sm:$0xff] }
  0x45   : > { %488 = vadd.xlane.f32.xlu0 %v487_v14  ;;  %494 = vadd.xlane.f32.xlu1 %v493_v15  ;;  %v3917_v22 = vunpack.c.l.bf16 %v395_v13  ;;  %v3919_v23 = vunpack.c.h.bf16 %v395_v13  ;;  %v502_v28 = vadd.f32 %v3911_v19, %v3909_v18  ;;  %v3927_v29 = vunpack.c.l.bf16 %v398_v24  ;;  %s3934_s17 = scalar_lea.vmem %s5244_s1, %s2883_s20  ;;  %v406_v63 = vld [vmem:[%s3872_s19 + $0x78] sm:$0xff]  ;;  %v405_v13 = vld [vmem:[%s3872_s19 + $0x70] sm:$0xff]  ;;  %s2881_s20 = sshll.u32 %s3868_s29, 4 }
  0x46   : > { %v616_v25 = vadd.f32 %v615_v16, %v3886_v5  ;;  %v653_v26 = vadd.f32 %v652_v17, %v3888_v6  ;;  %v3929_v30 = vunpack.c.h.bf16 %v398_v24  ;;  %v3939_v33 = vunpack.c.l.bf16 %v397_v27  ;;  %v3378_v39 = vld [vmem:[%s3934_s17 + $0x40] sm:$0xff]   ;;  %v3380_v48 = vld [vmem:[%s3934_s17 + $0x48] sm:$0xff]   ;;  %v3382_v57 = vld [vmem:[%s3934_s17 + $0x50] sm:$0xff]   ;;  %s5128_s14 = scalar_lea.vmem [#allocation5], %s2881_s20 }
  0x47   : > { %v499_v32 = vadd.f32 %v3919_v23, %v3917_v22  ;;  %v3941_v34 = vunpack.c.h.bf16 %v397_v27  ;;  %v3950_v41 = vunpack.c.l.bf16 %v400_v35  ;;  %v3952_v42 = vunpack.c.h.bf16 %v400_v35  ;;  %v3379_v43 = vld [vmem:[%s3934_s17] sm:$0xff]   ;;  %2947 = vmatprep.subr.bf16.mxu0 %v3378_v39  ;;  %v3381_v52 = vld [vmem:[%s3934_s17 + $0x8] sm:$0xff]   ;;  %v3383_v0 = vld [vmem:[%s3934_s17 + $0x10] sm:$0xff]   ;;  %s2758_s25 = sshll.u32 %s5128_s14, 4  ;;  %s5192_s25 = int_to_ptr.vmem [resolvable:$true] %s2758_s25 }
  0x48   : > { %v617_v31 = vadd.f32 %v616_v25, %v3896_v11  ;;  %v654_v36 = vadd.f32 %v653_v26, %v3898_v12  ;;  %v508_v40 = vadd.f32 %v3929_v30, %v3927_v29  ;;  %v3958_v46 = vunpack.c.l.bf16 %v399_v37  ;;  %2948 = vmatpush3.bf16.msra.mxu0 %v3379_v43  ;;  %v3384_v1 = vld [vmem:[%s3934_s17 + $0x58] sm:$0xff]   ;;  %v408_v27 = vld [vmem:[%s3872_s19 + $0x88] sm:$0xff]  ;;  %s3638_s24 = scalar_lea.vmem %s5192_s25, 256 }
  0x49   : > { %491 = vadd.xlane.f32.xlu0 %v490_v20  ;;  %497 = vadd.xlane.f32.xlu1 %v496_v21  ;;  %5295 = vst [vmem:[#allocation8_spill] sm:$0xff] %v3950_v41  ;;  %v505_v45 = vadd.f32 %v3941_v34, %v3939_v33  ;;  %v3960_v47 = vunpack.c.h.bf16 %v399_v37  ;;  %v514_v53 = vadd.f32 %v3952_v42, %v3950_v41  ;;  %v3969_v54 = vunpack.c.l.bf16 %v402_v38  ;;  %v3385_v21 = vld [vmem:[%s3934_s17 + $0x18] sm:$0xff]   ;;  %v407_v37 = vld [vmem:[%s3872_s19 + $0x80] sm:$0xff]  ;;  %p3639_p6 = scmp.ne.s32.totalorder %s5192_s25, %s3638_s24 }
  0x4a   : > { %v618_v44 = vadd.f32 %v617_v31, %v3917_v22  ;;  %5296 = vst [vmem:[#allocation9_spill] sm:$0xff] %v3958_v46  ;;  %v655_v49 = vadd.f32 %v654_v36, %v3919_v23  ;;  %v3971_v55 = vunpack.c.h.bf16 %v402_v38  ;;  %2949 = vmatprep.subr.bf16.mxu0 %v3380_v48  ;;  %v3978_v60 = vunpack.c.l.bf16 %v401_v50  ;;  %v3387_v38 = vld [vmem:[%s3934_s17 + $0x20] sm:$0xff]   ;;  %v410_v43 = vld [vmem:[%s3872_s19 + $0x98] sm:$0xff] }
  0x4b   : > { %5297 = vst [vmem:[#allocation10_spill] sm:$0xff] %v3969_v54  ;;  %v511_v59 = vadd.f32 %v3960_v47, %v3958_v46  ;;  %v3980_v61 = vunpack.c.h.bf16 %v401_v50  ;;  %v3988_v7 = vunpack.c.l.bf16 %v404_v51  ;;  %v3990_v8 = vunpack.c.h.bf16 %v404_v51  ;;  %p3640_p13 = pnand %p3639_p6, %p5371_p12 }
  0x4c   : > { %5298 = vst [vmem:[#allocation11_spill] sm:$0xff] %v3971_v55  ;;  %v619_v58 = vadd.f32 %v618_v44, %v3909_v18  ;;  %5299 = vst [vmem:[#allocation12_spill] sm:$0xff] %v3978_v60  ;;  %v656_v62 = vadd.f32 %v655_v49, %v3911_v19  ;;  %2950 = vmatpush3.bf16.msra.mxu0 %v3381_v52  ;;  %v520_v2 = vadd.f32 %v3971_v55, %v3969_v54  ;;  %v409_v49 = vld [vmem:[%s3872_s19 + $0x90] sm:$0xff]  ;;  %vm3710_vm2 = vmmov 0  }
  0x4d   : > { %503 = vadd.xlane.f32.xlu1 %v502_v28  ;;  %500 = vadd.xlane.f32.xlu0 %v499_v32  ;;  %5300 = vst [vmem:[#allocation13_spill] sm:$0xff] %v3980_v61  ;;  %5301 = vst [vmem:[#allocation14_spill] sm:$0xff] %v3988_v7  ;;  %v517_v15 = vadd.f32 %v3980_v61, %v3978_v60  ;;  %v3996_v16 = vunpack.c.l.bf16 %v403_v56  ;;  %v3998_v17 = vunpack.c.h.bf16 %v403_v56  ;;  %v4004_v25 = vunpack.c.l.bf16 %v406_v63  ;;  %v3386_v28 = vld [vmem:[%s3934_s17 + $0x60] sm:$0xff]   ;;  %v3389_v56 = vld [vmem:[%s3934_s17 + $0x28] sm:$0xff]   ;;  %p3641_p8 = pneg %p3640_p13 }
  0x4e   : > { %5302 = vst [vmem:[#allocation15_spill] sm:$0xff] %v3990_v8  ;;  %2951 = vmatprep.subr.bf16.mxu0 %v3382_v57  ;;  %v620_v14 = vadd.f32 %v619_v58, %v3939_v33  ;;  %v657_v20 = vadd.f32 %v656_v62, %v3941_v34  ;;  %v526_v24 = vadd.f32 %v3990_v8, %v3988_v7  ;;  %v4006_v26 = vunpack.c.h.bf16 %v406_v63  ;;  %v3390_v58 = vld [vmem:[%s3934_s17 + $0x70] sm:$0xff]  }
  0x4f   : > { %5303 = vst [vmem:[#allocation16_spill] sm:$0xff] %v3996_v16  ;;  %5304 = vst [vmem:[#allocation17_spill] sm:$0xff] %v3998_v17  ;;  %v523_v32 = vadd.f32 %v3998_v17, %v3996_v16  ;;  %v4013_v35 = vunpack.c.l.bf16 %v405_v13  ;;  %v4015_v36 = vunpack.c.h.bf16 %v405_v13  ;;  %v4026_v48 = vunpack.c.h.bf16 %v408_v27 }
  0x50   : > { %2952 = vmatpush3.bf16.msra.mxu0 %v3383_v0  ;;  %5305 = vst [vmem:[#allocation18_spill] sm:$0xff] %v4004_v25  ;;  %v621_v31 = vadd.f32 %v620_v14, %v3927_v29  ;;  %v658_v39 = vadd.f32 %v657_v20, %v3929_v30  ;;  %v532_v44 = vadd.f32 %v4006_v26, %v4004_v25  ;;  %v4032_v52 = vunpack.c.l.bf16 %v407_v37  ;;  %v3391_v20 = vld [vmem:[%s3934_s17 + $0x30] sm:$0xff]  }
  0x51   : > { %509 = vadd.xlane.f32.xlu1 %v508_v40  ;;  %506 = vadd.xlane.f32.xlu0 %v505_v45  ;;  %5306 = vst [vmem:[#allocation19_spill] sm:$0xff] %v4013_v35  ;;  %v3388_v40 = vld [vmem:[%s3934_s17 + $0x68] sm:$0xff]   ;;  %v4024_v45 = vunpack.c.l.bf16 %v408_v27  ;;  %v529_v51 = vadd.f32 %v4015_v36, %v4013_v35  ;;  %v4042_v63 = vunpack.c.l.bf16 %v410_v43  ;;  %v4044_v0 = vunpack.c.h.bf16 %v410_v43  ;;  %v414_v27 = vld [vmem:[%s3872_s19 + $0xb8] sm:$0xff] }
  0x52   : > { %2953 = vmatprep.subr.bf16.mxu0 %v3384_v1  ;;  %v622_v50 = vadd.f32 %v621_v31, %v3958_v46  ;;  %5307 = vst [vmem:[#allocation20_spill] sm:$0xff] %v4032_v52  ;;  %v659_v57 = vadd.f32 %v658_v39, %v3960_v47  ;;  %v411_v1 = vld [vmem:[%s3872_s19 + $0xa0] sm:$0xff]  ;;  %v4050_v14 = vunpack.c.l.bf16 %v409_v49  ;;  %vm2537_vm3 = vcmask 1042434  }
  0x53   : > { %v538_v62 = vadd.f32 %v4026_v48, %v4024_v45  ;;  %v4067_v39 = vunpack.c.l.bf16 %v411_v1  ;;  %vm2539_vm4 = vcmask 1043459   ;;  %vm2541_vm5 = vcmask 1044484  }
  0x54   : > { %2954 = vmatpush3.bf16.msra.mxu0 %v3385_v21  ;;  %v660_v21 = vadd.f32 %v659_v57, %v3952_v42  ;;  %vm2543_vm6 = vcmask 1045509   ;;  %vm2545_vm7 = vcmask 1046534   ;;  %vm2547_vm8 = vcmask 1047559  }
  0x55   : > { %515 = vadd.xlane.f32.xlu1 %v514_v53  ;;  %512 = vadd.xlane.f32.xlu0 %v511_v59  ;;  %v4034_v53 = vunpack.c.h.bf16 %v407_v37  ;;  %v412_v59 = vld [vmem:[%s3872_s19 + $0xa8] sm:$0xff] }
  0x56   : > { %2955 = vmatprep.subr.bf16.mxu0 %v3386_v28  ;;  %v544_v28 = vadd.f32 %v4044_v0, %v4042_v63  ;;  %v4060_v31 = vunpack.c.l.bf16 %v412_v59  ;;  %v661_v43 = vadd.f32 %v660_v21, %v3980_v61  ;;  %v421_v61 = vld [vmem:[%s3872_s19 + $0xf0] sm:$0xff] }
  0x57   : > { %v535_v13 = vadd.f32 %v4034_v53, %v4032_v52 }
  0x58   : > { %2956 = vmatpush3.bf16.msra.mxu0 %v3387_v38 }
  0x59   : > { %521 = vadd.xlane.f32.xlu1 %v520_v2  ;;  %518 = vadd.xlane.f32.xlu0 %v517_v15  ;;  %v623_v2 = vadd.f32 %v622_v50, %v3950_v41  ;;  %v4052_v15 = vunpack.c.h.bf16 %v409_v49  ;;  %v3393_v49 = vld [vmem:[%s3934_s17 + $0x38] sm:$0xff]  }
  0x5a   : > { %2957 = vmatprep.subr.bf16.mxu0 %v3388_v40  ;;  %v4069_v40 = vunpack.c.h.bf16 %v411_v1  ;;  %v416_v1 = vld [vmem:[%s3872_s19 + $0xc8] sm:$0xff] }
  0x5b   : > { %v624_v37 = vadd.f32 %v623_v2, %v3978_v60  ;;  %v541_v38 = vadd.f32 %v4052_v15, %v4050_v14  ;;  %v662_v2 = vadd.f32 %v661_v43, %v3971_v55  ;;  %v4092_v21 = vunpack.c.l.bf16 %v416_v1  ;;  %v418_v43 = vld [vmem:[%s3872_s19 + $0xd8] sm:$0xff]  ;;  %v419_v60 = vld [vmem:[%s3872_s19 + $0xe0] sm:$0xff] }
  0x5c   : > { %2958 = vmatpush3.bf16.msra.mxu0 %v3389_v56  ;;  %v4078_v56 = vunpack.c.h.bf16 %v414_v27 }
  0x5d   : > { %527 = vadd.xlane.f32.xlu1 %v526_v24  ;;  %524 = vadd.xlane.f32.xlu0 %v523_v32  ;;  %v3392_v24 = vld [vmem:[%s3934_s17 + $0x78] sm:$0xff]   ;;  %v4062_v32 = vunpack.c.h.bf16 %v412_v59  ;;  %v625_v57 = vadd.f32 %v624_v37, %v3969_v54  ;;  %v4108_v54 = vunpack.c.l.bf16 %v418_v43 }
  0x5e   : > { %2959 = vmatprep.subr.bf16.mxu0 %v3390_v58  ;;  %v547_v58 = vadd.f32 %v4069_v40, %v4067_v39 }
  0x5f   : > { %v550_v50 = vadd.f32 %v4062_v32, %v4060_v31  ;;  %5308 = vst [vmem:[#allocation21_spill] sm:$0xff] %v4108_v54 }
  0x60   : > { %2960 = vmatpush3.bf16.msra.mxu0 %v3391_v20 }
  0x61   : > { %533 = vadd.xlane.f32.xlu1 %v532_v44  ;;  %530 = vadd.xlane.f32.xlu0 %v529_v51  ;;  %v413_v44 = vld [vmem:[%s3872_s19 + $0xb0] sm:$0xff]  ;;  %v4076_v51 = vunpack.c.l.bf16 %v414_v27  ;;  %v626_v27 = vadd.f32 %v625_v57, %v3996_v16  ;;  %v420_v16 = vld [vmem:[%s3872_s19 + $0xe8] sm:$0xff] }
  0x62   : > { %2961 = vmatprep.subr.bf16.mxu0 %v3392_v24  ;;  %v4083_v59 = vunpack.c.l.bf16 %v413_v44  ;;  %v4094_v24 = vunpack.c.h.bf16 %v416_v1  ;;  %v4124_v55 = vunpack.c.l.bf16 %v420_v16 }
  0x63   : > { %v556_v20 = vadd.f32 %v4078_v56, %v4076_v51  ;;  %v627_v57 = vadd.f32 %v626_v27, %v3988_v7  ;;  %v4133_v7 = vunpack.c.h.bf16 %v419_v60 }
  0x64   : > { %2962 = vmatpush3.bf16.msra.mxu0 %v3393_v49  ;;  %v417_v49 = vld [vmem:[%s3872_s19 + $0xd0] sm:$0xff]  ;;  %v562_v1 = vadd.f32 %v4094_v24, %v4092_v21  ;;  %5310 = vst [vmem:[#allocation23_spill] sm:$0xff] %v4124_v55 }
  0x65   : > { %539 = vadd.xlane.f32.xlu1 %v538_v62  ;;  %536 = vadd.xlane.f32.xlu0 %v535_v13  ;;  %v4085_v62 = vunpack.c.h.bf16 %v413_v44  ;;  %v415_v13 = vld [vmem:[%s3872_s19 + $0xc0] sm:$0xff]  ;;  %v663_v44 = vadd.f32 %v662_v2, %v3998_v17  ;;  %v4117_v2 = vunpack.c.h.bf16 %v417_v49  ;;  %v628_v27 = vadd.f32 %v627_v57, %v4013_v35  ;;  %5313 = vst [vmem:[#allocation26_spill] sm:$0xff] %v4133_v7 }
  0x66   : > { %v4099_v37 = vunpack.c.l.bf16 %v415_v13 }
  0x67   : > { %v664_v17 = vadd.f32 %v663_v44, %v3990_v8  ;;  %v422_v44 = vld [vmem:[%s3872_s19 + $0xf8] sm:$0xff]  ;;  %s3711_s19 = smov [#allocation5]  }
  0x68   : > { %v4142_v46 = vunpack.c.h.bf16 %v422_v44  ;;  %s3642_s28 = sshll.u32 %s3711_s19, 4  ;;  %s3643_s28 = int_to_ptr.vmem [resolvable:$false] %s3642_s28 }
  0x69   : > { %545 = vadd.xlane.f32.xlu1 %v544_v28  ;;  %542 = vadd.xlane.f32.xlu0 %v541_v38  ;;  %v553_v28 = vadd.f32 %v4085_v62, %v4083_v59  ;;  %v4101_v38 = vunpack.c.h.bf16 %v415_v13  ;;  %v4115_v13 = vunpack.c.l.bf16 %v417_v49  ;;  %v4131_v49 = vunpack.c.l.bf16 %v419_v60  ;;  %s3644_s20 = scalar_lea.vmem %s3643_s28, 512  ;;  %p3645_p10 = scmp.lt.s32.totalorder %s5192_s25, %s3643_s28 }
  0x6a   : > { %v665_v8 = vadd.f32 %v664_v17, %v4015_v36  ;;  %v4147_v60 = vunpack.c.l.bf16 %v421_v61  ;;  %p3646_p0 = scmp.lt.s32.totalorder %s3644_s20, %s3638_s24 }
  0x6b   : > { %5309 = vst [vmem:[#allocation22_spill] sm:$0xff] %v4115_v13  ;;  %5312 = vst [vmem:[#allocation25_spill] sm:$0xff] %v4131_v49  ;;  %v571_v57 = vadd.f32 %v4133_v7, %v4131_v49 }
  0x6c   : > { %v666_v17 = vadd.f32 %v665_v8, %v4006_v26  ;;  %p3647_p2 = por %p3646_p0, %p3645_p10 }
  0x6d   : > { %551 = vadd.xlane.f32.xlu1 %v550_v50  ;;  %548 = vadd.xlane.f32.xlu0 %v547_v58  ;;  %v4110_v50 = vunpack.c.h.bf16 %v418_v43  ;;  %v559_v58 = vadd.f32 %v4101_v38, %v4099_v37 }
  0x6e   : > { %p3648_p4 = pnand %p3647_p2, %p3641_p8 }
  0x6f   : > { %v568_v43 = vadd.f32 %v4110_v50, %v4108_v54 }
  0x71   : > { %557 = vadd.xlane.f32.xlu1 %v556_v20  ;;  %554 = vadd.xlane.f32.xlu0 %v553_v28  ;;  %v4126_v20 = vunpack.c.h.bf16 %v420_v16  ;;  %v565_v28 = vadd.f32 %v4117_v2, %v4115_v13  ;;  %v4140_v16 = vunpack.c.l.bf16 %v422_v44 }
  0x73   : > { %5311 = vst [vmem:[#allocation24_spill] sm:$0xff] %v4126_v20  ;;  %v574_v41 = vadd.f32 %v4126_v20, %v4124_v55  ;;  %v580_v44 = vadd.f32 %v4142_v46, %v4140_v16 }
  0x75   : > { %563 = vadd.xlane.f32.xlu1 %v562_v1  ;;  %560 = vadd.xlane.f32.xlu0 %v559_v58  ;;  %v629_v1 = vadd.f32 %v628_v27, %v4004_v25  ;;  %v4149_v58 = vunpack.c.h.bf16 %v421_v61  ;;  %v667_v27 = vadd.f32 %v666_v17, %v4034_v53 }
  0x77   : > { %v630_v35 = vadd.f32 %v629_v1, %v4032_v52  ;;  %v668_v61 = vadd.f32 %v667_v27, %v4026_v48 }
  0x79   : > { %569 = vadd.xlane.f32.xlu1 %v568_v43  ;;  %566 = vadd.xlane.f32.xlu0 %v565_v28  ;;  %v577_v43 = vadd.f32 %v4149_v58, %v4147_v60  ;;  %v631_v28 = vadd.f32 %v630_v35, %v4024_v45  ;;  %v669_v1 = vadd.f32 %v668_v61, %v4052_v15 }
  0x7b   : > { %v632_v8 = vadd.f32 %v631_v28, %v4050_v14 }
  0x7d   : > { %575 = vadd.xlane.f32.xlu1 %v574_v41  ;;  %572 = vadd.xlane.f32.xlu0 %v571_v57  ;;  %v633_v41 = vadd.f32 %v632_v8, %v4042_v63  ;;  %v670_v57 = vadd.f32 %v669_v1, %v4044_v0 }
  0x7f   : > { %v634_v52 = vadd.f32 %v633_v41, %v4067_v39  ;;  %v671_v25 = vadd.f32 %v670_v57, %v4069_v40 }
  0x81   : > { %581 = vadd.xlane.f32.xlu1 %v580_v44  ;;  %578 = vadd.xlane.f32.xlu0 %v577_v43  ;;  %v635_v17 = vadd.f32 %v634_v52, %v4060_v31  ;;  %v672_v35 = vadd.f32 %v671_v25, %v4062_v32 }
  0x83   : > { %v636_v44 = vadd.f32 %v635_v17, %v4083_v59  ;;  %v673_v43 = vadd.f32 %v672_v35, %v4085_v62 }
  0x85   : > { %v637_v27 = vadd.f32 %v636_v44, %v4076_v51  ;;  %v674_v28 = vadd.f32 %v673_v43, %v4078_v56 }
  0x87   : > { %v638_v61 = vadd.f32 %v637_v27, %v4099_v37  ;;  %v675_v8 = vadd.f32 %v674_v28, %v4101_v38 }
  0x89   : > { %v639_v1 = vadd.f32 %v638_v61, %v4092_v21  ;;  %v676_v41 = vadd.f32 %v675_v8, %v4094_v24 }
  0x8b   : > { %v640_v52 = vadd.f32 %v639_v1, %v4115_v13  ;;  %v677_v25 = vadd.f32 %v676_v41, %v4117_v2 }
  0x8d   : > { %v641_v57 = vadd.f32 %v640_v52, %v4108_v54  ;;  %v678_v17 = vadd.f32 %v677_v25, %v4110_v50 }
  0x8f   : > { %v642_v35 = vadd.f32 %v641_v57, %v4131_v49  ;;  %v679_v44 = vadd.f32 %v678_v17, %v4133_v7 }
  0x91   : > { %v643_v43 = vadd.f32 %v642_v35, %v4124_v55  ;;  %v680_v27 = vadd.f32 %v679_v44, %v4126_v20 }
  0x93   : > { %v644_v28 = vadd.f32 %v643_v43, %v4147_v60  ;;  %v681_v61 = vadd.f32 %v680_v27, %v4149_v58 }
  0x95   : > { %v645_v8 = vadd.f32 %v644_v28, %v4140_v16  ;;  %v682_v1 = vadd.f32 %v681_v61, %v4142_v46 }
  0x97   : > { %v646_v41 = vrot.slane %v645_v8, 4  ;;  %v683_v52 = vrot.slane %v682_v1, 4 }
  0x99   : > { %v647_v54 = vadd.f32 %v646_v41, %v645_v8  ;;  %v684_v25 = vadd.f32 %v683_v52, %v682_v1 }
  0x9b   : > { %v648_v13 = vrot.slane %v647_v54, 2  ;;  %v685_v57 = vrot.slane %v684_v25, 2 }
  0x9d   : > { %v649_v49 = vadd.f32 %v648_v13, %v647_v54  ;;  %v686_v17 = vadd.f32 %v685_v57, %v684_v25 }
  0x9f   : > { %v650_v7 = vrot.slane %v649_v49, 1  ;;  %v687_v35 = vrot.slane %v686_v17, 1 }
  0xa1   : > { %v651_v55 = vadd.f32 %v650_v7, %v649_v49  ;;  %v688_v44 = vadd.f32 %v687_v35, %v686_v17 }
  0xd2   : > { %v489_v20 = vpop.xlane.xlu0 %488  ;;  %v495_v43 = vpop.xlane.xlu1 %494 }
  0xd3   : > { %3412 = vrsqrt.f32 %v489_v20 }
  0xd4   : > { %3414 = vrsqrt.f32 %v495_v43 }
  0xd5   : > { %3416 = vrsqrt.f32 %v651_v55 }
  0xd6   : > { %3418 = vrsqrt.f32 %v688_v44  ;;  %v492_v27 = vpop.xlane.xlu0 %491  ;;  %v498_v28 = vpop.xlane.xlu1 %497 }
  0xd7   : > { %3420 = vrsqrt.f32 %v492_v27 }
  0xd8   : > { %3422 = vrsqrt.f32 %v498_v28 }
  0xda   : > { %v504_v61 = vpop.xlane.xlu1 %503  ;;  %v501_v8 = vpop.xlane.xlu0 %500 }
  0xdb   : > { %3424 = vrsqrt.f32 %v504_v61 }
  0xdc   : > { %3426 = vrsqrt.f32 %v501_v8 }
  0xdd   : > { %v3413_v54 = vpop.eup %3412 }
  0xde   : > { %v3415_v13 = vpop.eup %3414  ;;  %v510_v1 = vpop.xlane.xlu1 %509  ;;  %v692_v55 = vmul.f32 %v3413_v54, %v3884_v4  ;;  %v691_v52 = vmul.f32 %v3413_v54, %v3882_v3 }
  0xdf   : > { %v507_v41 = vpop.xlane.xlu0 %506  ;;  %v4188_v7 = vpop.eup %3416  ;;  %v696_v49 = vmul.f32 %v3415_v13, %v3888_v6  ;;  %3428 = vrsqrt.f32 %v510_v1 }
  0xe0   : > { %v4191_v20 = vpop.eup %3418  ;;  %3430 = vrsqrt.f32 %v507_v41  ;;  %v755_v4 = vmul.f32 %v4188_v7, %v691_v52 }
  0xe1   : > { %v3421_v25 = vpop.eup %3420  ;;  %v760_v43 = vmul.f32 %v4191_v20, %v696_v49  ;;  %v756_v6 = vmul.f32 %v4191_v20, %v692_v55  ;;  %v695_v49 = vmul.f32 %v3415_v13, %v3886_v5 }
  0xe2   : > { %v3423_v57 = vpop.eup %3422  ;;  %v694_v17 = vmul.f32 %v3421_v25, %v3894_v10  ;;  %v693_v35 = vmul.f32 %v3421_v25, %v3892_v9  ;;  %v516_v8 = vpop.xlane.xlu1 %515 }
  0xe3   : > { %v698_v44 = vmul.f32 %v3423_v57, %v3898_v12  ;;  %v513_v12 = vpop.xlane.xlu0 %512  ;;  %v697_v55 = vmul.f32 %v3423_v57, %v3896_v11  ;;  %3432 = vrsqrt.f32 %v516_v8  ;;  %v759_v5 = vmul.f32 %v4188_v7, %v695_v49 }
  0xe4   : > { %v758_v27 = vmul.f32 %v4191_v20, %v694_v17  ;;  %v757_v3 = vmul.f32 %v4188_v7, %v693_v35  ;;  %3434 = vrsqrt.f32 %v513_v12 }
  0xe5   : > { %v3425_v28 = vpop.eup %3424  ;;  %v762_v61 = vmul.f32 %v4191_v20, %v698_v44  ;;  %v761_v11 = vmul.f32 %v4188_v7, %v697_v55 }
  0xe6   : > { %v3427_v54 = vpop.eup %3426  ;;  %v4204_v10 = vpack.c.bf16 %v758_v27, %v756_v6  ;;  %v4206_v9 = vpack.c.bf16 %v757_v3, %v755_v4  ;;  %v702_v1 = vmul.f32 %v3425_v28, %v3911_v19  ;;  %v701_v13 = vmul.f32 %v3425_v28, %v3909_v18  ;;  %v522_v57 = vpop.xlane.xlu1 %521 }
  0xe7   : > { %v4209_v41 = vpack.c.bf16 %v762_v61, %v760_v43  ;;  %v700_v52 = vmul.f32 %v3427_v54, %v3919_v23  ;;  %v699_v23 = vmul.f32 %v3427_v54, %v3917_v22  ;;  %v519_v43 = vpop.xlane.xlu0 %518  ;;  %v4227_v4 = vpack.c.bf16 %v761_v11, %v759_v5  ;;  %v5315_v11 = vld [vmem:[#allocation8_spill] sm:$0xff] }
  0xe8   : > { %1015 = vmatprep.mubr.bf16.mxu0 %v4204_v10  ;;  %v766_v19 = vmul.f32 %v4191_v20, %v702_v1  ;;  %3436 = vrsqrt.f32 %v522_v57  ;;  %v765_v61 = vmul.f32 %v4188_v7, %v701_v13 }
  0xe9   : > { %1016 = vmatmul.mubr.bf16.vlgmr.msra.gmra.mrb[0].mxu0 %v4206_v9  ;;  %v3429_v25 = vpop.eup %3428  ;;  %v764_v17 = vmul.f32 %v4191_v20, %v700_v52  ;;  %v763_v3 = vmul.f32 %v4188_v7, %v699_v23  ;;  %3438 = vrsqrt.f32 %v519_v43 }
  0xea   : > { %1023 = vmatprep.mubr.bf16.mxu0 %v4209_v41  ;;  %v3431_v35 = vpop.eup %3430  ;;  %v706_v27 = vmul.f32 %v3429_v25, %v3929_v30  ;;  %v705_v54 = vmul.f32 %v3429_v25, %v3927_v29  ;;  %v528_v12 = vpop.xlane.xlu1 %527 }
  0xeb   : > { %v4223_v44 = vpack.c.bf16 %v766_v19, %v764_v17  ;;  %v704_v6 = vmul.f32 %v3431_v35, %v3941_v34  ;;  %v4235_v8 = vpack.c.bf16 %v765_v61, %v763_v3  ;;  %v703_v30 = vmul.f32 %v3431_v35, %v3939_v33  ;;  %v525_v49 = vpop.xlane.xlu0 %524  ;;  %v5317_v3 = vld [vmem:[#allocation11_spill] sm:$0xff] }
  0xec   : > { %v770_v28 = vmul.f32 %v4191_v20, %v706_v27  ;;  %3440 = vrsqrt.f32 %v528_v12  ;;  %v769_v19 = vmul.f32 %v4188_v7, %v705_v54 }
  0xed   : > { %v3433_v22 = vpop.eup %3432  ;;  %v768_v18 = vmul.f32 %v4191_v20, %v704_v6  ;;  %v767_v17 = vmul.f32 %v4188_v7, %v703_v30  ;;  %3442 = vrsqrt.f32 %v525_v49  ;;  %v5316_v6 = vld [vmem:[#allocation13_spill] sm:$0xff]  ;;  %v5318_v49 = vld [vmem:[#allocation12_spill] sm:$0xff] }
  0xee   : > { %v3435_v34 = vpop.eup %3434  ;;  %v710_v52 = vmul.f32 %v3433_v22, %v3952_v42  ;;  %v709_v23 = vmul.f32 %v3433_v22, %v5315_v11  ;;  %v534_v13 = vpop.xlane.xlu1 %533  ;;  %v5321_v11 = vld [vmem:[#allocation15_spill] sm:$0xff] }
  0xef   : > { %v4239_v1 = vpack.c.bf16 %v770_v28, %v768_v18  ;;  %v708_v55 = vmul.f32 %v3435_v34, %v3960_v47  ;;  %v4249_v35 = vpack.c.bf16 %v769_v19, %v767_v17  ;;  %v5314_v47 = vld [vmem:[#allocation9_spill] sm:$0xff]  ;;  %v531_v43 = vpop.xlane.xlu0 %530  ;;  %3444 = vrsqrt.f32 %v534_v13 }
  0xf0   : > { %v774_v33 = vmul.f32 %v4191_v20, %v710_v52  ;;  %v707_v42 = vmul.f32 %v3435_v34, %v5314_v47  ;;  %v773_v28 = vmul.f32 %v4188_v7, %v709_v23  ;;  %3446 = vrsqrt.f32 %v531_v43  ;;  %v5319_v52 = vld [vmem:[#allocation10_spill] sm:$0xff]  ;;  %v5320_v47 = vld [vmem:[#allocation17_spill] sm:$0xff] }
  0xf1   : > { %1024 = vmatmul.mubr.bf16.gmra.mrb[4].mxu0 %v4227_v4  ;;  %v772_v29 = vmul.f32 %v4191_v20, %v708_v55 }
  0xf2   : > { %1031 = vmatprep.mubr.bf16.mxu0 %v4223_v44  ;;  %v3437_v5 = vpop.eup %3436  ;;  %v771_v18 = vmul.f32 %v4188_v7, %v707_v42  ;;  %v540_v19 = vpop.xlane.xlu1 %539 }
  0xf3   : > { %v3439_v25 = vpop.eup %3438  ;;  %v4253_v57 = vpack.c.bf16 %v774_v33, %v772_v29  ;;  %v714_v61 = vmul.f32 %v3437_v5, %v5317_v3  ;;  %v713_v17 = vmul.f32 %v3437_v5, %v5319_v52  ;;  %v537_v33 = vpop.xlane.xlu0 %536  ;;  %3448 = vrsqrt.f32 %v540_v19 }
  0xf4   : > { %v712_v27 = vmul.f32 %v3439_v25, %v5316_v6  ;;  %v4263_v12 = vpack.c.bf16 %v773_v28, %v771_v18  ;;  %v711_v55 = vmul.f32 %v3439_v25, %v5318_v49  ;;  %3450 = vrsqrt.f32 %v537_v33  ;;  %v5323_v28 = vld [vmem:[#allocation14_spill] sm:$0xff] }
  0xf5   : > { %v778_v34 = vmul.f32 %v4191_v20, %v714_v61  ;;  %v777_v43 = vmul.f32 %v4188_v7, %v713_v17  ;;  %v5322_v61 = vld [vmem:[#allocation16_spill] sm:$0xff] }
  0xf6   : > { %v3441_v30 = vpop.eup %3440  ;;  %v776_v22 = vmul.f32 %v4191_v20, %v712_v27  ;;  %v775_v13 = vmul.f32 %v4188_v7, %v711_v55 }
  0xf7   : > { %v3443_v54 = vpop.eup %3442  ;;  %v718_v23 = vmul.f32 %v3441_v30, %v5321_v11  ;;  %v543_v55 = vpop.xlane.xlu0 %542 }
  0xf8   : > { %v4267_v29 = vpack.c.bf16 %v778_v34, %v776_v22  ;;  %v716_v42 = vmul.f32 %v3443_v54, %v5320_v47  ;;  %v4277_v3 = vpack.c.bf16 %v777_v43, %v775_v13  ;;  %v715_v18 = vmul.f32 %v3443_v54, %v5322_v61  ;;  %v546_v34 = vpop.xlane.xlu1 %545 }
  0xf9   : > { %1032 = vmatmul.mubr.bf16.gmra.mrb[8].mxu0 %v4235_v8  ;;  %v3445_v6 = vpop.eup %3444  ;;  %v782_v25 = vmul.f32 %v4191_v20, %v718_v23  ;;  %v717_v22 = vmul.f32 %v3441_v30, %v5323_v28  ;;  %3452 = vrsqrt.f32 %v546_v34  ;;  %v5325_v23 = vld [vmem:[#allocation18_spill] sm:$0xff] }
  0xfa   : > { %1039 = vmatprep.mubr.bf16.mxu0 %v4239_v1  ;;  %v780_v5 = vmul.f32 %v4191_v20, %v716_v42  ;;  %v3447_v27 = vpop.eup %3446  ;;  %v722_v17 = vmul.f32 %v3445_v6, %v4006_v26  ;;  %v779_v19 = vmul.f32 %v4188_v7, %v715_v18  ;;  %3454 = vrsqrt.f32 %v543_v55 }
  0xfb   : > { %v720_v52 = vmul.f32 %v3447_v27, %v4015_v36  ;;  %v781_v33 = vmul.f32 %v4188_v7, %v717_v22  ;;  %v5324_v36 = vld [vmem:[#allocation19_spill] sm:$0xff]  ;;  %v721_v13 = vmul.f32 %v3445_v6, %v5325_v23 }
  0xfc   : > { %v4281_v49 = vpack.c.bf16 %v782_v25, %v780_v5  ;;  %v786_v54 = vmul.f32 %v4191_v20, %v722_v17  ;;  %v719_v26 = vmul.f32 %v3447_v27, %v5324_v36  ;;  %v552_v43 = vpop.xlane.xlu1 %551  ;;  %v549_v25 = vpop.xlane.xlu0 %548 }
  0xfd   : > { %v3449_v47 = vpop.eup %3448  ;;  %v784_v30 = vmul.f32 %v4191_v20, %v720_v52  ;;  %v4291_v11 = vpack.c.bf16 %v781_v33, %v779_v19  ;;  %3456 = vrsqrt.f32 %v552_v43  ;;  %v785_v22 = vmul.f32 %v4188_v7, %v721_v13 }
  0xfe   : > { %v3451_v42 = vpop.eup %3450  ;;  %v726_v18 = vmul.f32 %v3449_v47, %v4026_v48  ;;  %v783_v28 = vmul.f32 %v4188_v7, %v719_v26  ;;  %3458 = vrsqrt.f32 %v549_v25  ;;  %v725_v17 = vmul.f32 %v3449_v47, %v4024_v45 }
  0xff   : > { %v4295_v5 = vpack.c.bf16 %v786_v54, %v784_v30  ;;  %v724_v61 = vmul.f32 %v3451_v42, %v4034_v53  ;;  %v5326_v53 = vld [vmem:[#allocation20_spill] sm:$0xff] }
 0x100   : > { %v790_v27 = vmul.f32 %v4191_v20, %v726_v18  ;;  %v4305_v52 = vpack.c.bf16 %v785_v22, %v783_v28  ;;  %v723_v48 = vmul.f32 %v3451_v42, %v5326_v53  ;;  %v558_v19 = vpop.xlane.xlu1 %557  ;;  %v555_v30 = vpop.xlane.xlu0 %554  ;;  %v789_v23 = vmul.f32 %v4188_v7, %v725_v17 }
 0x101   : > { %1040 = vmatmul.mubr.bf16.gmra.mrb[12].mxu0 %v4249_v35  ;;  %v788_v6 = vmul.f32 %v4191_v20, %v724_v61  ;;  %3460 = vrsqrt.f32 %v558_v19 }
 0x102   : > { %1047 = vmatprep.mubr.bf16.mxu0 %v4253_v57  ;;  %v787_v26 = vmul.f32 %v4188_v7, %v723_v48  ;;  %3462 = vrsqrt.f32 %v555_v30 }
 0x103   : > { %v3453_v34 = vpop.eup %3452  ;;  %v4309_v33 = vpack.c.bf16 %v790_v27, %v788_v6 }
 0x104   : > { %v3455_v55 = vpop.eup %3454  ;;  %v730_v36 = vmul.f32 %v3453_v34, %v4044_v0  ;;  %v4319_v43 = vpack.c.bf16 %v789_v23, %v787_v26  ;;  %v564_v25 = vpop.xlane.xlu1 %563 }
 0x105   : > { %v728_v54 = vmul.f32 %v3455_v55, %v4052_v15  ;;  %v727_v0 = vmul.f32 %v3455_v55, %v4050_v14  ;;  %v729_v15 = vmul.f32 %v3453_v34, %v4042_v63  ;;  %v561_v18 = vpop.xlane.xlu0 %560  ;;  %3464 = vrsqrt.f32 %v564_v25 }
 0x106   : > { %v794_v47 = vmul.f32 %v4191_v20, %v730_v36  ;;  %5327 = vst [vmem:[#allocation9_spill] sm:$0xff] %v4319_v43  ;;  %3466 = vrsqrt.f32 %v561_v18 }
 0x107   : > { %v3457_v13 = vpop.eup %3456  ;;  %v792_v45 = vmul.f32 %v4191_v20, %v728_v54  ;;  %v791_v6 = vmul.f32 %v4188_v7, %v727_v0  ;;  %v793_v27 = vmul.f32 %v4188_v7, %v729_v15 }
 0x108   : > { %v3459_v42 = vpop.eup %3458  ;;  %v734_v22 = vmul.f32 %v3457_v13, %v4062_v32  ;;  %v570_v48 = vpop.xlane.xlu1 %569 }
 0x109   : > { %1048 = vmatmul.mubr.bf16.gmra.mrb[16].mxu0 %v4263_v12  ;;  %v4323_v61 = vpack.c.bf16 %v794_v47, %v792_v45  ;;  %v732_v28 = vmul.f32 %v3459_v42, %v4069_v40  ;;  %v4333_v55 = vpack.c.bf16 %v793_v27, %v791_v6  ;;  %v731_v32 = vmul.f32 %v3459_v42, %v4067_v39  ;;  %v567_v19 = vpop.xlane.xlu0 %566 }
 0x10a   : > { %1055 = vmatprep.mubr.bf16.mxu0 %v4267_v29  ;;  %v798_v14 = vmul.f32 %v4191_v20, %v734_v22  ;;  %v733_v40 = vmul.f32 %v3457_v13, %v4060_v31  ;;  %3468 = vrsqrt.f32 %v570_v48 }
 0x10b   : > { %5328 = vst [vmem:[#allocation8_spill] sm:$0xff] %v4323_v61  ;;  %v3461_v53 = vpop.eup %3460  ;;  %v796_v63 = vmul.f32 %v4191_v20, %v732_v28  ;;  %5329 = vst [vmem:[#allocation13_spill] sm:$0xff] %v4333_v55  ;;  %v795_v36 = vmul.f32 %v4188_v7, %v731_v32  ;;  %3470 = vrsqrt.f32 %v567_v19 }
 0x10c   : > { %v3463_v34 = vpop.eup %3462  ;;  %v738_v54 = vmul.f32 %v3461_v53, %v4078_v56  ;;  %v797_v26 = vmul.f32 %v4188_v7, %v733_v40  ;;  %v576_v47 = vpop.xlane.xlu1 %575 }
 0x10d   : > { %v4337_v17 = vpack.c.bf16 %v798_v14, %v796_v63  ;;  %v736_v30 = vmul.f32 %v3463_v34, %v4085_v62  ;;  %v735_v56 = vmul.f32 %v3463_v34, %v4083_v59  ;;  %v737_v62 = vmul.f32 %v3461_v53, %v4076_v51  ;;  %v573_v0 = vpop.xlane.xlu0 %572 }
 0x10e   : > { %v802_v39 = vmul.f32 %v4191_v20, %v738_v54  ;;  %v4347_v45 = vpack.c.bf16 %v797_v26, %v795_v36  ;;  %3472 = vrsqrt.f32 %v576_v47  ;;  %v5336_v54 = vld [vmem:[#allocation22_spill] sm:$0xff]  ;;  %v5337_v26 = vld [vmem:[#allocation21_spill] sm:$0xff] }
 0x10f   : > { %5330 = vst [vmem:[#allocation11_spill] sm:$0xff] %v4337_v17  ;;  %v3465_v23 = vpop.eup %3464  ;;  %v800_v31 = vmul.f32 %v4191_v20, %v736_v30  ;;  %v799_v18 = vmul.f32 %v4188_v7, %v735_v56  ;;  %v801_v28 = vmul.f32 %v4188_v7, %v737_v62  ;;  %3474 = vrsqrt.f32 %v573_v0  ;;  %v5340_v56 = vld [vmem:[#allocation24_spill] sm:$0xff]  ;;  %v3395_v47 = vld [vmem:[%s5245_s2 + $0x8] sm:$0xff]  }
 0x110   : > { %v3467_v13 = vpop.eup %3466  ;;  %5331 = vst [vmem:[#allocation12_spill] sm:$0xff] %v4347_v45  ;;  %v742_v25 = vmul.f32 %v3465_v23, %v4094_v24  ;;  %v582_v53 = vpop.xlane.xlu1 %581 }
 0x111   : > { %1056 = vmatmul.mubr.bf16.gmra.mrb[20].mxu0 %v4277_v3  ;;  %v4351_v42 = vpack.c.bf16 %v802_v39, %v800_v31  ;;  %v740_v15 = vmul.f32 %v3467_v13, %v4101_v38  ;;  %v4361_v27 = vpack.c.bf16 %v801_v28, %v799_v18  ;;  %v739_v24 = vmul.f32 %v3467_v13, %v4099_v37  ;;  %v579_v14 = vpop.xlane.xlu0 %578  ;;  %v5339_v39 = vld [vmem:[#allocation26_spill] sm:$0xff] }
 0x112   : > { %1063 = vmatprep.mubr.bf16.mxu0 %v4281_v49  ;;  %v806_v59 = vmul.f32 %v4191_v20, %v742_v25  ;;  %v741_v38 = vmul.f32 %v3465_v23, %v4092_v21  ;;  %3476 = vrsqrt.f32 %v582_v53 }
 0x113   : > { %5332 = vst [vmem:[#allocation10_spill] sm:$0xff] %v4351_v42  ;;  %v804_v51 = vmul.f32 %v4191_v20, %v740_v15  ;;  %5333 = vst [vmem:[#allocation17_spill] sm:$0xff] %v4361_v27  ;;  %v803_v40 = vmul.f32 %v4188_v7, %v739_v24  ;;  %3478 = vrsqrt.f32 %v579_v14  ;;  %v5343_v24 = vld [vmem:[#allocation23_spill] sm:$0xff] }
 0x114   : > { %v3469_v22 = vpop.eup %3468  ;;  %v805_v48 = vmul.f32 %v4188_v7, %v741_v38 }
 0x115   : > { %v3471_v6 = vpop.eup %3470  ;;  %v4365_v63 = vpack.c.bf16 %v806_v59, %v804_v51  ;;  %v746_v32 = vmul.f32 %v3469_v22, %v4110_v50  ;;  %v745_v23 = vmul.f32 %v3469_v22, %v5337_v26  ;;  %v5342_v59 = vld [vmem:[#allocation25_spill] sm:$0xff] }
 0x116   : > { %v744_v34 = vmul.f32 %v3471_v6, %v4117_v2  ;;  %v3394_v2 = vld [vmem:[%s5245_s2] sm:$0xff]   ;;  %v4378_v30 = vpack.c.bf16 %v805_v48, %v803_v40  ;;  %v743_v36 = vmul.f32 %v3471_v6, %v5336_v54 }
 0x117   : > { %5334 = vst [vmem:[#allocation15_spill] sm:$0xff] %v4365_v63  ;;  %v810_v37 = vmul.f32 %v4191_v20, %v746_v32  ;;  %3222 = vmatprep.subr.bf16.mxu1 %v3394_v2  ;;  %v809_v15 = vmul.f32 %v4188_v7, %v745_v23 }
 0x118   : > { %v3473_v19 = vpop.eup %3472  ;;  %v808_v21 = vmul.f32 %v4191_v20, %v744_v34  ;;  %5335 = vst [vmem:[#allocation16_spill] sm:$0xff] %v4378_v30  ;;  %3223 = vmatpush3.bf16.msra.mxu1 %v3394_v2  ;;  %v807_v0 = vmul.f32 %v4188_v7, %v743_v36 }
 0x119   : > { %1064 = vmatmul.mubr.bf16.gmra.mrb[24].mxu0 %v4291_v11  ;;  %v3475_v50 = vpop.eup %3474  ;;  %v750_v62 = vmul.f32 %v3473_v19, %v5340_v56  ;;  %3224 = vmatprep.subr.bf16.mxu1 %v3395_v47  ;;  %v749_v38 = vmul.f32 %v3473_v19, %v5343_v24 }
 0x11a   : > { %1071 = vmatprep.mubr.bf16.mxu0 %v4295_v5  ;;  %v4382_v31 = vpack.c.bf16 %v810_v37, %v808_v21  ;;  %v748_v13 = vmul.f32 %v3475_v50, %v5339_v39  ;;  %v4395_v51 = vpack.c.bf16 %v809_v15, %v807_v0  ;;  %v747_v6 = vmul.f32 %v3475_v50, %v5342_v59 }
 0x11b   : > { %v814_v28 = vmul.f32 %v4191_v20, %v750_v62  ;;  %v813_v40 = vmul.f32 %v4188_v7, %v749_v38 }
 0x11c   : > { %5338 = vst [vmem:[#allocation14_spill] sm:$0xff] %v4382_v31  ;;  %3225 = vmatpush3.bf16.msra.mxu1 %v3395_v47  ;;  %v3477_v25 = vpop.eup %3476  ;;  %v812_v18 = vmul.f32 %v4191_v20, %v748_v13  ;;  %5341 = vst [vmem:[#allocation19_spill] sm:$0xff] %v4395_v51  ;;  %v811_v32 = vmul.f32 %v4188_v7, %v747_v6 }
 0x11d   : > { %v3479_v22 = vpop.eup %3478  ;;  %v754_v34 = vmul.f32 %v3477_v25, %v4142_v46 }
 0x11e   : > { %v4399_v53 = vpack.c.bf16 %v814_v28, %v812_v18  ;;  %v752_v14 = vmul.f32 %v3479_v22, %v4149_v58  ;;  %v4409_v37 = vpack.c.bf16 %v813_v40, %v811_v32  ;;  %v751_v19 = vmul.f32 %v3479_v22, %v4147_v60 }
 0x11f   : > { %v818_v21 = vmul.f32 %v4191_v20, %v754_v34  ;;  %v753_v58 = vmul.f32 %v3477_v25, %v4140_v16 }
 0x120   : > { %5344 = vst [vmem:[#allocation18_spill] sm:$0xff] %v4399_v53  ;;  %v816_v48 = vmul.f32 %v4191_v20, %v752_v14  ;;  %5345 = vst [vmem:[#allocation20_spill] sm:$0xff] %v4409_v37  ;;  %v815_v46 = vmul.f32 %v4188_v7, %v751_v19 }
 0x121   : > { %1072 = vmatmul.mubr.bf16.gmra.mrb[28].mxu0 %v4305_v52  ;;  %v817_v50 = vmul.f32 %v4188_v7, %v753_v58 }
 0x122   : > { %1079 = vmatprep.mubr.bf16.mxu0 %v4309_v33  ;;  %v4413_v2 = vpack.c.bf16 %v818_v21, %v816_v48 }
 0x123   : > { %v4419_v54 = vpack.c.bf16 %v817_v50, %v815_v46 }
 0x124   : > { %5346 = vst [vmem:[#allocation22_spill] sm:$0xff] %v4413_v2 }
 0x125   : > { %5347 = vst [vmem:[#allocation21_spill] sm:$0xff] %v4419_v54 }
 0x129   : > { %1080 = vmatmul.mubr.bf16.gmra.mrb[32].mxu0 %v4319_v43 }
 0x12a   : > { %1087 = vmatprep.mubr.bf16.mxu0 %v4323_v61 }
 0x131   : > { %1088 = vmatmul.mubr.bf16.gmra.mrb[36].mxu0 %v4333_v55 }
 0x132   : > { %1095 = vmatprep.mubr.bf16.mxu0 %v4337_v17 }
 0x139   : > { %1096 = vmatmul.mubr.bf16.gmra.mrb[40].mxu0 %v4347_v45 }
 0x13a   : > { %1103 = vmatprep.mubr.bf16.mxu0 %v4351_v42 }
 0x141   : > { %1104 = vmatmul.mubr.bf16.gmra.mrb[44].mxu0 %v4361_v27 }
 0x142   : > { %1111 = vmatprep.mubr.bf16.mxu0 %v4365_v63 }
 0x149   : > { %1112 = vmatmul.mubr.bf16.gmra.mrb[48].mxu0 %v4378_v30 }
 0x14a   : > { %1119 = vmatprep.mubr.bf16.mxu0 %v4382_v31 }
 0x151   : > { %1120 = vmatmul.mubr.bf16.gmra.mrb[52].mxu0 %v4395_v51 }
 0x152   : > { %1127 = vmatprep.mubr.bf16.mxu0 %v4399_v53 }
 0x159   : > { %1128 = vmatmul.mubr.bf16.gmra.mrb[56].mxu0 %v4409_v37 }
 0x15a   : > { %1135 = vmatprep.mubr.bf16.mxu0 %v4413_v2 }
 0x161   : > { %1136 = vmatmul.mubr.bf16.gmra.mrb[60].mxu0 %v4419_v54 }
 0x1bc   : > { %v2963_v20 = vpop.f32.mrb[0].mxu0 }
 0x1bd   : > { %v2964_v36 = vpop.f32.mrb[1].mxu0 }
 0x1be   : > { %v2965_v26 = vadd.f32 %v2964_v36, %v2963_v20  ;;  %v2966_v60 = vpop.f32.mrb[2].mxu0 }
 0x1bf   : > { %v2967_v23 = vpop.f32.mrb[3].mxu0 }
 0x1c0   : > { %v2968_v16 = vadd.f32 %v2967_v23, %v2966_v60 }
 0x1c2   : > { %v1144_v39 = vpack.c.bf16 %v2968_v16, %v2965_v26 }
 0x1c4   : > { %v2969_v13 = vpop.f32.mrb[4].mxu0  ;;  %3226 = vmatprep.mubr.msk.bf16.mxu1 %vm1179_vm0, %v1144_v39 }
 0x1c5   : > { %v2970_v56 = vpop.f32.mrb[5].mxu0 }
 0x1c6   : > { %v2971_v62 = vadd.f32 %v2970_v56, %v2969_v13  ;;  %v2972_v7 = vpop.f32.mrb[6].mxu0 }
 0x1c7   : > { %v2973_v47 = vpop.f32.mrb[7].mxu0 }
 0x1c8   : > { %v2974_v0 = vadd.f32 %v2973_v47, %v2972_v7 }
 0x1ca   : > { %v1145_v15 = vpack.c.bf16 %v2974_v0, %v2971_v62 }
 0x1cc   : > { %v2975_v25 = vpop.f32.mrb[8].mxu0  ;;  %3227 = vmatmul.mubr.msk.bf16.vlgmr.msra.gmra.mrb[0].mxu1 %vm1179_vm0, %v1145_v15 }
 0x1cd   : > { %v2976_v18 = vpop.f32.mrb[9].mxu0 }
 0x1ce   : > { %v2977_v28 = vadd.f32 %v2976_v18, %v2975_v25  ;;  %v2978_v22 = vpop.f32.mrb[10].mxu0 }
 0x1cf   : > { %v2979_v59 = vpop.f32.mrb[11].mxu0 }
 0x1d0   : > { %v2980_v6 = vadd.f32 %v2979_v59, %v2978_v22 }
 0x1d2   : > { %v1146_v24 = vpack.c.bf16 %v2980_v6, %v2977_v28 }
 0x1d4   : > { %v2981_v38 = vpop.f32.mrb[12].mxu0  ;;  %3230 = vmatprep.mubr.msk.bf16.mxu1 %vm1179_vm0, %v1146_v24 }
 0x1d5   : > { %v2982_v14 = vpop.f32.mrb[13].mxu0 }
 0x1d6   : > { %v2983_v34 = vadd.f32 %v2982_v14, %v2981_v38  ;;  %v2984_v32 = vpop.f32.mrb[14].mxu0 }
 0x1d7   : > { %v2985_v40 = vpop.f32.mrb[15].mxu0 }
 0x1d8   : > { %v2986_v48 = vadd.f32 %v2985_v40, %v2984_v32 }
 0x1da   : > { %v1147_v21 = vpack.c.bf16 %v2986_v48, %v2983_v34 }
 0x1dc   : > { %v2987_v19 = vpop.f32.mrb[16].mxu0  ;;  %3231 = vmatmul.mubr.msk.bf16.gmra.mrb[4].mxu1 %vm1179_vm0, %v1147_v21 }
 0x1dd   : > { %v2988_v58 = vpop.f32.mrb[17].mxu0 }
 0x1de   : > { %v2989_v46 = vadd.f32 %v2988_v58, %v2987_v19  ;;  %v2990_v50 = vpop.f32.mrb[18].mxu0 }
 0x1df   : > { %v2991_v20 = vpop.f32.mrb[19].mxu0 }
 0x1e0   : > { %v2992_v36 = vadd.f32 %v2991_v20, %v2990_v50 }
 0x1e2   : > { %v1148_v26 = vpack.c.bf16 %v2992_v36, %v2989_v46 }
 0x1e4   : > { %v2993_v60 = vpop.f32.mrb[20].mxu0  ;;  %3234 = vmatprep.mubr.msk.bf16.mxu1 %vm1179_vm0, %v1148_v26 }
 0x1e5   : > { %v2994_v23 = vpop.f32.mrb[21].mxu0 }
 0x1e6   : > { %v2995_v16 = vadd.f32 %v2994_v23, %v2993_v60  ;;  %v2996_v39 = vpop.f32.mrb[22].mxu0 }
 0x1e7   : > { %v2997_v13 = vpop.f32.mrb[23].mxu0 }
 0x1e8   : > { %v2998_v56 = vadd.f32 %v2997_v13, %v2996_v39 }
 0x1ea   : > { %v1149_v62 = vpack.c.bf16 %v2998_v56, %v2995_v16 }
 0x1ec   : > { %v2999_v7 = vpop.f32.mrb[24].mxu0  ;;  %3235 = vmatmul.mubr.msk.bf16.gmra.mrb[8].mxu1 %vm1179_vm0, %v1149_v62 }
 0x1ed   : > { %v3000_v47 = vpop.f32.mrb[25].mxu0 }
 0x1ee   : > { %v3001_v0 = vadd.f32 %v3000_v47, %v2999_v7  ;;  %v3002_v15 = vpop.f32.mrb[26].mxu0 }
 0x1ef   : > { %v3003_v25 = vpop.f32.mrb[27].mxu0 }
 0x1f0   : > { %v3004_v18 = vadd.f32 %v3003_v25, %v3002_v15 }
 0x1f2   : > { %v1150_v28 = vpack.c.bf16 %v3004_v18, %v3001_v0 }
 0x1f4   : > { %v3005_v22 = vpop.f32.mrb[28].mxu0  ;;  %3238 = vmatprep.mubr.msk.bf16.mxu1 %vm1179_vm0, %v1150_v28 }
 0x1f5   : > { %v3006_v59 = vpop.f32.mrb[29].mxu0 }
 0x1f6   : > { %v3007_v6 = vadd.f32 %v3006_v59, %v3005_v22  ;;  %v3008_v24 = vpop.f32.mrb[30].mxu0 }
 0x1f7   : > { %v3009_v38 = vpop.f32.mrb[31].mxu0 }
 0x1f8   : > { %v3010_v14 = vadd.f32 %v3009_v38, %v3008_v24 }
 0x1fa   : > { %v1151_v34 = vpack.c.bf16 %v3010_v14, %v3007_v6 }
 0x1fc   : > { %v3011_v32 = vpop.f32.mrb[32].mxu0  ;;  %3239 = vmatmul.mubr.msk.bf16.gmra.mrb[12].mxu1 %vm1179_vm0, %v1151_v34 }
 0x1fd   : > { %v3012_v40 = vpop.f32.mrb[33].mxu0 }
 0x1fe   : > { %v3013_v48 = vadd.f32 %v3012_v40, %v3011_v32  ;;  %v3014_v21 = vpop.f32.mrb[34].mxu0 }
 0x1ff   : > { %v3015_v19 = vpop.f32.mrb[35].mxu0 }
 0x200   : > { %v3016_v58 = vadd.f32 %v3015_v19, %v3014_v21 }
 0x202   : > { %v1152_v46 = vpack.c.bf16 %v3016_v58, %v3013_v48 }
 0x204   : > { %v3017_v50 = vpop.f32.mrb[36].mxu0  ;;  %3242 = vmatprep.mubr.msk.bf16.mxu1 %vm1179_vm0, %v1152_v46 }
 0x205   : > { %v3018_v20 = vpop.f32.mrb[37].mxu0 }
 0x206   : > { %v3019_v36 = vadd.f32 %v3018_v20, %v3017_v50  ;;  %v3020_v26 = vpop.f32.mrb[38].mxu0 }
 0x207   : > { %v3021_v60 = vpop.f32.mrb[39].mxu0 }
 0x208   : > { %v3022_v23 = vadd.f32 %v3021_v60, %v3020_v26 }
 0x20a   : > { %v1153_v16 = vpack.c.bf16 %v3022_v23, %v3019_v36 }
 0x20c   : > { %v3023_v39 = vpop.f32.mrb[40].mxu0  ;;  %3243 = vmatmul.mubr.msk.bf16.gmra.mrb[16].mxu1 %vm1179_vm0, %v1153_v16 }
 0x20d   : > { %v3024_v13 = vpop.f32.mrb[41].mxu0 }
 0x20e   : > { %v3025_v56 = vadd.f32 %v3024_v13, %v3023_v39  ;;  %v3026_v62 = vpop.f32.mrb[42].mxu0 }
 0x20f   : > { %v3027_v7 = vpop.f32.mrb[43].mxu0 }
 0x210   : > { %v3028_v47 = vadd.f32 %v3027_v7, %v3026_v62 }
 0x212   : > { %v1154_v0 = vpack.c.bf16 %v3028_v47, %v3025_v56 }
 0x214   : > { %v3029_v15 = vpop.f32.mrb[44].mxu0  ;;  %3246 = vmatprep.mubr.msk.bf16.mxu1 %vm1179_vm0, %v1154_v0 }
 0x215   : > { %v3030_v25 = vpop.f32.mrb[45].mxu0 }
 0x216   : > { %v3031_v18 = vadd.f32 %v3030_v25, %v3029_v15  ;;  %v3032_v28 = vpop.f32.mrb[46].mxu0 }
 0x217   : > { %v3033_v22 = vpop.f32.mrb[47].mxu0 }
 0x218   : > { %v3034_v59 = vadd.f32 %v3033_v22, %v3032_v28  ;;  %v4442_v28 = vld [vmem:[%s5246_s3] ss:$0 sm:$0xff] }
 0x21a   : > { %v1155_v6 = vpack.c.bf16 %v3034_v59, %v3031_v18 }
 0x21c   : > { %v3035_v24 = vpop.f32.mrb[48].mxu0  ;;  %3247 = vmatmul.mubr.msk.bf16.gmra.mrb[20].mxu1 %vm1179_vm0, %v1155_v6 }
 0x21d   : > { %v3036_v38 = vpop.f32.mrb[49].mxu0 }
 0x21e   : > { %v3037_v14 = vadd.f32 %v3036_v38, %v3035_v24  ;;  %v3038_v34 = vpop.f32.mrb[50].mxu0 }
 0x21f   : > { %v3039_v32 = vpop.f32.mrb[51].mxu0 }
 0x220   : > { %v3040_v40 = vadd.f32 %v3039_v32, %v3038_v34 }
 0x222   : > { %v1156_v48 = vpack.c.bf16 %v3040_v40, %v3037_v14 }
 0x224   : > { %v3041_v21 = vpop.f32.mrb[52].mxu0  ;;  %3250 = vmatprep.mubr.msk.bf16.mxu1 %vm1179_vm0, %v1156_v48 }
 0x225   : > { %v3042_v19 = vpop.f32.mrb[53].mxu0 }
 0x226   : > { %v3043_v58 = vadd.f32 %v3042_v19, %v3041_v21  ;;  %v3044_v46 = vpop.f32.mrb[54].mxu0 }
 0x227   : > { %v3045_v50 = vpop.f32.mrb[55].mxu0 }
 0x228   : > { %v3046_v20 = vadd.f32 %v3045_v50, %v3044_v46 }
 0x22a   : > { %v1157_v36 = vpack.c.bf16 %v3046_v20, %v3043_v58 }
 0x22c   : > { %v3047_v26 = vpop.f32.mrb[56].mxu0  ;;  %3251 = vmatmul.mubr.msk.bf16.gmra.mrb[24].mxu1 %vm1179_vm0, %v1157_v36 }
 0x22d   : > { %v3048_v60 = vpop.f32.mrb[57].mxu0 }
 0x22e   : > { %v3049_v23 = vadd.f32 %v3048_v60, %v3047_v26  ;;  %v3050_v16 = vpop.f32.mrb[58].mxu0 }
 0x22f   : > { %v3051_v39 = vpop.f32.mrb[59].mxu0 }
 0x230   : > { %v3052_v13 = vadd.f32 %v3051_v39, %v3050_v16 }
 0x232   : > { %v1158_v56 = vpack.c.bf16 %v3052_v13, %v3049_v23 }
 0x234   : > { %v3053_v62 = vpop.f32.mrb[60].mxu0  ;;  %3254 = vmatprep.mubr.msk.bf16.mxu1 %vm1179_vm0, %v1158_v56 }
 0x235   : > { %v3054_v7 = vpop.f32.mrb[61].mxu0 }
 0x236   : > { %v3055_v47 = vadd.f32 %v3054_v7, %v3053_v62  ;;  %v3056_v0 = vpop.f32.mrb[62].mxu0 }
 0x237   : > { %v3057_v15 = vpop.f32.mrb[63].mxu0 }
 0x238   : > { %v3058_v25 = vadd.f32 %v3057_v15, %v3056_v0 }
 0x23a   : > { %v1159_v18 = vpack.c.bf16 %v3058_v25, %v3055_v47 }
 0x23c   : > { %3255 = vmatmul.mubr.msk.bf16.gmra.mrb[28].mxu1 %vm1179_vm0, %v1159_v18 }
 0x23d   : > { %1741 = vmatprep.mubr.bf16.mxu1 %v4204_v10 }
 0x29f   : > { %v3228_v22 = vpop.f32.mrb[0].mxu1 }
 0x2a0   : > { %v4445_v59 = vadd.f32 %v3228_v22, %v4442_v28  ;;  %v1262_v6 = vpop.f32.mrb[1].mxu1 }
 0x2a1   : > { %v4448_v24 = vadd.f32 %v4442_v28, %v1262_v6  ;;  %v3229_v38 = vpop.f32.mrb[2].mxu1 }
 0x2a2   : > { %v1391_v14 = vmul.f32 %v4445_v59, %v4445_v59  ;;  %v4453_v34 = vadd.f32 %v3229_v38, %v4442_v28  ;;  %v1265_v10 = vpop.f32.mrb[3].mxu1 }
 0x2a3   : > { %v1389_v32 = vmul.f32 %v4448_v24, %v4448_v24  ;;  %v4458_v40 = vadd.f32 %v4442_v28, %v1265_v10 }
 0x2a4   : > { %v1423_v48 = vmul.f32 %v1391_v14, %v4445_v59  ;;  %v1392_v21 = vmul.f32 %v4453_v34, %v4453_v34 }
 0x2a5   : > { %v1421_v19 = vmul.f32 %v1389_v32, %v4448_v24  ;;  %v1390_v58 = vmul.f32 %v4458_v40, %v4458_v40 }
 0x2a6   : > { %v1455_v46 = vmul.f32 0.044715, %v1423_v48  ;;  %v1424_v50 = vmul.f32 %v1392_v21, %v4453_v34 }
 0x2a7   : > { %v1453_v20 = vmul.f32 0.044715, %v1421_v19  ;;  %v1422_v36 = vmul.f32 %v1390_v58, %v4458_v40 }
 0x2a8   : > { %v1487_v26 = vadd.f32 %v1455_v46, %v4445_v59  ;;  %v1456_v60 = vmul.f32 0.044715, %v1424_v50 }
 0x2a9   : > { %v1485_v23 = vadd.f32 %v1453_v20, %v4448_v24  ;;  %v1454_v16 = vmul.f32 0.044715, %v1422_v36 }
 0x2aa   : > { %v1519_v39 = vmul.f32 0.7978846, %v1487_v26  ;;  %v1488_v13 = vadd.f32 %v1456_v60, %v4453_v34 }
 0x2ab   : > { %v1517_v56 = vmul.f32 0.7978846, %v1485_v23  ;;  %v1486_v62 = vadd.f32 %v1454_v16, %v4458_v40 }
 0x2ac   : > { %3480 = vtanh.f32 %v1519_v39  ;;  %v1520_v7 = vmul.f32 0.7978846, %v1488_v13 }
 0x2ad   : > { %3482 = vtanh.f32 %v1517_v56  ;;  %v1518_v47 = vmul.f32 0.7978846, %v1486_v62 }
 0x2ae   : > { %3484 = vtanh.f32 %v1520_v7 }
 0x2af   : > { %3486 = vtanh.f32 %v1518_v47  ;;  %v3232_v0 = vpop.f32.mrb[4].mxu1 }
 0x2b0   : > { %v4473_v15 = vadd.f32 %v3232_v0, %v4442_v28  ;;  %v1278_v25 = vpop.f32.mrb[5].mxu1 }
 0x2b1   : > { %v4476_v18 = vadd.f32 %v4442_v28, %v1278_v25  ;;  %v3233_v22 = vpop.f32.mrb[6].mxu1 }
 0x2b2   : > { %v1395_v6 = vmul.f32 %v4473_v15, %v4473_v15  ;;  %v4481_v38 = vadd.f32 %v3233_v22, %v4442_v28  ;;  %v1281_v14 = vpop.f32.mrb[7].mxu1 }
 0x2b3   : > { %v1393_v10 = vmul.f32 %v4476_v18, %v4476_v18  ;;  %v4486_v32 = vadd.f32 %v4442_v28, %v1281_v14 }
 0x2b4   : > { %v1427_v48 = vmul.f32 %v1395_v6, %v4473_v15  ;;  %v1396_v21 = vmul.f32 %v4481_v38, %v4481_v38 }
 0x2b5   : > { %v1425_v19 = vmul.f32 %v1393_v10, %v4476_v18  ;;  %v1394_v58 = vmul.f32 %v4486_v32, %v4486_v32 }
 0x2b6   : > { %v3481_v46 = vpop.eup %3480  ;;  %v1459_v50 = vmul.f32 0.044715, %v1427_v48  ;;  %v1428_v20 = vmul.f32 %v1396_v21, %v4481_v38 }
 0x2b7   : > { %v3483_v36 = vpop.eup %3482  ;;  %v1583_v26 = vadd.f32 1.0, %v3481_v46  ;;  %v1457_v60 = vmul.f32 0.044715, %v1425_v19  ;;  %v1426_v23 = vmul.f32 %v1394_v58, %v4486_v32 }
 0x2b8   : > { %v3485_v16 = vpop.eup %3484  ;;  %v1581_v39 = vadd.f32 1.0, %v3483_v36  ;;  %v1491_v13 = vadd.f32 %v1459_v50, %v4473_v15  ;;  %v1460_v56 = vmul.f32 0.044715, %v1428_v20 }
 0x2b9   : > { %v3487_v62 = vpop.eup %3486  ;;  %v1615_v7 = vmul.f32 0.5, %v1583_v26  ;;  %v1584_v47 = vadd.f32 1.0, %v3485_v16  ;;  %v1489_v0 = vadd.f32 %v1457_v60, %v4476_v18  ;;  %v1458_v25 = vmul.f32 0.044715, %v1426_v23 }
 0x2ba   : > { %v1613_v22 = vmul.f32 0.5, %v1581_v39  ;;  %v1582_v6 = vadd.f32 1.0, %v3487_v62  ;;  %v1523_v14 = vmul.f32 0.7978846, %v1491_v13  ;;  %v1492_v10 = vadd.f32 %v1460_v56, %v4481_v38 }
 0x2bb   : > { %v1616_v48 = vmul.f32 0.5, %v1584_v47  ;;  %v1521_v21 = vmul.f32 0.7978846, %v1489_v0  ;;  %v1490_v19 = vadd.f32 %v1458_v25, %v4486_v32  ;;  %v4501_v50 = vmul.f32 %v1615_v7, %v4445_v59 }
 0x2bc   : > { %v1614_v58 = vmul.f32 0.5, %v1582_v6  ;;  %3488 = vtanh.f32 %v1523_v14  ;;  %v1524_v46 = vmul.f32 0.7978846, %v1492_v10  ;;  %v4507_v26 = vmul.f32 %v1613_v22, %v4448_v24 }
 0x2bd   : > { %v4504_v20 = vmul.f32 %v1616_v48, %v4453_v34  ;;  %3490 = vtanh.f32 %v1521_v21  ;;  %v1522_v36 = vmul.f32 0.7978846, %v1490_v19 }
 0x2be   : > { %v4510_v60 = vmul.f32 %v1614_v58, %v4458_v40  ;;  %3492 = vtanh.f32 %v1524_v46 }
 0x2bf   : > { %3494 = vtanh.f32 %v1522_v36  ;;  %v3236_v23 = vpop.f32.mrb[8].mxu1 }
 0x2c0   : > { %v4515_v59 = vadd.f32 %v3236_v23, %v4442_v28  ;;  %v1294_v39 = vpop.f32.mrb[9].mxu1 }
 0x2c1   : > { %v4520_v13 = vadd.f32 %v4442_v28, %v1294_v39  ;;  %v3237_v24 = vpop.f32.mrb[10].mxu1 }
 0x2c2   : > { %v1399_v40 = vmul.f32 %v4515_v59, %v4515_v59  ;;  %v4525_v56 = vadd.f32 %v3237_v24, %v4442_v28  ;;  %v1297_v62 = vpop.f32.mrb[11].mxu1 }
 0x2c3   : > { %v1397_v7 = vmul.f32 %v4520_v13, %v4520_v13  ;;  %v4530_v47 = vadd.f32 %v4442_v28, %v1297_v62 }
 0x2c4   : > { %v1431_v0 = vmul.f32 %v1399_v40, %v4515_v59  ;;  %v1400_v25 = vmul.f32 %v4525_v56, %v4525_v56 }
 0x2c5   : > { %v1429_v22 = vmul.f32 %v1397_v7, %v4520_v13  ;;  %v1398_v6 = vmul.f32 %v4530_v47, %v4530_v47 }
 0x2c6   : > { %v3489_v14 = vpop.eup %3488  ;;  %v1463_v10 = vmul.f32 0.044715, %v1431_v0  ;;  %v1432_v48 = vmul.f32 %v1400_v25, %v4525_v56 }
 0x2c7   : > { %v3491_v21 = vpop.eup %3490  ;;  %v1587_v19 = vadd.f32 1.0, %v3489_v14  ;;  %v1461_v58 = vmul.f32 0.044715, %v1429_v22  ;;  %v1430_v46 = vmul.f32 %v1398_v6, %v4530_v47 }
 0x2c8   : > { %v3493_v36 = vpop.eup %3492  ;;  %v1585_v23 = vadd.f32 1.0, %v3491_v21  ;;  %v1495_v39 = vadd.f32 %v1463_v10, %v4515_v59  ;;  %v1464_v24 = vmul.f32 0.044715, %v1432_v48 }
 0x2c9   : > { %v3495_v40 = vpop.eup %3494  ;;  %v1619_v62 = vmul.f32 0.5, %v1587_v19  ;;  %v1588_v7 = vadd.f32 1.0, %v3493_v36  ;;  %v1493_v16 = vadd.f32 %v1461_v58, %v4520_v13  ;;  %v1462_v34 = vmul.f32 0.044715, %v1430_v46 }
 0x2ca   : > { %v1617_v54 = vmul.f32 0.5, %v1585_v23  ;;  %v1586_v0 = vadd.f32 1.0, %v3495_v40  ;;  %v1527_v2 = vmul.f32 0.7978846, %v1495_v39  ;;  %v1496_v25 = vadd.f32 %v1464_v24, %v4525_v56 }
 0x2cb   : > { %v1620_v14 = vmul.f32 0.5, %v1588_v7  ;;  %v1525_v22 = vmul.f32 0.7978846, %v1493_v16  ;;  %v1494_v6 = vadd.f32 %v1462_v34, %v4530_v47  ;;  %v4545_v10 = vmul.f32 %v1619_v62, %v4473_v15 }
 0x2cc   : > { %v1618_v37 = vmul.f32 0.5, %v1586_v0  ;;  %3496 = vtanh.f32 %v1527_v2  ;;  %v1528_v21 = vmul.f32 0.7978846, %v1496_v25  ;;  %v4551_v58 = vmul.f32 %v1617_v54, %v4476_v18 }
 0x2cd   : > { %v4548_v48 = vmul.f32 %v1620_v14, %v4481_v38  ;;  %3498 = vtanh.f32 %v1525_v22  ;;  %v1526_v19 = vmul.f32 0.7978846, %v1494_v6 }
 0x2ce   : > { %v4554_v46 = vmul.f32 %v1618_v37, %v4486_v32  ;;  %3500 = vtanh.f32 %v1528_v21 }
 0x2cf   : > { %3502 = vtanh.f32 %v1526_v19  ;;  %v3240_v16 = vpop.f32.mrb[12].mxu1 }
 0x2d0   : > { %v4559_v15 = vadd.f32 %v3240_v16, %v4442_v28  ;;  %v1310_v34 = vpop.f32.mrb[13].mxu1 }
 0x2d1   : > { %v4564_v36 = vadd.f32 %v4442_v28, %v1310_v34  ;;  %v3241_v54 = vpop.f32.mrb[14].mxu1 }
 0x2d2   : > { %v1403_v37 = vmul.f32 %v4559_v15, %v4559_v15  ;;  %v4569_v18 = vadd.f32 %v3241_v54, %v4442_v28  ;;  %v1313_v32 = vpop.f32.mrb[15].mxu1 }
 0x2d3   : > { %v1401_v23 = vmul.f32 %v4564_v36, %v4564_v36  ;;  %v4574_v39 = vadd.f32 %v4442_v28, %v1313_v32 }
 0x2d4   : > { %v1435_v24 = vmul.f32 %v1403_v37, %v4559_v15  ;;  %v1404_v40 = vmul.f32 %v4569_v18, %v4569_v18 }
 0x2d5   : > { %v1433_v62 = vmul.f32 %v1401_v23, %v4564_v36  ;;  %v1402_v7 = vmul.f32 %v4574_v39, %v4574_v39 }
 0x2d6   : > { %v3497_v0 = vpop.eup %3496  ;;  %v1467_v25 = vmul.f32 0.044715, %v1435_v24  ;;  %v1436_v14 = vmul.f32 %v1404_v40, %v4569_v18 }
 0x2d7   : > { %v3499_v22 = vpop.eup %3498  ;;  %v1591_v6 = vadd.f32 1.0, %v3497_v0  ;;  %v1465_v21 = vmul.f32 0.044715, %v1433_v62  ;;  %v1434_v19 = vmul.f32 %v1402_v7, %v4574_v39 }
 0x2d8   : > { %v3501_v16 = vpop.eup %3500  ;;  %v1589_v34 = vadd.f32 1.0, %v3499_v22  ;;  %v1499_v54 = vadd.f32 %v1467_v25, %v4559_v15  ;;  %v1468_v37 = vmul.f32 0.044715, %v1436_v14 }
 0x2d9   : > { %v3503_v32 = vpop.eup %3502  ;;  %v1623_v2 = vmul.f32 0.5, %v1591_v6  ;;  %v1592_v23 = vadd.f32 1.0, %v3501_v16  ;;  %v1497_v38 = vadd.f32 %v1465_v21, %v4564_v36  ;;  %v1466_v53 = vmul.f32 0.044715, %v1434_v19 }
 0x2da   : > { %v1621_v51 = vmul.f32 0.5, %v1589_v34  ;;  %v1590_v24 = vadd.f32 1.0, %v3503_v32  ;;  %v1531_v31 = vmul.f32 0.7978846, %v1499_v54  ;;  %v1500_v40 = vadd.f32 %v1468_v37, %v4569_v18 }
 0x2db   : > { %v1624_v0 = vmul.f32 0.5, %v1592_v23  ;;  %v1529_v62 = vmul.f32 0.7978846, %v1497_v38  ;;  %v1498_v7 = vadd.f32 %v1466_v53, %v4574_v39  ;;  %v4589_v25 = vmul.f32 %v1623_v2, %v4515_v59 }
 0x2dc   : > { %v1622_v30 = vmul.f32 0.5, %v1590_v24  ;;  %3504 = vtanh.f32 %v1531_v31  ;;  %v1532_v22 = vmul.f32 0.7978846, %v1500_v40  ;;  %v4595_v21 = vmul.f32 %v1621_v51, %v4520_v13 }
 0x2dd   : > { %v4592_v14 = vmul.f32 %v1624_v0, %v4525_v56  ;;  %3506 = vtanh.f32 %v1529_v62  ;;  %v1530_v6 = vmul.f32 0.7978846, %v1498_v7 }
 0x2de   : > { %v4598_v19 = vmul.f32 %v1622_v30, %v4530_v47  ;;  %3508 = vtanh.f32 %v1532_v22 }
 0x2df   : > { %3510 = vtanh.f32 %v1530_v6  ;;  %v3244_v53 = vpop.f32.mrb[16].mxu1 }
 0x2e0   : > { %v4603_v59 = vadd.f32 %v3244_v53, %v4442_v28  ;;  %v1326_v2 = vpop.f32.mrb[17].mxu1 }
 0x2e1   : > { %v4608_v38 = vadd.f32 %v4442_v28, %v1326_v2  ;;  %v3245_v51 = vpop.f32.mrb[18].mxu1 }
 0x2e2   : > { %v1407_v30 = vmul.f32 %v4603_v59, %v4603_v59  ;;  %v4613_v13 = vadd.f32 %v3245_v51, %v4442_v28  ;;  %v1329_v47 = vpop.f32.mrb[19].mxu1 }
 0x2e3   : > { %v1405_v16 = vmul.f32 %v4608_v38, %v4608_v38  ;;  %v4618_v34 = vadd.f32 %v4442_v28, %v1329_v47 }
 0x2e4   : > { %v1439_v54 = vmul.f32 %v1407_v30, %v4603_v59  ;;  %v1408_v37 = vmul.f32 %v4613_v13, %v4613_v13 }
 0x2e5   : > { %v1437_v32 = vmul.f32 %v1405_v16, %v4608_v38  ;;  %v1406_v23 = vmul.f32 %v4618_v34, %v4618_v34 }
 0x2e6   : > { %v3505_v24 = vpop.eup %3504  ;;  %v1471_v40 = vmul.f32 0.044715, %v1439_v54  ;;  %v1440_v0 = vmul.f32 %v1408_v37, %v4613_v13 }
 0x2e7   : > { %v3507_v62 = vpop.eup %3506  ;;  %v1595_v7 = vadd.f32 1.0, %v3505_v24  ;;  %v1469_v22 = vmul.f32 0.044715, %v1437_v32  ;;  %v1438_v6 = vmul.f32 %v1406_v23, %v4618_v34 }
 0x2e8   : > { %v3509_v53 = vpop.eup %3508  ;;  %v1593_v2 = vadd.f32 1.0, %v3507_v62  ;;  %v1503_v51 = vadd.f32 %v1471_v40, %v4603_v59  ;;  %v1472_v30 = vmul.f32 0.044715, %v1440_v0 }
 0x2e9   : > { %v3511_v47 = vpop.eup %3510  ;;  %v1627_v31 = vmul.f32 0.5, %v1595_v7  ;;  %v1596_v16 = vadd.f32 1.0, %v3509_v53  ;;  %v1501_v56 = vadd.f32 %v1469_v22, %v4608_v38  ;;  %v1470_v63 = vmul.f32 0.044715, %v1438_v6 }
 0x2ea   : > { %v1625_v27 = vmul.f32 0.5, %v1593_v2  ;;  %v1594_v54 = vadd.f32 1.0, %v3511_v47  ;;  %v1535_v42 = vmul.f32 0.7978846, %v1503_v51  ;;  %v1504_v37 = vadd.f32 %v1472_v30, %v4613_v13 }
 0x2eb   : > { %v1628_v24 = vmul.f32 0.5, %v1596_v16  ;;  %v1533_v32 = vmul.f32 0.7978846, %v1501_v56  ;;  %v1502_v23 = vadd.f32 %v1470_v63, %v4618_v34  ;;  %v4633_v40 = vmul.f32 %v1627_v31, %v4559_v15 }
 0x2ec   : > { %v1626_v45 = vmul.f32 0.5, %v1594_v54  ;;  %3512 = vtanh.f32 %v1535_v42  ;;  %v1536_v62 = vmul.f32 0.7978846, %v1504_v37  ;;  %v4639_v22 = vmul.f32 %v1625_v27, %v4564_v36 }
 0x2ed   : > { %v4636_v0 = vmul.f32 %v1628_v24, %v4569_v18  ;;  %3514 = vtanh.f32 %v1533_v32  ;;  %v1534_v7 = vmul.f32 0.7978846, %v1502_v23 }
 0x2ee   : > { %v4642_v6 = vmul.f32 %v1626_v45, %v4574_v39  ;;  %3516 = vtanh.f32 %v1536_v62 }
 0x2ef   : > { %3518 = vtanh.f32 %v1534_v7  ;;  %v3248_v63 = vpop.f32.mrb[20].mxu1 }
 0x2f0   : > { %v4647_v15 = vadd.f32 %v3248_v63, %v4442_v28  ;;  %v1342_v31 = vpop.f32.mrb[21].mxu1 }
 0x2f1   : > { %v4652_v56 = vadd.f32 %v4442_v28, %v1342_v31  ;;  %v3249_v27 = vpop.f32.mrb[22].mxu1 }
 0x2f2   : > { %v1411_v45 = vmul.f32 %v4647_v15, %v4647_v15  ;;  %v4657_v36 = vadd.f32 %v3249_v27, %v4442_v28  ;;  %v1345_v39 = vpop.f32.mrb[23].mxu1 }
 0x2f3   : > { %v1409_v53 = vmul.f32 %v4652_v56, %v4652_v56  ;;  %v4662_v2 = vadd.f32 %v4442_v28, %v1345_v39 }
 0x2f4   : > { %v1443_v51 = vmul.f32 %v1411_v45, %v4647_v15  ;;  %v1412_v30 = vmul.f32 %v4657_v36, %v4657_v36 }
 0x2f5   : > { %v1441_v47 = vmul.f32 %v1409_v53, %v4652_v56  ;;  %v1410_v16 = vmul.f32 %v4662_v2, %v4662_v2 }
 0x2f6   : > { %v3513_v54 = vpop.eup %3512  ;;  %v1475_v37 = vmul.f32 0.044715, %v1443_v51  ;;  %v1444_v24 = vmul.f32 %v1412_v30, %v4657_v36 }
 0x2f7   : > { %v3515_v32 = vpop.eup %3514  ;;  %v1473_v23 = vmul.f32 0.044715, %v1441_v47  ;;  %v1442_v62 = vmul.f32 %v1410_v16, %v4662_v2  ;;  %v1599_v7 = vadd.f32 1.0, %v3513_v54 }
 0x2f8   : > { %v3517_v63 = vpop.eup %3516  ;;  %v1507_v31 = vadd.f32 %v1475_v37, %v4647_v15  ;;  %v1476_v27 = vmul.f32 0.044715, %v1444_v24  ;;  %v1597_v45 = vadd.f32 1.0, %v3515_v32 }
 0x2f9   : > { %v3519_v39 = vpop.eup %3518  ;;  %v1505_v53 = vadd.f32 %v1473_v23, %v4652_v56  ;;  %v1474_v42 = vmul.f32 0.044715, %v1442_v62  ;;  %v1600_v18 = vadd.f32 1.0, %v3517_v63  ;;  %v1631_v17 = vmul.f32 0.5, %v1599_v7 }
 0x2fa   : > { %v1539_v55 = vmul.f32 0.7978846, %v1507_v31  ;;  %v1508_v51 = vadd.f32 %v1476_v27, %v4657_v36  ;;  %v1598_v30 = vadd.f32 1.0, %v3519_v39  ;;  %v1629_v61 = vmul.f32 0.5, %v1597_v45 }
 0x2fb   : > { %v1537_v47 = vmul.f32 0.7978846, %v1505_v53  ;;  %v1506_v16 = vadd.f32 %v1474_v42, %v4662_v2  ;;  %v1632_v54 = vmul.f32 0.5, %v1600_v18  ;;  %v1663_v32 = vmul.f32 %v1631_v17, %v4603_v59 }
 0x2fc   : > { %3520 = vtanh.f32 %v1539_v55  ;;  %v1540_v43 = vmul.f32 0.7978846, %v1508_v51  ;;  %v1630_v37 = vmul.f32 0.5, %v1598_v30  ;;  %v1661_v62 = vmul.f32 %v1629_v61, %v4608_v38 }
 0x2fd   : > { %3522 = vtanh.f32 %v1537_v47  ;;  %v1538_v24 = vmul.f32 0.7978846, %v1506_v16  ;;  %v1664_v23 = vmul.f32 %v1632_v54, %v4613_v13  ;;  %v5348_v13 = vpack.c.bf16 %v4510_v60, %v4507_v26 }
 0x2fe   : > { %3524 = vtanh.f32 %v1540_v43  ;;  %v1662_v7 = vmul.f32 %v1630_v37, %v4618_v34  ;;  %v5349_v60 = vpack.c.bf16 %v4504_v20, %v4501_v50 }
 0x2ff   : > { %3526 = vtanh.f32 %v1538_v24  ;;  %v3252_v63 = vpop.f32.mrb[24].mxu1  ;;  %v1686_v31 = vpack.c.bf16 %v1664_v23, %v1663_v32 }
 0x300   : > { %v4681_v42 = vadd.f32 %v3252_v63, %v4442_v28  ;;  %v1358_v55 = vpop.f32.mrb[25].mxu1  ;;  %v1685_v18 = vpack.c.bf16 %v1662_v7, %v1661_v62 }
 0x301   : > { %v4684_v27 = vadd.f32 %v4442_v28, %v1358_v55  ;;  %v3253_v45 = vpop.f32.mrb[26].mxu1 }
 0x302   : > { %v1415_v17 = vmul.f32 %v4681_v42, %v4681_v42  ;;  %v4689_v43 = vadd.f32 %v3253_v45, %v4442_v28  ;;  %v1361_v61 = vpop.f32.mrb[27].mxu1  ;;  %3077 = vmatprep.subr.bf16.mxu1 %v1685_v18 }
 0x303   : > { %v1413_v59 = vmul.f32 %v4684_v27, %v4684_v27  ;;  %v4694_v38 = vadd.f32 %v4442_v28, %v1361_v61  ;;  %3078 = vmatpush3.bf16.msra.mxu1 %v5348_v13 }
 0x304   : > { %v1447_v34 = vmul.f32 %v1415_v17, %v4681_v42  ;;  %v1416_v39 = vmul.f32 %v4689_v43, %v4689_v43  ;;  %3079 = vmatprep.subr.bf16.mxu1 %v1686_v31 }
 0x305   : > { %v1445_v53 = vmul.f32 %v1413_v59, %v4684_v27  ;;  %v1414_v51 = vmul.f32 %v4694_v38, %v4694_v38 }
 0x306   : > { %v3521_v30 = vpop.eup %3520  ;;  %v1479_v47 = vmul.f32 0.044715, %v1447_v34  ;;  %v1448_v16 = vmul.f32 %v1416_v39, %v4689_v43 }
 0x307   : > { %v3523_v54 = vpop.eup %3522  ;;  %v1477_v37 = vmul.f32 0.044715, %v1445_v53  ;;  %v1446_v26 = vmul.f32 %v1414_v51, %v4694_v38  ;;  %3080 = vmatpush3.bf16.msra.mxu1 %v5349_v60  ;;  %v1603_v24 = vadd.f32 1.0, %v3521_v30 }
 0x308   : > { %v3525_v32 = vpop.eup %3524  ;;  %v1511_v23 = vadd.f32 %v1479_v47, %v4681_v42  ;;  %v1480_v62 = vmul.f32 0.044715, %v1448_v16  ;;  %v1601_v7 = vadd.f32 1.0, %v3523_v54 }
 0x309   : > { %v3527_v63 = vpop.eup %3526  ;;  %v1509_v31 = vadd.f32 %v1477_v37, %v4684_v27  ;;  %v1478_v55 = vmul.f32 0.044715, %v1446_v26  ;;  %v1604_v18 = vadd.f32 1.0, %v3525_v32  ;;  %v1635_v45 = vmul.f32 0.5, %v1603_v24 }
 0x30a   : > { %v1543_v17 = vmul.f32 0.7978846, %v1511_v23  ;;  %v1512_v61 = vadd.f32 %v1480_v62, %v4689_v43  ;;  %v1602_v59 = vadd.f32 1.0, %v3527_v63  ;;  %v1633_v13 = vmul.f32 0.5, %v1601_v7 }
 0x30b   : > { %v1541_v34 = vmul.f32 0.7978846, %v1509_v31  ;;  %v1510_v50 = vadd.f32 %v1478_v55, %v4694_v38  ;;  %v1636_v20 = vmul.f32 0.5, %v1604_v18  ;;  %v1667_v30 = vmul.f32 %v1635_v45, %v4647_v15 }
 0x30c   : > { %3528 = vtanh.f32 %v1543_v17  ;;  %v1544_v39 = vmul.f32 0.7978846, %v1512_v61  ;;  %v1634_v53 = vmul.f32 0.5, %v1602_v59  ;;  %v1665_v16 = vmul.f32 %v1633_v13, %v4652_v56 }
 0x30d   : > { %3530 = vtanh.f32 %v1541_v34  ;;  %v1542_v51 = vmul.f32 0.7978846, %v1510_v50  ;;  %v1668_v47 = vmul.f32 %v1636_v20, %v4657_v36  ;;  %v5350_v63 = vpack.c.bf16 %v4554_v46, %v4551_v58 }
 0x30e   : > { %3532 = vtanh.f32 %v1544_v39  ;;  %v1666_v54 = vmul.f32 %v1634_v53, %v4662_v2  ;;  %v5351_v46 = vpack.c.bf16 %v4548_v48, %v4545_v10 }
 0x30f   : > { %3534 = vtanh.f32 %v1542_v51  ;;  %v3256_v37 = vpop.f32.mrb[28].mxu1  ;;  %v1688_v26 = vpack.c.bf16 %v1668_v47, %v1667_v30 }
 0x310   : > { %v4719_v60 = vadd.f32 %v3256_v37, %v4442_v28  ;;  %v1374_v24 = vpop.f32.mrb[29].mxu1  ;;  %v1687_v32 = vpack.c.bf16 %v1666_v54, %v1665_v16 }
 0x311   : > { %v4722_v23 = vadd.f32 %v4442_v28, %v1374_v24  ;;  %v3257_v62 = vpop.f32.mrb[30].mxu1 }
 0x312   : > { %v1419_v15 = vmul.f32 %v4719_v60, %v4719_v60  ;;  %v4727_v36 = vadd.f32 %v3257_v62, %v4442_v28  ;;  %v1377_v56 = vpop.f32.mrb[31].mxu1  ;;  %3081 = vmatprep.subr.bf16.mxu1 %v1687_v32 }
 0x313   : > { %v1417_v2 = vmul.f32 %v4722_v23, %v4722_v23  ;;  %v4732_v7 = vadd.f32 %v4442_v28, %v1377_v56  ;;  %3082 = vmatpush3.bf16.msra.mxu1 %v5350_v63 }
 0x314   : > { %v1451_v31 = vmul.f32 %v1419_v15, %v4719_v60  ;;  %v1420_v55 = vmul.f32 %v4727_v36, %v4727_v36  ;;  %3083 = vmatprep.subr.bf16.mxu1 %v1688_v26 }
 0x315   : > { %v1449_v18 = vmul.f32 %v1417_v2, %v4722_v23  ;;  %v1418_v45 = vmul.f32 %v4732_v7, %v4732_v7 }
 0x316   : > { %v3529_v17 = vpop.eup %3528  ;;  %v1483_v61 = vmul.f32 0.044715, %v1451_v31  ;;  %v1452_v28 = vmul.f32 %v1420_v55, %v4727_v36 }
 0x317   : > { %v3531_v59 = vpop.eup %3530  ;;  %v1481_v13 = vmul.f32 0.044715, %v1449_v18  ;;  %v1450_v58 = vmul.f32 %v1418_v45, %v4732_v7  ;;  %3084 = vmatpush3.bf16.msra.mxu1 %v5351_v46  ;;  %v1607_v34 = vadd.f32 1.0, %v3529_v17 }
 0x318   : > { %v3533_v50 = vpop.eup %3532  ;;  %v1515_v20 = vadd.f32 %v1483_v61, %v4719_v60  ;;  %v1484_v39 = vmul.f32 0.044715, %v1452_v28  ;;  %v1605_v53 = vadd.f32 1.0, %v3531_v59  ;;  %v5352_v61 = vpack.c.bf16 %v4598_v19, %v4595_v21 }
 0x319   : > { %v3535_v51 = vpop.eup %3534  ;;  %v1513_v30 = vadd.f32 %v1481_v13, %v4722_v23  ;;  %v1482_v47 = vmul.f32 0.044715, %v1450_v58  ;;  %v1608_v16 = vadd.f32 1.0, %v3533_v50  ;;  %v1639_v54 = vmul.f32 0.5, %v1607_v34 }
 0x31a   : > { %v1547_v37 = vmul.f32 0.7978846, %v1515_v20  ;;  %v1516_v26 = vadd.f32 %v1484_v39, %v4727_v36  ;;  %v1606_v24 = vadd.f32 1.0, %v3535_v51  ;;  %v1637_v32 = vmul.f32 0.5, %v1605_v53 }
 0x31b   : > { %v1545_v62 = vmul.f32 0.7978846, %v1513_v30  ;;  %v1514_v10 = vadd.f32 %v1482_v47, %v4732_v7  ;;  %v1640_v48 = vmul.f32 0.5, %v1608_v16  ;;  %v1671_v63 = vmul.f32 %v1639_v54, %v4681_v42  ;;  %v3396_v30 = vld [vmem:[%s5247_s4] sm:$0xff]   ;;  %v3397_v47 = vld [vmem:[%s5247_s4 + $0x8] sm:$0xff]  }
 0x31c   : > { %3536 = vtanh.f32 %v1547_v37  ;;  %v1548_v15 = vmul.f32 0.7978846, %v1516_v26  ;;  %v1638_v56 = vmul.f32 0.5, %v1606_v24  ;;  %v1669_v55 = vmul.f32 %v1637_v32, %v4684_v27  ;;  %3258 = vmatprep.subr.bf16.mxu0 %v3396_v30 }
 0x31d   : > { %3538 = vtanh.f32 %v1545_v62  ;;  %v1546_v2 = vmul.f32 0.7978846, %v1514_v10  ;;  %v1672_v31 = vmul.f32 %v1640_v48, %v4689_v43  ;;  %v5353_v42 = vpack.c.bf16 %v4592_v14, %v4589_v25  ;;  %3259 = vmatpush3.bf16.msra.mxu0 %v3396_v30 }
 0x31e   : > { %3540 = vtanh.f32 %v1548_v15  ;;  %v1670_v18 = vmul.f32 %v1638_v56, %v4694_v38  ;;  %3260 = vmatprep.subr.bf16.mxu0 %v3397_v47 }
 0x31f   : > { %3542 = vtanh.f32 %v1546_v2  ;;  %v1690_v45 = vpack.c.bf16 %v1672_v31, %v1671_v63 }
 0x320   : > { %v1689_v17 = vpack.c.bf16 %v1670_v18, %v1669_v55 }
 0x321   : > { %3261 = vmatpush3.bf16.msra.mxu0 %v3397_v47 }
 0x322   : > { %3085 = vmatprep.subr.bf16.mxu1 %v1689_v17 }
 0x323   : > { %3086 = vmatpush3.bf16.msra.mxu1 %v5352_v61 }
 0x324   : > { %3087 = vmatprep.subr.bf16.mxu1 %v1690_v45 }
 0x326   : > { %v3537_v28 = vpop.eup %3536 }
 0x327   : > { %v3539_v59 = vpop.eup %3538  ;;  %3088 = vmatpush3.bf16.msra.mxu1 %v5353_v42  ;;  %v1611_v43 = vadd.f32 1.0, %v3537_v28 }
 0x328   : > { %v3541_v13 = vpop.eup %3540  ;;  %v1609_v27 = vadd.f32 1.0, %v3539_v59 }
 0x329   : > { %v3543_v58 = vpop.eup %3542  ;;  %v1612_v38 = vadd.f32 1.0, %v3541_v13  ;;  %v1643_v46 = vmul.f32 0.5, %v1611_v43 }
 0x32a   : > { %v1610_v34 = vadd.f32 1.0, %v3543_v58  ;;  %v1641_v50 = vmul.f32 0.5, %v1609_v27 }
 0x32b   : > { %v1644_v20 = vmul.f32 0.5, %v1612_v38  ;;  %v1675_v21 = vmul.f32 %v1643_v46, %v4719_v60  ;;  %v5354_v60 = vpack.c.bf16 %v4642_v6, %v4639_v22  ;;  %v3399_v22 = vld [vmem:[%s5247_s4 + $0x18] sm:$0xff]   ;;  %v5370_v6 = vld [vmem:[#allocation21_spill] sm:$0xff] }
 0x32c   : > { %v1642_v39 = vmul.f32 0.5, %v1610_v34  ;;  %v1673_v53 = vmul.f32 %v1641_v50, %v4722_v23  ;;  %v3398_v23 = vld [vmem:[%s5247_s4 + $0x10] sm:$0xff]  }
 0x32d   : > { %v1676_v19 = vmul.f32 %v1644_v20, %v4727_v36  ;;  %v5355_v36 = vpack.c.bf16 %v4636_v0, %v4633_v40  ;;  %3262 = vmatprep.subr.bf16.mxu0 %v3398_v23  ;;  %v5368_v40 = vld [vmem:[#allocation20_spill] sm:$0xff]  ;;  %v5369_v0 = vld [vmem:[#allocation22_spill] sm:$0xff] }
 0x32e   : > { %v1674_v51 = vmul.f32 %v1642_v39, %v4732_v7  ;;  %3263 = vmatpush3.bf16.msra.mxu0 %v3398_v23 }
 0x32f   : > { %v1692_v25 = vpack.c.bf16 %v1676_v19, %v1675_v21  ;;  %3264 = vmatprep.subr.bf16.mxu0 %v3399_v22 }
 0x330   : > { %v1691_v14 = vpack.c.bf16 %v1674_v51, %v1673_v53 }
 0x332   : > { %3089 = vmatprep.subr.bf16.mxu1 %v1691_v14  ;;  %3265 = vmatpush3.bf16.msra.mxu0 %v3399_v22 }
 0x333   : > { %3090 = vmatpush3.bf16.msra.mxu1 %v5354_v60 }
 0x334   : > { %3091 = vmatprep.subr.bf16.mxu1 %v1692_v25 }
 0x337   : > { %3092 = vmatpush3.bf16.msra.mxu1 %v5355_v36 }
 0x33a   : > { %1742 = vmatmul.mubr.bf16.vlgmr.msra.gmra.mrb[32].mxu1 %v4206_v9  ;;  %v5356_v9 = vld [vmem:[#allocation9_spill] sm:$0xff] }
 0x33b   : > { %1749 = vmatprep.mubr.bf16.mxu1 %v4209_v41  ;;  %v5357_v41 = vld [vmem:[#allocation8_spill] sm:$0xff] }
 0x342   : > { %1750 = vmatmul.mubr.bf16.gmra.mrb[36].mxu1 %v4227_v4  ;;  %v5359_v4 = vld [vmem:[#allocation11_spill] sm:$0xff] }
 0x343   : > { %1757 = vmatprep.mubr.bf16.mxu1 %v4223_v44  ;;  %v5358_v44 = vld [vmem:[#allocation13_spill] sm:$0xff] }
 0x34a   : > { %1758 = vmatmul.mubr.bf16.gmra.mrb[40].mxu1 %v4235_v8  ;;  %v5360_v8 = vld [vmem:[#allocation12_spill] sm:$0xff] }
 0x34b   : > { %1765 = vmatprep.mubr.bf16.mxu1 %v4239_v1  ;;  %v5361_v1 = vld [vmem:[#allocation10_spill] sm:$0xff] }
 0x352   : > { %1766 = vmatmul.mubr.bf16.gmra.mrb[44].mxu1 %v4249_v35  ;;  %v3400_v35 = vld [vmem:[%s5247_s4 + $0x20] sm:$0xff]  }
 0x353   : > { %1773 = vmatprep.mubr.bf16.mxu1 %v4253_v57  ;;  %3266 = vmatprep.subr.bf16.mxu0 %v3400_v35  ;;  %v3401_v57 = vld [vmem:[%s5247_s4 + $0x28] sm:$0xff]  }
 0x354   : > { %3267 = vmatpush3.bf16.msra.mxu0 %v3400_v35 }
 0x355   : > { %3268 = vmatprep.subr.bf16.mxu0 %v3401_v57 }
 0x358   : > { %3269 = vmatpush3.bf16.msra.mxu0 %v3401_v57 }
 0x35a   : > { %1774 = vmatmul.mubr.bf16.gmra.mrb[48].mxu1 %v4263_v12  ;;  %v5362_v12 = vld [vmem:[#allocation17_spill] sm:$0xff] }
 0x35b   : > { %1781 = vmatprep.mubr.bf16.mxu1 %v4267_v29  ;;  %v5363_v29 = vld [vmem:[#allocation15_spill] sm:$0xff] }
 0x362   : > { %1782 = vmatmul.mubr.bf16.gmra.mrb[52].mxu1 %v4277_v3  ;;  %v3402_v3 = vld [vmem:[%s5247_s4 + $0x30] sm:$0xff]  }
 0x363   : > { %1789 = vmatprep.mubr.bf16.mxu1 %v4281_v49  ;;  %3270 = vmatprep.subr.bf16.mxu0 %v3402_v3  ;;  %v3403_v49 = vld [vmem:[%s5247_s4 + $0x38] sm:$0xff]  }
 0x364   : > { %3271 = vmatpush3.bf16.msra.mxu0 %v3402_v3 }
 0x365   : > { %3272 = vmatprep.subr.bf16.mxu0 %v3403_v49 }
 0x368   : > { %3273 = vmatpush3.bf16.msra.mxu0 %v3403_v49 }
 0x36a   : > { %1790 = vmatmul.mubr.bf16.gmra.mrb[56].mxu1 %v4291_v11  ;;  %v5364_v11 = vld [vmem:[#allocation16_spill] sm:$0xff] }
 0x36b   : > { %1797 = vmatprep.mubr.bf16.mxu1 %v4295_v5  ;;  %v5365_v5 = vld [vmem:[#allocation14_spill] sm:$0xff] }
 0x372   : > { %1798 = vmatmul.mubr.bf16.gmra.mrb[60].mxu1 %v4305_v52  ;;  %v5366_v52 = vld [vmem:[#allocation19_spill] sm:$0xff] }
 0x373   : > { %1805 = vmatprep.mubr.bf16.mxu1 %v4309_v33  ;;  %v5367_v33 = vld [vmem:[#allocation18_spill] sm:$0xff] }
 0x37a   : > { %1806 = vmatmul.mubr.bf16.gmra.mrb[64].mxu1 %v5356_v9 }
 0x37b   : > { %1813 = vmatprep.mubr.bf16.mxu1 %v5357_v41 }
 0x382   : > { %1814 = vmatmul.mubr.bf16.gmra.mrb[68].mxu1 %v5358_v44 }
 0x383   : > { %1821 = vmatprep.mubr.bf16.mxu1 %v5359_v4 }
 0x38a   : > { %1822 = vmatmul.mubr.bf16.gmra.mrb[72].mxu1 %v5360_v8 }
 0x38b   : > { %1829 = vmatprep.mubr.bf16.mxu1 %v5361_v1 }
 0x392   : > { %1830 = vmatmul.mubr.bf16.gmra.mrb[76].mxu1 %v5362_v12 }
 0x393   : > { %1837 = vmatprep.mubr.bf16.mxu1 %v5363_v29 }
 0x39a   : > { %1838 = vmatmul.mubr.bf16.gmra.mrb[80].mxu1 %v5364_v11 }
 0x39b   : > { %1845 = vmatprep.mubr.bf16.mxu1 %v5365_v5 }
 0x3a2   : > { %1846 = vmatmul.mubr.bf16.gmra.mrb[84].mxu1 %v5366_v52 }
 0x3a3   : > { %1853 = vmatprep.mubr.bf16.mxu1 %v5367_v33 }
 0x3aa   : > { %1854 = vmatmul.mubr.bf16.gmra.mrb[88].mxu1 %v5368_v40 }
 0x3ab   : > { %1861 = vmatprep.mubr.bf16.mxu1 %v5369_v0 }
 0x3b2   : > { %1862 = vmatmul.mubr.bf16.gmra.mrb[92].mxu1 %v5370_v6 }
 0x40d   : > { %v3093_v7 = vpop.f32.mrb[32].mxu1 }
 0x40e   : > { %v3094_v16 = vpop.f32.mrb[33].mxu1 }
 0x40f   : > { %v3095_v54 = vadd.f32 %v3094_v16, %v3093_v7  ;;  %v3096_v37 = vpop.f32.mrb[34].mxu1 }
 0x410   : > { %v3097_v26 = vpop.f32.mrb[35].mxu1 }
 0x411   : > { %v3098_v24 = vadd.f32 %v3097_v26, %v3096_v37 }
 0x413   : > { %v1870_v32 = vpack.c.bf16 %v3098_v24, %v3095_v54 }
 0x415   : > { %v3099_v62 = vpop.f32.mrb[36].mxu1  ;;  %3274 = vmatprep.mubr.bf16.mxu0 %v1870_v32 }
 0x416   : > { %v3100_v10 = vpop.f32.mrb[37].mxu1 }
 0x417   : > { %v3101_v48 = vadd.f32 %v3100_v10, %v3099_v62  ;;  %v3102_v15 = vpop.f32.mrb[38].mxu1 }
 0x418   : > { %v3103_v56 = vpop.f32.mrb[39].mxu1 }
 0x419   : > { %v3104_v2 = vadd.f32 %v3103_v56, %v3102_v15 }
 0x41b   : > { %v1871_v63 = vpack.c.bf16 %v3104_v2, %v3101_v48 }
 0x41d   : > { %v3105_v31 = vpop.f32.mrb[40].mxu1  ;;  %3275 = vmatmul.mubr.bf16.vlgmr.msra.gmra.mrb[64].mxu0 %v1871_v63 }
 0x41e   : > { %v3106_v55 = vpop.f32.mrb[41].mxu1 }
 0x41f   : > { %v3107_v18 = vadd.f32 %v3106_v55, %v3105_v31  ;;  %v3108_v45 = vpop.f32.mrb[42].mxu1 }
 0x420   : > { %v3109_v17 = vpop.f32.mrb[43].mxu1 }
 0x421   : > { %v3110_v61 = vadd.f32 %v3109_v17, %v3108_v45 }
 0x423   : > { %v1872_v28 = vpack.c.bf16 %v3110_v61, %v3107_v18 }
 0x425   : > { %v3111_v59 = vpop.f32.mrb[44].mxu1  ;;  %3278 = vmatprep.mubr.bf16.mxu0 %v1872_v28 }
 0x426   : > { %v3112_v42 = vpop.f32.mrb[45].mxu1 }
 0x427   : > { %v3113_v43 = vadd.f32 %v3112_v42, %v3111_v59  ;;  %v3114_v13 = vpop.f32.mrb[46].mxu1 }
 0x428   : > { %v3115_v27 = vpop.f32.mrb[47].mxu1 }
 0x429   : > { %v3116_v58 = vadd.f32 %v3115_v27, %v3114_v13 }
 0x42b   : > { %v1873_v38 = vpack.c.bf16 %v3116_v58, %v3113_v43 }
 0x42d   : > { %v3117_v46 = vpop.f32.mrb[48].mxu1  ;;  %3279 = vmatmul.mubr.bf16.gmra.mrb[68].mxu0 %v1873_v38 }
 0x42e   : > { %v3118_v34 = vpop.f32.mrb[49].mxu1 }
 0x42f   : > { %v3119_v50 = vadd.f32 %v3118_v34, %v3117_v46  ;;  %v3120_v20 = vpop.f32.mrb[50].mxu1 }
 0x430   : > { %v3121_v39 = vpop.f32.mrb[51].mxu1 }
 0x431   : > { %v3122_v21 = vadd.f32 %v3121_v39, %v3120_v20 }
 0x433   : > { %v1874_v19 = vpack.c.bf16 %v3122_v21, %v3119_v50 }
 0x435   : > { %v3123_v53 = vpop.f32.mrb[52].mxu1  ;;  %3282 = vmatprep.mubr.bf16.mxu0 %v1874_v19 }
 0x436   : > { %v3124_v51 = vpop.f32.mrb[53].mxu1 }
 0x437   : > { %v3125_v25 = vadd.f32 %v3124_v51, %v3123_v53  ;;  %v3126_v14 = vpop.f32.mrb[54].mxu1 }
 0x438   : > { %v3127_v30 = vpop.f32.mrb[55].mxu1 }
 0x439   : > { %v3128_v47 = vadd.f32 %v3127_v30, %v3126_v14 }
 0x43b   : > { %v1875_v60 = vpack.c.bf16 %v3128_v47, %v3125_v25 }
 0x43d   : > { %v3129_v23 = vpop.f32.mrb[56].mxu1  ;;  %3283 = vmatmul.mubr.bf16.gmra.mrb[72].mxu0 %v1875_v60 }
 0x43e   : > { %v3130_v36 = vpop.f32.mrb[57].mxu1 }
 0x43f   : > { %v3131_v22 = vadd.f32 %v3130_v36, %v3129_v23  ;;  %v3132_v9 = vpop.f32.mrb[58].mxu1 }
 0x440   : > { %v3133_v41 = vpop.f32.mrb[59].mxu1 }
 0x441   : > { %v3134_v44 = vadd.f32 %v3133_v41, %v3132_v9 }
 0x443   : > { %v1876_v4 = vpack.c.bf16 %v3134_v44, %v3131_v22 }
 0x445   : > { %v3135_v8 = vpop.f32.mrb[60].mxu1  ;;  %3286 = vmatprep.mubr.bf16.mxu0 %v1876_v4  ;;  %v3709_v4 = vmov 0.0  }
 0x446   : > { %v3136_v1 = vpop.f32.mrb[61].mxu1  ;;  %3306 = vmatprep.subr.bf16.mxu1 %v3709_v4  ;;  %3322 = vmatprep.mubr.msk.bf16.mxu1 %vm3710_vm2, %v3709_v4 }
 0x447   : > { %v3137_v35 = vadd.f32 %v3136_v1, %v3135_v8  ;;  %v3138_v57 = vpop.f32.mrb[62].mxu1  ;;  %v3404_v8 = vld [vmem:[%s5249_s6] sm:$0xff]   ;;  %v3405_v1 = vld [vmem:[%s5249_s6 + $0x8] sm:$0xff]  }
 0x448   : > { %v3139_v12 = vpop.f32.mrb[63].mxu1  ;;  %3307 = vmatpush3.bf16.msra.mxu1 %v3404_v8 }
 0x449   : > { %v3140_v29 = vadd.f32 %v3139_v12, %v3138_v57  ;;  %3308 = vmatprep.subr.bf16.mxu1 %v3709_v4 }
 0x44b   : > { %v1877_v3 = vpack.c.bf16 %v3140_v29, %v3137_v35  ;;  %v4839_v35 = vld [vmem:[%s5248_s5] ss:$0 sm:$0xff] }
 0x44c   : > { %3309 = vmatpush3.bf16.msra.mxu1 %v3405_v1 }
 0x44d   : > { %v3141_v49 = vpop.f32.mrb[64].mxu1  ;;  %3287 = vmatmul.mubr.bf16.gmra.mrb[76].mxu0 %v1877_v3  ;;  %3310 = vmatprep.subr.bf16.mxu1 %v3709_v4 }
 0x44e   : > { %v3142_v11 = vpop.f32.mrb[65].mxu1 }
 0x44f   : > { %v3143_v5 = vadd.f32 %v3142_v11, %v3141_v49  ;;  %v3144_v52 = vpop.f32.mrb[66].mxu1 }
 0x450   : > { %v3145_v33 = vpop.f32.mrb[67].mxu1 }
 0x451   : > { %v3146_v40 = vadd.f32 %v3145_v33, %v3144_v52 }
 0x453   : > { %v1878_v0 = vpack.c.bf16 %v3146_v40, %v3143_v5 }
 0x455   : > { %v3147_v6 = vpop.f32.mrb[68].mxu1  ;;  %3290 = vmatprep.mubr.bf16.mxu0 %v1878_v0  ;;  %v3406_v0 = vld [vmem:[%s5249_s6 + $0x10] sm:$0xff]  }
 0x456   : > { %v3148_v7 = vpop.f32.mrb[69].mxu1  ;;  %3311 = vmatpush3.bf16.msra.mxu1 %v3406_v0 }
 0x457   : > { %v3149_v16 = vadd.f32 %v3148_v7, %v3147_v6  ;;  %v3150_v54 = vpop.f32.mrb[70].mxu1  ;;  %3312 = vmatprep.subr.bf16.mxu1 %v3709_v4 }
 0x458   : > { %v3151_v37 = vpop.f32.mrb[71].mxu1 }
 0x459   : > { %v3152_v26 = vadd.f32 %v3151_v37, %v3150_v54 }
 0x45b   : > { %v1879_v24 = vpack.c.bf16 %v3152_v26, %v3149_v16 }
 0x45d   : > { %v3153_v32 = vpop.f32.mrb[72].mxu1  ;;  %3291 = vmatmul.mubr.bf16.gmra.mrb[80].mxu0 %v1879_v24 }
 0x45e   : > { %v3154_v62 = vpop.f32.mrb[73].mxu1 }
 0x45f   : > { %v3155_v10 = vadd.f32 %v3154_v62, %v3153_v32  ;;  %v3156_v48 = vpop.f32.mrb[74].mxu1 }
 0x460   : > { %v3157_v15 = vpop.f32.mrb[75].mxu1 }
 0x461   : > { %v3158_v56 = vadd.f32 %v3157_v15, %v3156_v48 }
 0x463   : > { %v1880_v2 = vpack.c.bf16 %v3158_v56, %v3155_v10 }
 0x465   : > { %v3159_v63 = vpop.f32.mrb[76].mxu1  ;;  %3294 = vmatprep.mubr.bf16.mxu0 %v1880_v2 }
 0x466   : > { %v3160_v31 = vpop.f32.mrb[77].mxu1 }
 0x467   : > { %v3161_v55 = vadd.f32 %v3160_v31, %v3159_v63  ;;  %v3162_v18 = vpop.f32.mrb[78].mxu1 }
 0x468   : > { %v3163_v45 = vpop.f32.mrb[79].mxu1 }
 0x469   : > { %v3164_v17 = vadd.f32 %v3163_v45, %v3162_v18 }
 0x46b   : > { %v1881_v61 = vpack.c.bf16 %v3164_v17, %v3161_v55 }
 0x46d   : > { %v3165_v28 = vpop.f32.mrb[80].mxu1  ;;  %3295 = vmatmul.mubr.bf16.gmra.mrb[84].mxu0 %v1881_v61 }
 0x46e   : > { %v3166_v59 = vpop.f32.mrb[81].mxu1 }
 0x46f   : > { %v3167_v42 = vadd.f32 %v3166_v59, %v3165_v28  ;;  %v3168_v43 = vpop.f32.mrb[82].mxu1 }
 0x470   : > { %v3169_v13 = vpop.f32.mrb[83].mxu1 }
 0x471   : > { %v3170_v27 = vadd.f32 %v3169_v13, %v3168_v43 }
 0x473   : > { %v1882_v58 = vpack.c.bf16 %v3170_v27, %v3167_v42  ;;  %v3407_v27 = vld [vmem:[%s5249_s6 + $0x18] sm:$0xff]  }
 0x474   : > { %3313 = vmatpush3.bf16.msra.mxu1 %v3407_v27 }
 0x475   : > { %v3171_v38 = vpop.f32.mrb[84].mxu1  ;;  %3298 = vmatprep.mubr.bf16.mxu0 %v1882_v58  ;;  %3314 = vmatprep.subr.bf16.mxu1 %v3709_v4 }
 0x476   : > { %v3172_v46 = vpop.f32.mrb[85].mxu1 }
 0x477   : > { %v3173_v34 = vadd.f32 %v3172_v46, %v3171_v38  ;;  %v3174_v50 = vpop.f32.mrb[86].mxu1 }
 0x478   : > { %v3175_v20 = vpop.f32.mrb[87].mxu1 }
 0x479   : > { %v3176_v39 = vadd.f32 %v3175_v20, %v3174_v50 }
 0x47b   : > { %v1883_v21 = vpack.c.bf16 %v3176_v39, %v3173_v34 }
 0x47d   : > { %v3177_v19 = vpop.f32.mrb[88].mxu1  ;;  %3299 = vmatmul.mubr.bf16.gmra.mrb[88].mxu0 %v1883_v21 }
 0x47e   : > { %v3178_v53 = vpop.f32.mrb[89].mxu1 }
 0x47f   : > { %v3179_v51 = vadd.f32 %v3178_v53, %v3177_v19  ;;  %v3180_v25 = vpop.f32.mrb[90].mxu1 }
 0x480   : > { %v3181_v14 = vpop.f32.mrb[91].mxu1 }
 0x481   : > { %v3182_v30 = vadd.f32 %v3181_v14, %v3180_v25 }
 0x483   : > { %v1884_v47 = vpack.c.bf16 %v3182_v30, %v3179_v51 }
 0x485   : > { %v3183_v60 = vpop.f32.mrb[92].mxu1  ;;  %3302 = vmatprep.mubr.bf16.mxu0 %v1884_v47 }
 0x486   : > { %v3184_v23 = vpop.f32.mrb[93].mxu1 }
 0x487   : > { %v3185_v36 = vadd.f32 %v3184_v23, %v3183_v60  ;;  %v3186_v22 = vpop.f32.mrb[94].mxu1 }
 0x488   : > { %v3187_v9 = vpop.f32.mrb[95].mxu1 }
 0x489   : > { %v3188_v41 = vadd.f32 %v3187_v9, %v3186_v22 }
 0x48b   : > { %v1885_v44 = vpack.c.bf16 %v3188_v41, %v3185_v36 }
 0x48d   : > { %3303 = vmatmul.mubr.bf16.gmra.mrb[92].mxu0 %v1885_v44 }
 0x4f0   : > { %v3276_v57 = vpop.f32.mrb[64].mxu0 }
 0x4f1   : > { %v4842_v12 = vadd.f32 %v3276_v57, %v4839_v35  ;;  %v1975_v29 = vpop.f32.mrb[65].mxu0 }
 0x4f2   : > { %v4845_v3 = vadd.f32 %v4839_v35, %v1975_v29  ;;  %v3277_v49 = vpop.f32.mrb[66].mxu0 }
 0x4f3   : > { %v2104_v11 = vmul.f32 %v4842_v12, %v4842_v12  ;;  %v4850_v5 = vadd.f32 %v3277_v49, %v4839_v35  ;;  %v1978_v52 = vpop.f32.mrb[67].mxu0 }
 0x4f4   : > { %v2102_v33 = vmul.f32 %v4845_v3, %v4845_v3  ;;  %v4855_v40 = vadd.f32 %v4839_v35, %v1978_v52 }
 0x4f5   : > { %v2136_v6 = vmul.f32 %v2104_v11, %v4842_v12  ;;  %v2105_v7 = vmul.f32 %v4850_v5, %v4850_v5 }
 0x4f6   : > { %v2134_v16 = vmul.f32 %v2102_v33, %v4845_v3  ;;  %v2103_v54 = vmul.f32 %v4855_v40, %v4855_v40 }
 0x4f7   : > { %v2168_v37 = vmul.f32 0.044715, %v2136_v6  ;;  %v2137_v26 = vmul.f32 %v2105_v7, %v4850_v5 }
 0x4f8   : > { %v2166_v24 = vmul.f32 0.044715, %v2134_v16  ;;  %v2135_v32 = vmul.f32 %v2103_v54, %v4855_v40  ;;  %v3408_v54 = vld [vmem:[%s5249_s6 + $0x20] sm:$0xff]  }
 0x4f9   : > { %v2200_v62 = vadd.f32 %v2168_v37, %v4842_v12  ;;  %v2169_v10 = vmul.f32 0.044715, %v2137_v26  ;;  %3315 = vmatpush3.bf16.msra.mxu1 %v3408_v54 }
 0x4fa   : > { %v2198_v48 = vadd.f32 %v2166_v24, %v4845_v3  ;;  %v2167_v15 = vmul.f32 0.044715, %v2135_v32  ;;  %3316 = vmatprep.subr.bf16.mxu1 %v3709_v4 }
 0x4fb   : > { %v2232_v56 = vmul.f32 0.7978846, %v2200_v62  ;;  %v2201_v2 = vadd.f32 %v2169_v10, %v4850_v5 }
 0x4fc   : > { %v2230_v63 = vmul.f32 0.7978846, %v2198_v48  ;;  %v2199_v31 = vadd.f32 %v2167_v15, %v4855_v40 }
 0x4fd   : > { %3544 = vtanh.f32 %v2232_v56  ;;  %v2233_v55 = vmul.f32 0.7978846, %v2201_v2 }
 0x4fe   : > { %3546 = vtanh.f32 %v2230_v63  ;;  %v2231_v18 = vmul.f32 0.7978846, %v2199_v31 }
 0x4ff   : > { %3548 = vtanh.f32 %v2233_v55 }
 0x500   : > { %3550 = vtanh.f32 %v2231_v18  ;;  %v3280_v45 = vpop.f32.mrb[68].mxu0 }
 0x501   : > { %v4874_v17 = vadd.f32 %v3280_v45, %v4839_v35  ;;  %v1991_v61 = vpop.f32.mrb[69].mxu0 }
 0x502   : > { %v4877_v28 = vadd.f32 %v4839_v35, %v1991_v61  ;;  %v3281_v59 = vpop.f32.mrb[70].mxu0 }
 0x503   : > { %v2108_v42 = vmul.f32 %v4874_v17, %v4874_v17  ;;  %v4882_v43 = vadd.f32 %v3281_v59, %v4839_v35  ;;  %v1994_v13 = vpop.f32.mrb[71].mxu0  ;;  %v3409_v59 = vld [vmem:[%s5249_s6 + $0x28] sm:$0xff]  }
 0x504   : > { %v2106_v58 = vmul.f32 %v4877_v28, %v4877_v28  ;;  %v4890_v38 = vadd.f32 %v4839_v35, %v1994_v13  ;;  %3317 = vmatpush3.bf16.msra.mxu1 %v3409_v59 }
 0x505   : > { %v2140_v46 = vmul.f32 %v2108_v42, %v4874_v17  ;;  %v2109_v34 = vmul.f32 %v4882_v43, %v4882_v43  ;;  %3318 = vmatprep.subr.bf16.mxu1 %v3709_v4 }
 0x506   : > { %v2138_v50 = vmul.f32 %v2106_v58, %v4877_v28  ;;  %v2107_v20 = vmul.f32 %v4890_v38, %v4890_v38 }
 0x507   : > { %v3545_v39 = vpop.eup %3544  ;;  %v2172_v21 = vmul.f32 0.044715, %v2140_v46  ;;  %v2141_v19 = vmul.f32 %v2109_v34, %v4882_v43 }
 0x508   : > { %v3547_v53 = vpop.eup %3546  ;;  %v2296_v51 = vadd.f32 1.0, %v3545_v39  ;;  %v2170_v25 = vmul.f32 0.044715, %v2138_v50  ;;  %v2139_v14 = vmul.f32 %v2107_v20, %v4890_v38 }
 0x509   : > { %v3549_v30 = vpop.eup %3548  ;;  %v2294_v47 = vadd.f32 1.0, %v3547_v53  ;;  %v2204_v60 = vadd.f32 %v2172_v21, %v4874_v17  ;;  %v2173_v23 = vmul.f32 0.044715, %v2141_v19 }
 0x50a   : > { %v3551_v36 = vpop.eup %3550  ;;  %v2328_v22 = vmul.f32 0.5, %v2296_v51  ;;  %v2297_v9 = vadd.f32 1.0, %v3549_v30  ;;  %v2202_v41 = vadd.f32 %v2170_v25, %v4877_v28  ;;  %v2171_v44 = vmul.f32 0.044715, %v2139_v14 }
 0x50b   : > { %v2326_v8 = vmul.f32 0.5, %v2294_v47  ;;  %v2295_v1 = vadd.f32 1.0, %v3551_v36  ;;  %v2236_v57 = vmul.f32 0.7978846, %v2204_v60  ;;  %v2205_v29 = vadd.f32 %v2173_v23, %v4882_v43  ;;  %v3410_v60 = vld [vmem:[%s5249_s6 + $0x30] sm:$0xff]  }
 0x50c   : > { %v2329_v49 = vmul.f32 0.5, %v2297_v9  ;;  %v2234_v11 = vmul.f32 0.7978846, %v2202_v41  ;;  %v2203_v52 = vadd.f32 %v2171_v44, %v4890_v38  ;;  %v2360_v6 = vmul.f32 %v2328_v22, %v4842_v12  ;;  %3319 = vmatpush3.bf16.msra.mxu1 %v3410_v60 }
 0x50d   : > { %v2327_v33 = vmul.f32 0.5, %v2295_v1  ;;  %3552 = vtanh.f32 %v2236_v57  ;;  %v2237_v0 = vmul.f32 0.7978846, %v2205_v29  ;;  %v2358_v37 = vmul.f32 %v2326_v8, %v4845_v3  ;;  %3320 = vmatprep.subr.bf16.mxu1 %v3709_v4 }
 0x50e   : > { %v2361_v7 = vmul.f32 %v2329_v49, %v4850_v5  ;;  %3554 = vtanh.f32 %v2234_v11  ;;  %v2235_v16 = vmul.f32 0.7978846, %v2203_v52 }
 0x50f   : > { %v2359_v26 = vmul.f32 %v2327_v33, %v4855_v40  ;;  %3556 = vtanh.f32 %v2237_v0  ;;  %v3411_v33 = vld [vmem:[%s5249_s6 + $0x38] sm:$0xff]  }
 0x510   : > { %v2397_v24 = vadd.f32 %v2361_v7, %v2360_v6  ;;  %3558 = vtanh.f32 %v2235_v16  ;;  %v3284_v32 = vpop.f32.mrb[72].mxu0  ;;  %3321 = vmatpush3.bf16.msra.mxu1 %v3411_v33 }
 0x511   : > { %v2390_v62 = vadd.f32 %v2359_v26, %v2358_v37  ;;  %v4913_v12 = vadd.f32 %v3284_v32, %v4839_v35  ;;  %v2007_v5 = vpop.f32.mrb[73].mxu0 }
 0x512   : > { %v2398_v10 = vrot.slane %v2397_v24, 4  ;;  %v4917_v48 = vadd.f32 %v4839_v35, %v2007_v5  ;;  %v3285_v15 = vpop.f32.mrb[74].mxu0 }
 0x513   : > { %v2391_v3 = vrot.slane %v2390_v62, 4  ;;  %v2112_v40 = vmul.f32 %v4913_v12, %v4913_v12  ;;  %v4922_v56 = vadd.f32 %v3285_v15, %v4839_v35  ;;  %v2010_v2 = vpop.f32.mrb[75].mxu0 }
 0x514   : > { %v2399_v63 = vadd.f32 %v2398_v10, %v2397_v24  ;;  %v2110_v31 = vmul.f32 %v4917_v48, %v4917_v48  ;;  %v4927_v55 = vadd.f32 %v4839_v35, %v2010_v2 }
 0x515   : > { %v2392_v18 = vadd.f32 %v2391_v3, %v2390_v62  ;;  %v2144_v45 = vmul.f32 %v2112_v40, %v4913_v12  ;;  %v2113_v61 = vmul.f32 %v4922_v56, %v4922_v56 }
 0x516   : > { %v2400_v42 = vrot.slane %v2399_v63, 2  ;;  %v2142_v13 = vmul.f32 %v2110_v31, %v4917_v48  ;;  %v2111_v27 = vmul.f32 %v4927_v55, %v4927_v55 }
 0x517   : > { %v3553_v58 = vpop.eup %3552  ;;  %v2393_v46 = vrot.slane %v2392_v18, 2  ;;  %v2176_v34 = vmul.f32 0.044715, %v2144_v45  ;;  %v2145_v50 = vmul.f32 %v2113_v61, %v4922_v56 }
 0x518   : > { %v3555_v20 = vpop.eup %3554  ;;  %v2401_v39 = vadd.f32 %v2400_v42, %v2399_v63  ;;  %v2300_v21 = vadd.f32 1.0, %v3553_v58  ;;  %v2174_v19 = vmul.f32 0.044715, %v2142_v13  ;;  %v2143_v53 = vmul.f32 %v2111_v27, %v4927_v55 }
 0x519   : > { %v3557_v51 = vpop.eup %3556  ;;  %v2394_v25 = vadd.f32 %v2393_v46, %v2392_v18  ;;  %v2298_v14 = vadd.f32 1.0, %v3555_v20  ;;  %v2208_v30 = vadd.f32 %v2176_v34, %v4913_v12  ;;  %v2177_v47 = vmul.f32 0.044715, %v2145_v50 }
 0x51a   : > { %v3559_v23 = vpop.eup %3558  ;;  %v2402_v36 = vrot.slane %v2401_v39, 1  ;;  %v2332_v22 = vmul.f32 0.5, %v2300_v21  ;;  %v2301_v9 = vadd.f32 1.0, %v3557_v51  ;;  %v2206_v41 = vadd.f32 %v2174_v19, %v4917_v48 }
 0x51b   : > { %v2395_v44 = vrot.slane %v2394_v25, 1  ;;  %v2330_v8 = vmul.f32 0.5, %v2298_v14  ;;  %v2299_v1 = vadd.f32 1.0, %v3559_v23  ;;  %v2240_v57 = vmul.f32 0.7978846, %v2208_v30 }
 0x51c   : > { %v2403_v29 = vadd.f32 %v2402_v36, %v2401_v39  ;;  %v2364_v49 = vmul.f32 %v2332_v22, %v4874_v17  ;;  %v2333_v11 = vmul.f32 0.5, %v2301_v9  ;;  %v2238_v52 = vmul.f32 0.7978846, %v2206_v41 }
 0x51d   : > { %v2396_v0 = vadd.f32 %v2395_v44, %v2394_v25  ;;  %v2362_v6 = vmul.f32 %v2330_v8, %v4877_v28  ;;  %v2331_v7 = vmul.f32 0.5, %v2299_v1  ;;  %3560 = vtanh.f32 %v2240_v57 }
 0x51e   : > { %v2504_v16 = vmul.f32 0.0625, %v2403_v29  ;;  %v2365_v54 = vmul.f32 %v2333_v11, %v4882_v43  ;;  %3562 = vtanh.f32 %v2238_v52  ;;  %v2209_v37 = vadd.f32 %v2177_v47, %v4922_v56 }
 0x51f   : > { %v2503_v17 = vmul.f32 0.0625, %v2396_v0  ;;  %v2363_v26 = vmul.f32 %v2331_v7, %v4890_v38  ;;  %v2175_v24 = vmul.f32 0.044715, %v2143_v53 }
 0x520   : > { %v2561_v32 = vpack.c.bf16 %v2504_v16, %v2504_v16  ;;  %v2411_v62 = vadd.f32 %v2365_v54, %v2364_v49  ;;  %v2241_v5 = vmul.f32 0.7978846, %v2209_v37  ;;  %v3288_v10 = vpop.f32.mrb[76].mxu0 }
 0x521   : > { %v4957_v28 = vsel %vm2535_vm1, %v2504_v16, %v2503_v17  ;;  %v2560_v15 = vpack.c.bf16 %v2503_v17, %v2503_v17  ;;  %v2404_v43 = vadd.f32 %v2363_v26, %v2362_v6  ;;  %v2207_v3 = vadd.f32 %v2175_v24, %v4927_v55  ;;  %v2023_v40 = vpop.f32.mrb[77].mxu0 }
 0x522   : > { %v2616_v2 = vunpack.c.l.b16 %v2561_v32  ;;  %v2412_v63 = vrot.slane %v2411_v62, 4  ;;  %3564 = vtanh.f32 %v2241_v5  ;;  %v4961_v38 = vadd.f32 %v3288_v10, %v4839_v35  ;;  %v3289_v31 = vpop.f32.mrb[78].mxu0 }
 0x523   : > { %v2615_v18 = vunpack.c.l.b16 %v2560_v15  ;;  %v2405_v45 = vrot.slane %v2404_v43, 4  ;;  %v2239_v61 = vmul.f32 0.7978846, %v2207_v3  ;;  %v4964_v4 = vadd.f32 %v4839_v35, %v2023_v40  ;;  %v2026_v59 = vpop.f32.mrb[79].mxu0 }
 0x524   : > { %v2413_v42 = vadd.f32 %v2412_v63, %v2411_v62  ;;  %v2116_v13 = vmul.f32 %v4961_v38, %v4961_v38  ;;  %v4969_v27 = vadd.f32 %v3289_v31, %v4839_v35  ;;  %v4972_v58 = vadd.f32 %v4839_v35, %v2026_v59 }
 0x525   : > { %v4975_v46 = vsel %vm2535_vm1, %v2616_v2, %v2615_v18  ;;  %v2406_v34 = vadd.f32 %v2405_v45, %v2404_v43  ;;  %3566 = vtanh.f32 %v2239_v61  ;;  %v2114_v50 = vmul.f32 %v4964_v4, %v4964_v4 }
 0x526   : > { %v2414_v20 = vrot.slane %v2413_v42, 2  ;;  %v2148_v39 = vmul.f32 %v2116_v13, %v4961_v38  ;;  %v2117_v21 = vmul.f32 %v4969_v27, %v4969_v27  ;;  %v2115_v19 = vmul.f32 %v4972_v58, %v4972_v58 }
 0x527   : > { %v3561_v53 = vpop.eup %3560  ;;  %v2407_v51 = vrot.slane %v2406_v34, 2  ;;  %v2146_v25 = vmul.f32 %v2114_v50, %v4964_v4 }
 0x528   : > { %v3563_v14 = vpop.eup %3562  ;;  %v2415_v30 = vadd.f32 %v2414_v20, %v2413_v42  ;;  %v2304_v47 = vadd.f32 1.0, %v3561_v53  ;;  %v2180_v60 = vmul.f32 0.044715, %v2148_v39  ;;  %v2149_v23 = vmul.f32 %v2117_v21, %v4969_v27 }
 0x529   : > { %v2408_v36 = vadd.f32 %v2407_v51, %v2406_v34  ;;  %v2302_v22 = vadd.f32 1.0, %v3563_v14  ;;  %v2178_v9 = vmul.f32 0.044715, %v2146_v25  ;;  %v2147_v41 = vmul.f32 %v2115_v19, %v4972_v58 }
 0x52a   : > { %v2416_v44 = vrot.slane %v2415_v30, 1  ;;  %v2212_v8 = vadd.f32 %v2180_v60, %v4961_v38  ;;  %v2181_v1 = vmul.f32 0.044715, %v2149_v23  ;;  %v2336_v29 = vmul.f32 0.5, %v2304_v47 }
 0x52b   : > { %v2409_v57 = vrot.slane %v2408_v36, 1  ;;  %v2210_v49 = vadd.f32 %v2178_v9, %v4964_v4  ;;  %v2179_v11 = vmul.f32 0.044715, %v2147_v41  ;;  %v2334_v16 = vmul.f32 0.5, %v2302_v22 }
 0x52c   : > { %v3565_v52 = vpop.eup %3564  ;;  %v2417_v33 = vadd.f32 %v2416_v44, %v2415_v30  ;;  %v2244_v0 = vmul.f32 0.7978846, %v2212_v8  ;;  %v2213_v6 = vadd.f32 %v2181_v1, %v4969_v27  ;;  %v2368_v5 = vmul.f32 %v2336_v29, %v4913_v12 }
 0x52d   : > { %v2410_v7 = vadd.f32 %v2409_v57, %v2408_v36  ;;  %v2305_v54 = vadd.f32 1.0, %v3565_v52  ;;  %v2242_v37 = vmul.f32 0.7978846, %v2210_v49  ;;  %v2211_v24 = vadd.f32 %v2179_v11, %v4972_v58 }
 0x52e   : > { %v2506_v17 = vmul.f32 0.0625, %v2417_v33  ;;  %3568 = vtanh.f32 %v2244_v0  ;;  %v2245_v26 = vmul.f32 0.7978846, %v2213_v6  ;;  %v2366_v61 = vmul.f32 %v2334_v16, %v4917_v48 }
 0x52f   : > { %v3567_v32 = vpop.eup %3566  ;;  %v2505_v62 = vmul.f32 0.0625, %v2410_v7  ;;  %v2337_v10 = vmul.f32 0.5, %v2305_v54  ;;  %3570 = vtanh.f32 %v2242_v37  ;;  %v2243_v3 = vmul.f32 0.7978846, %v2211_v24 }
 0x530   : > { %v2563_v15 = vpack.c.bf16 %v2506_v17, %v2506_v17  ;;  %v2303_v43 = vadd.f32 1.0, %v3567_v32  ;;  %3572 = vtanh.f32 %v2245_v26  ;;  %v3292_v40 = vpop.f32.mrb[80].mxu0 }
 0x531   : > { %v2538_v2 = vsel %vm2537_vm3, %v2505_v62, %v4957_v28  ;;  %v2562_v63 = vpack.c.bf16 %v2505_v62, %v2505_v62  ;;  %v2369_v31 = vmul.f32 %v2337_v10, %v4922_v56  ;;  %v4996_v18 = vadd.f32 %v3292_v40, %v4839_v35  ;;  %v2039_v45 = vpop.f32.mrb[81].mxu0 }
 0x532   : > { %v2335_v12 = vmul.f32 0.5, %v2303_v43  ;;  %v5000_v59 = vsel %vm2539_vm4, %v2506_v17, %v2538_v2  ;;  %3574 = vtanh.f32 %v2243_v3  ;;  %v3293_v42 = vpop.f32.mrb[82].mxu0  ;;  %v5005_v50 = vadd.f32 %v4839_v35, %v2039_v45 }
 0x533   : > { %v2617_v13 = vunpack.c.l.b16 %v2562_v63  ;;  %v2425_v34 = vadd.f32 %v2369_v31, %v2368_v5  ;;  %v2120_v28 = vmul.f32 %v4996_v18, %v4996_v18  ;;  %v2042_v56 = vpop.f32.mrb[83].mxu0  ;;  %v2618_v20 = vunpack.c.l.b16 %v2563_v15 }
 0x534   : > { %v2367_v39 = vmul.f32 %v2335_v12, %v4927_v55  ;;  %v5009_v48 = vadd.f32 %v3293_v42, %v4839_v35  ;;  %v5012_v21 = vadd.f32 %v4839_v35, %v2042_v56  ;;  %v2118_v25 = vmul.f32 %v5005_v50, %v5005_v50 }
 0x535   : > { %v2632_v19 = vsel %vm2537_vm3, %v2617_v13, %v4975_v46  ;;  %v2426_v53 = vrot.slane %v2425_v34, 4  ;;  %v2152_v51 = vmul.f32 %v2120_v28, %v4996_v18 }
 0x536   : > { %v2418_v14 = vadd.f32 %v2367_v39, %v2366_v61  ;;  %v2121_v30 = vmul.f32 %v5009_v48, %v5009_v48  ;;  %v2119_v55 = vmul.f32 %v5012_v21, %v5012_v21  ;;  %v5024_v47 = vsel %vm2539_vm4, %v2618_v20, %v2632_v19 }
 0x537   : > { %v2427_v60 = vadd.f32 %v2426_v53, %v2425_v34  ;;  %v2184_v23 = vmul.f32 0.044715, %v2152_v51  ;;  %v2150_v46 = vmul.f32 %v2118_v25, %v5005_v50 }
 0x538   : > { %v3569_v36 = vpop.eup %3568  ;;  %v2419_v22 = vrot.slane %v2418_v14, 4  ;;  %v2153_v9 = vmul.f32 %v2121_v30, %v5009_v48  ;;  %v2151_v41 = vmul.f32 %v2119_v55, %v5012_v21 }
 0x539   : > { %v3571_v44 = vpop.eup %3570  ;;  %v2428_v8 = vrot.slane %v2427_v60, 2  ;;  %v2308_v1 = vadd.f32 1.0, %v3569_v36  ;;  %v2216_v57 = vadd.f32 %v2184_v23, %v4996_v18  ;;  %v2182_v29 = vmul.f32 0.044715, %v2150_v46 }
 0x53a   : > { %v3573_v49 = vpop.eup %3572  ;;  %v2420_v11 = vadd.f32 %v2419_v22, %v2418_v14  ;;  %v2306_v52 = vadd.f32 1.0, %v3571_v44  ;;  %v2185_v33 = vmul.f32 0.044715, %v2153_v9  ;;  %v2183_v0 = vmul.f32 0.044715, %v2151_v41 }
 0x53b   : > { %v2429_v6 = vadd.f32 %v2428_v8, %v2427_v60  ;;  %v2340_v7 = vmul.f32 0.5, %v2308_v1  ;;  %v2309_v16 = vadd.f32 1.0, %v3573_v49  ;;  %v2248_v54 = vmul.f32 0.7978846, %v2216_v57 }
 0x53c   : > { %v3575_v37 = vpop.eup %3574  ;;  %v2421_v17 = vrot.slane %v2420_v11, 2  ;;  %v2338_v26 = vmul.f32 0.5, %v2306_v52  ;;  %v2214_v24 = vadd.f32 %v2182_v29, %v5005_v50  ;;  %v2217_v32 = vadd.f32 %v2185_v33, %v5009_v48 }
 0x53d   : > { %v2430_v62 = vrot.slane %v2429_v6, 1  ;;  %v2341_v5 = vmul.f32 0.5, %v2309_v16  ;;  %v2307_v10 = vadd.f32 1.0, %v3575_v37  ;;  %v2372_v43 = vmul.f32 %v2340_v7, %v4961_v38 }
 0x53e   : > { %v2422_v15 = vadd.f32 %v2421_v17, %v2420_v11  ;;  %3576 = vtanh.f32 %v2248_v54  ;;  %v2246_v3 = vmul.f32 0.7978846, %v2214_v24  ;;  %v2249_v31 = vmul.f32 0.7978846, %v2217_v32 }
 0x53f   : > { %v2431_v40 = vadd.f32 %v2430_v62, %v2429_v6  ;;  %v2373_v2 = vmul.f32 %v2341_v5, %v4969_v27  ;;  %v2339_v63 = vmul.f32 0.5, %v2307_v10  ;;  %v2370_v61 = vmul.f32 %v2338_v26, %v4964_v4 }
 0x540   : > { %v2423_v45 = vrot.slane %v2422_v15, 1  ;;  %3578 = vtanh.f32 %v2246_v3  ;;  %v2215_v12 = vadd.f32 %v2183_v0, %v5012_v21  ;;  %v3296_v42 = vpop.f32.mrb[84].mxu0 }
 0x541   : > { %v2508_v13 = vmul.f32 0.0625, %v2431_v40  ;;  %v2439_v34 = vadd.f32 %v2373_v2, %v2372_v43  ;;  %v2371_v28 = vmul.f32 %v2339_v63, %v4972_v58  ;;  %3580 = vtanh.f32 %v2249_v31  ;;  %v2055_v38 = vpop.f32.mrb[85].mxu0 }
 0x542   : > { %v2424_v56 = vadd.f32 %v2423_v45, %v2422_v15  ;;  %v2247_v20 = vmul.f32 0.7978846, %v2215_v12  ;;  %v5038_v39 = vadd.f32 %v3296_v42, %v4839_v35  ;;  %v5041_v27 = vadd.f32 %v4839_v35, %v2055_v38  ;;  %v3297_v19 = vpop.f32.mrb[86].mxu0 }
 0x543   : > { %v2565_v4 = vpack.c.bf16 %v2508_v13, %v2508_v13  ;;  %v2440_v53 = vrot.slane %v2439_v34, 4  ;;  %v2432_v51 = vadd.f32 %v2371_v28, %v2370_v61  ;;  %v5044_v25 = vadd.f32 %v3297_v19, %v4839_v35  ;;  %v2058_v14 = vpop.f32.mrb[87].mxu0 }
 0x544   : > { %v2507_v30 = vmul.f32 0.0625, %v2424_v56  ;;  %3582 = vtanh.f32 %v2247_v20  ;;  %v2124_v58 = vmul.f32 %v5038_v39, %v5038_v39  ;;  %v2122_v55 = vmul.f32 %v5041_v27, %v5041_v27 }
 0x545   : > { %v2620_v60 = vunpack.c.l.b16 %v2565_v4  ;;  %v2441_v23 = vadd.f32 %v2440_v53, %v2439_v34  ;;  %v2433_v46 = vrot.slane %v2432_v51, 4  ;;  %v2125_v36 = vmul.f32 %v5044_v25, %v5044_v25 }
 0x546   : > { %v2542_v22 = vsel %vm2541_vm5, %v2507_v30, %v5000_v59  ;;  %v2564_v9 = vpack.c.bf16 %v2507_v30, %v2507_v30  ;;  %v2156_v41 = vmul.f32 %v2124_v58, %v5038_v39  ;;  %v2154_v44 = vmul.f32 %v2122_v55, %v5041_v27 }
 0x547   : > { %v2442_v8 = vrot.slane %v2441_v23, 2  ;;  %v2434_v1 = vadd.f32 %v2433_v46, %v2432_v51  ;;  %v2157_v57 = vmul.f32 %v2125_v36, %v5044_v25  ;;  %v5058_v29 = vadd.f32 %v4839_v35, %v2058_v14 }
 0x548   : > { %v3577_v49 = vpop.eup %3576  ;;  %v2619_v11 = vunpack.c.l.b16 %v2564_v9  ;;  %v2188_v52 = vmul.f32 0.044715, %v2156_v41  ;;  %v2186_v33 = vmul.f32 0.044715, %v2154_v44  ;;  %v5061_v0 = vsel %vm2543_vm6, %v2508_v13, %v2542_v22 }
 0x549   : > { %v2443_v59 = vadd.f32 %v2442_v8, %v2441_v23  ;;  %v2435_v6 = vrot.slane %v2434_v1, 2  ;;  %v2312_v7 = vadd.f32 1.0, %v3577_v49  ;;  %v2189_v16 = vmul.f32 0.044715, %v2157_v57 }
 0x54a   : > { %v3579_v54 = vpop.eup %3578  ;;  %v2220_v37 = vadd.f32 %v2188_v52, %v5038_v39  ;;  %v2218_v17 = vadd.f32 %v2186_v33, %v5041_v27  ;;  %v2123_v26 = vmul.f32 %v5058_v29, %v5058_v29  ;;  %v2634_v24 = vsel %vm2541_vm5, %v2619_v11, %v5024_v47 }
 0x54b   : > { %v3581_v32 = vpop.eup %3580  ;;  %v2444_v62 = vrot.slane %v2443_v59, 1  ;;  %v2436_v5 = vadd.f32 %v2435_v6, %v2434_v1  ;;  %v2344_v10 = vmul.f32 0.5, %v2312_v7  ;;  %v2310_v15 = vadd.f32 1.0, %v3579_v54 }
 0x54c   : > { %v2313_v43 = vadd.f32 1.0, %v3581_v32  ;;  %v2252_v3 = vmul.f32 0.7978846, %v2220_v37  ;;  %v2250_v40 = vmul.f32 0.7978846, %v2218_v17  ;;  %v2221_v2 = vadd.f32 %v2189_v16, %v5044_v25 }
 0x54d   : > { %v2445_v63 = vadd.f32 %v2444_v62, %v2443_v59  ;;  %v2437_v31 = vrot.slane %v2436_v5, 1  ;;  %v2376_v45 = vmul.f32 %v2344_v10, %v4996_v18  ;;  %v2342_v61 = vmul.f32 0.5, %v2310_v15 }
 0x54e   : > { %v3583_v12 = vpop.eup %3582  ;;  %v2345_v42 = vmul.f32 0.5, %v2313_v43  ;;  %3584 = vtanh.f32 %v2252_v3  ;;  %v2253_v13 = vmul.f32 0.7978846, %v2221_v2  ;;  %v2155_v47 = vmul.f32 %v2123_v26, %v5058_v29 }
 0x54f   : > { %v5072_v34 = vmul.f32 0.0625, %v2445_v63  ;;  %v2438_v28 = vadd.f32 %v2437_v31, %v2436_v5  ;;  %v2374_v38 = vmul.f32 %v2342_v61, %v5005_v50  ;;  %v2311_v56 = vadd.f32 1.0, %v3583_v12 }
 0x550   : > { %v2377_v20 = vmul.f32 %v2345_v42, %v5009_v48  ;;  %3586 = vtanh.f32 %v2250_v40  ;;  %v2187_v19 = vmul.f32 0.044715, %v2155_v47  ;;  %v3300_v4 = vpop.f32.mrb[88].mxu0  ;;  %v2635_v18 = vsel %vm2543_vm6, %v2620_v60, %v2634_v24 }
 0x551   : > { %v5077_v53 = vmul.f32 0.0625, %v2438_v28  ;;  %v2343_v51 = vmul.f32 0.5, %v2311_v56  ;;  %3588 = vtanh.f32 %v2253_v13  ;;  %v5080_v14 = vadd.f32 %v3300_v4, %v4839_v35  ;;  %v2071_v30 = vpop.f32.mrb[89].mxu0 }
 0x552   : > { %v2453_v58 = vadd.f32 %v2377_v20, %v2376_v45  ;;  %v2219_v50 = vadd.f32 %v2187_v19, %v5058_v29  ;;  %v5084_v55 = vadd.f32 %v4839_v35, %v2071_v30  ;;  %v3301_v48 = vpop.f32.mrb[90].mxu0  ;;  %v2567_v23 = vpack.c.bf16 %v5072_v34, %v5072_v34 }
 0x553   : > { %v2566_v60 = vpack.c.bf16 %v5077_v53, %v5077_v53  ;;  %v2375_v46 = vmul.f32 %v2343_v51, %v5012_v21  ;;  %v2128_v36 = vmul.f32 %v5080_v14, %v5080_v14  ;;  %v5094_v22 = vadd.f32 %v3301_v48, %v4839_v35  ;;  %v2074_v9 = vpop.f32.mrb[91].mxu0 }
 0x554   : > { %v2454_v41 = vrot.slane %v2453_v58, 4  ;;  %v2251_v44 = vmul.f32 0.7978846, %v2219_v50  ;;  %v2126_v8 = vmul.f32 %v5084_v55, %v5084_v55  ;;  %v5099_v1 = vadd.f32 %v4839_v35, %v2074_v9 }
 0x555   : > { %v2621_v57 = vunpack.c.l.b16 %v2566_v60  ;;  %v2446_v49 = vadd.f32 %v2375_v46, %v2374_v38  ;;  %v2160_v11 = vmul.f32 %v2128_v36, %v5080_v14  ;;  %v2129_v21 = vmul.f32 %v5094_v22, %v5094_v22 }
 0x556   : > { %v2455_v52 = vadd.f32 %v2454_v41, %v2453_v58  ;;  %3590 = vtanh.f32 %v2251_v44  ;;  %v2158_v33 = vmul.f32 %v2126_v8, %v5084_v55  ;;  %v2127_v59 = vmul.f32 %v5099_v1, %v5099_v1 }
 0x557   : > { %v2447_v6 = vrot.slane %v2446_v49, 4  ;;  %v2192_v7 = vmul.f32 0.044715, %v2160_v11  ;;  %v2161_v16 = vmul.f32 %v2129_v21, %v5094_v22  ;;  %v2622_v54 = vunpack.c.l.b16 %v2567_v23 }
 0x558   : > { %v3585_v37 = vpop.eup %3584  ;;  %v2456_v17 = vrot.slane %v2455_v52, 2  ;;  %v2190_v26 = vmul.f32 0.044715, %v2158_v33  ;;  %v2159_v24 = vmul.f32 %v2127_v59, %v5099_v1  ;;  %v2636_v32 = vsel %vm2545_vm7, %v2621_v57, %v2635_v18 }
 0x559   : > { %v2448_v62 = vadd.f32 %v2447_v6, %v2446_v49  ;;  %v2316_v5 = vadd.f32 1.0, %v3585_v37  ;;  %v2224_v10 = vadd.f32 %v2192_v7, %v5080_v14  ;;  %v2193_v15 = vmul.f32 0.044715, %v2161_v16 }
 0x55a   : > { %v3587_v43 = vpop.eup %3586  ;;  %v2457_v3 = vadd.f32 %v2456_v17, %v2455_v52  ;;  %v2222_v40 = vadd.f32 %v2190_v26, %v5084_v55  ;;  %v2191_v2 = vmul.f32 0.044715, %v2159_v24  ;;  %v5113_v63 = vsel %vm2547_vm8, %v2622_v54, %v2636_v32 }
 0x55b   : > { %v3589_v31 = vpop.eup %3588  ;;  %v2449_v45 = vrot.slane %v2448_v62, 2  ;;  %v2348_v61 = vmul.f32 0.5, %v2316_v5  ;;  %v2314_v12 = vadd.f32 1.0, %v3587_v43  ;;  %v2256_v42 = vmul.f32 0.7978846, %v2224_v10 }
 0x55c   : > { %v2458_v13 = vrot.slane %v2457_v3, 1  ;;  %v2317_v47 = vadd.f32 1.0, %v3589_v31  ;;  %v2254_v28 = vmul.f32 0.7978846, %v2222_v40  ;;  %v2225_v38 = vadd.f32 %v2193_v15, %v5094_v22 }
 0x55d   : > { %v2450_v56 = vadd.f32 %v2449_v45, %v2448_v62  ;;  %v2346_v20 = vmul.f32 0.5, %v2314_v12  ;;  %3592 = vtanh.f32 %v2256_v42  ;;  %v2380_v30 = vmul.f32 %v2348_v61, %v5038_v39 }
 0x55e   : > { %v2459_v19 = vadd.f32 %v2458_v13, %v2457_v3  ;;  %v2349_v4 = vmul.f32 0.5, %v2317_v47  ;;  %3594 = vtanh.f32 %v2254_v28  ;;  %v2257_v18 = vmul.f32 0.7978846, %v2225_v38 }
 0x55f   : > { %v2451_v51 = vrot.slane %v2450_v56, 1  ;;  %v2223_v58 = vadd.f32 %v2191_v2, %v5099_v1  ;;  %v2546_v50 = vsel %vm2545_vm7, %v5077_v53, %v5061_v0  ;;  %v2378_v53 = vmul.f32 %v2346_v20, %v5041_v27 }
 0x560   : > { %v3591_v48 = vpop.eup %3590  ;;  %v2512_v23 = vmul.f32 0.0625, %v2459_v19  ;;  %v2381_v60 = vmul.f32 %v2349_v4, %v5044_v25  ;;  %3596 = vtanh.f32 %v2257_v18  ;;  %v3304_v46 = vpop.f32.mrb[92].mxu0  ;;  %v2548_v36 = vsel %vm2547_vm8, %v5072_v34, %v2546_v50 }
 0x561   : > { %v2452_v9 = vadd.f32 %v2451_v51, %v2450_v56  ;;  %v2315_v41 = vadd.f32 1.0, %v3591_v48  ;;  %v2255_v44 = vmul.f32 0.7978846, %v2223_v58  ;;  %v5126_v39 = vadd.f32 %v3304_v46, %v4839_v35  ;;  %v2087_v8 = vpop.f32.mrb[93].mxu0  ;;  %2558 = vst [vmem:[%s5128_s14] sm:$0xff] %v2548_v36 }
 0x562   : > { %v2569_v0 = vpack.c.bf16 %v2512_v23, %v2512_v23  ;;  %v2467_v25 = vadd.f32 %v2381_v60, %v2380_v30  ;;  %v5133_v57 = vadd.f32 %v4839_v35, %v2087_v8  ;;  %v3305_v49 = vpop.f32.mrb[94].mxu0 }
 0x563   : > { %v2511_v34 = vmul.f32 0.0625, %v2452_v9  ;;  %v2347_v11 = vmul.f32 0.5, %v2315_v41  ;;  %3598 = vtanh.f32 %v2255_v44  ;;  %v2132_v21 = vmul.f32 %v5126_v39, %v5126_v39  ;;  %v2090_v52 = vpop.f32.mrb[95].mxu0 }
 0x564   : > { %v2624_v33 = vunpack.c.l.b16 %v2569_v0  ;;  %v2468_v59 = vrot.slane %v2467_v25, 4  ;;  %v2130_v6 = vmul.f32 %v5133_v57, %v5133_v57  ;;  %v5140_v7 = vadd.f32 %v3305_v49, %v4839_v35 }
 0x565   : > { %v5143_v27 = vsel %vm2535_vm1, %v2512_v23, %v2511_v34  ;;  %v2568_v16 = vpack.c.bf16 %v2511_v34, %v2511_v34  ;;  %v2379_v54 = vmul.f32 %v2347_v11, %v5058_v29  ;;  %v2164_v37 = vmul.f32 %v2132_v21, %v5126_v39 }
 0x566   : > { %v2469_v17 = vadd.f32 %v2468_v59, %v2467_v25  ;;  %v2162_v26 = vmul.f32 %v2130_v6, %v5133_v57  ;;  %v2133_v24 = vmul.f32 %v5140_v7, %v5140_v7  ;;  %v5154_v28 = vadd.f32 %v4839_v35, %v2090_v52 }
 0x567   : > { %v3593_v32 = vpop.eup %3592  ;;  %v2623_v62 = vunpack.c.l.b16 %v2568_v16  ;;  %v2460_v5 = vadd.f32 %v2379_v54, %v2378_v53  ;;  %v2196_v10 = vmul.f32 0.044715, %v2164_v37 }
 0x568   : > { %v3595_v15 = vpop.eup %3594  ;;  %v2470_v43 = vrot.slane %v2469_v17, 2  ;;  %v2320_v3 = vadd.f32 1.0, %v3593_v32  ;;  %v2194_v40 = vmul.f32 0.044715, %v2162_v26  ;;  %v2165_v2 = vmul.f32 %v2133_v24, %v5140_v7 }
 0x569   : > { %v2638_v29 = vsel %vm2535_vm1, %v2624_v33, %v2623_v62  ;;  %v2461_v31 = vrot.slane %v2460_v5, 4  ;;  %v2318_v45 = vadd.f32 1.0, %v3595_v15  ;;  %v2228_v61 = vadd.f32 %v2196_v10, %v5126_v39 }
 0x56a   : > { %v3597_v12 = vpop.eup %3596  ;;  %v2471_v42 = vadd.f32 %v2470_v43, %v2469_v17  ;;  %v2352_v13 = vmul.f32 0.5, %v2320_v3  ;;  %v2197_v47 = vmul.f32 0.044715, %v2165_v2  ;;  %v2226_v19 = vadd.f32 %v2194_v40, %v5133_v57 }
 0x56b   : > { %v2462_v38 = vadd.f32 %v2461_v31, %v2460_v5  ;;  %v2321_v56 = vadd.f32 1.0, %v3597_v12  ;;  %v2260_v20 = vmul.f32 0.7978846, %v2228_v61  ;;  %v2350_v58 = vmul.f32 0.5, %v2318_v45 }
 0x56c   : > { %v2472_v4 = vrot.slane %v2471_v42, 1  ;;  %v2229_v18 = vadd.f32 %v2197_v47, %v5140_v7  ;;  %v2384_v23 = vmul.f32 %v2352_v13, %v5080_v14  ;;  %v2258_v9 = vmul.f32 0.7978846, %v2226_v19 }
 0x56d   : > { %v3599_v51 = vpop.eup %3598  ;;  %v2463_v30 = vrot.slane %v2462_v38, 2  ;;  %v2353_v50 = vmul.f32 0.5, %v2321_v56  ;;  %3600 = vtanh.f32 %v2260_v20  ;;  %v2131_v41 = vmul.f32 %v5154_v28, %v5154_v28 }
 0x56e   : > { %v2473_v48 = vadd.f32 %v2472_v4, %v2471_v42  ;;  %v2319_v60 = vadd.f32 1.0, %v3599_v51  ;;  %v2261_v46 = vmul.f32 0.7978846, %v2229_v18  ;;  %v2382_v49 = vmul.f32 %v2350_v58, %v5084_v55 }
 0x56f   : > { %v2464_v35 = vadd.f32 %v2463_v30, %v2462_v38  ;;  %v2385_v36 = vmul.f32 %v2353_v50, %v5094_v22  ;;  %v2163_v53 = vmul.f32 %v2131_v41, %v5154_v28 }
 0x570   : > { %v2351_v44 = vmul.f32 0.5, %v2319_v60  ;;  %3602 = vtanh.f32 %v2261_v46  ;;  %v2514_v25 = vmul.f32 0.0625, %v2473_v48 }
 0x571   : > { %v2465_v8 = vrot.slane %v2464_v35, 1  ;;  %v2481_v0 = vadd.f32 %v2385_v36, %v2384_v23  ;;  %3604 = vtanh.f32 %v2258_v9  ;;  %v2195_v21 = vmul.f32 0.044715, %v2163_v53 }
 0x572   : > { %v2383_v14 = vmul.f32 %v2351_v44, %v5099_v1  ;;  %v2571_v6 = vpack.c.bf16 %v2514_v25, %v2514_v25 }
 0x573   : > { %v2466_v34 = vadd.f32 %v2465_v8, %v2464_v35  ;;  %v2482_v11 = vrot.slane %v2481_v0, 4  ;;  %v2227_v59 = vadd.f32 %v2195_v21, %v5154_v28 }
 0x574   : > { %v2474_v22 = vadd.f32 %v2383_v14, %v2382_v49  ;;  %v2626_v15 = vunpack.c.l.b16 %v2571_v6 }
 0x575   : > { %v2513_v52 = vmul.f32 0.0625, %v2466_v34  ;;  %v2483_v33 = vadd.f32 %v2482_v11, %v2481_v0  ;;  %v2259_v55 = vmul.f32 0.7978846, %v2227_v59 }
 0x576   : > { %v2475_v16 = vrot.slane %v2474_v22, 4 }
 0x577   : > { %v3601_v54 = vpop.eup %3600  ;;  %v2550_v37 = vsel %vm2537_vm3, %v2513_v52, %v5143_v27  ;;  %v2570_v17 = vpack.c.bf16 %v2513_v52, %v2513_v52  ;;  %v2484_v26 = vrot.slane %v2483_v33, 2  ;;  %3606 = vtanh.f32 %v2259_v55 }
 0x578   : > { %v2476_v24 = vadd.f32 %v2475_v16, %v2474_v22  ;;  %v2551_v1 = vsel %vm2539_vm4, %v2514_v25, %v2550_v37  ;;  %v2324_v32 = vadd.f32 1.0, %v3601_v54 }
 0x579   : > { %v2625_v62 = vunpack.c.l.b16 %v2570_v17  ;;  %v2485_v5 = vadd.f32 %v2484_v26, %v2483_v33 }
 0x57a   : > { %v3603_v10 = vpop.eup %3602  ;;  %v2477_v43 = vrot.slane %v2476_v24, 2  ;;  %v2356_v2 = vmul.f32 0.5, %v2324_v32 }
 0x57b   : > { %v2639_v3 = vsel %vm2537_vm3, %v2625_v62, %v2638_v29  ;;  %v2486_v40 = vrot.slane %v2485_v5, 1  ;;  %v2325_v31 = vadd.f32 1.0, %v3603_v10  ;;  %v3605_v61 = vpop.eup %3604 }
 0x57c   : > { %v2478_v45 = vadd.f32 %v2477_v43, %v2476_v24  ;;  %v2640_v27 = vsel %vm2539_vm4, %v2626_v15, %v2639_v3  ;;  %v2388_v38 = vmul.f32 %v2356_v2, %v5126_v39  ;;  %v2322_v19 = vadd.f32 1.0, %v3605_v61 }
 0x57d   : > { %v2487_v12 = vadd.f32 %v2486_v40, %v2485_v5  ;;  %v2357_v42 = vmul.f32 0.5, %v2325_v31 }
 0x57e   : > { %v2479_v13 = vrot.slane %v2478_v45, 1  ;;  %v2354_v48 = vmul.f32 0.5, %v2322_v19 }
 0x57f   : > { %v2516_v47 = vmul.f32 0.0625, %v2487_v12  ;;  %v2389_v56 = vmul.f32 %v2357_v42, %v5140_v7 }
 0x580   : > { %v2480_v20 = vadd.f32 %v2479_v13, %v2478_v45  ;;  %v2386_v7 = vmul.f32 %v2354_v48, %v5133_v57 }
 0x581   : > { %v2495_v4 = vadd.f32 %v2389_v56, %v2388_v38  ;;  %v3607_v29 = vpop.eup %3606  ;;  %v2573_v51 = vpack.c.bf16 %v2516_v47, %v2516_v47 }
 0x582   : > { %v2515_v18 = vmul.f32 0.0625, %v2480_v20  ;;  %v2323_v23 = vadd.f32 1.0, %v3607_v29 }
 0x583   : > { %v2496_v30 = vrot.slane %v2495_v4, 4  ;;  %v2628_v39 = vunpack.c.l.b16 %v2573_v51 }
 0x584   : > { %v2552_v58 = vsel %vm2541_vm5, %v2515_v18, %v2551_v1  ;;  %v2572_v50 = vpack.c.bf16 %v2515_v18, %v2515_v18  ;;  %v2355_v36 = vmul.f32 0.5, %v2323_v23 }
 0x585   : > { %v2497_v60 = vadd.f32 %v2496_v30, %v2495_v4  ;;  %v2553_v46 = vsel %vm2543_vm6, %v2516_v47, %v2552_v58 }
 0x586   : > { %v2627_v35 = vunpack.c.l.b16 %v2572_v50  ;;  %v2387_v41 = vmul.f32 %v2355_v36, %v5154_v28 }
 0x587   : > { %v2498_v9 = vrot.slane %v2497_v60, 2 }
 0x588   : > { %v2641_v44 = vsel %vm2541_vm5, %v2627_v35, %v2640_v27  ;;  %v2488_v53 = vadd.f32 %v2387_v41, %v2386_v7 }
 0x589   : > { %v2499_v8 = vadd.f32 %v2498_v9, %v2497_v60  ;;  %v2642_v0 = vsel %vm2543_vm6, %v2628_v39, %v2641_v44 }
 0x58a   : > { %v2489_v25 = vrot.slane %v2488_v53, 4 }
 0x58b   : > { %v2500_v49 = vrot.slane %v2499_v8, 1 }
 0x58c   : > { %v2490_v14 = vadd.f32 %v2489_v25, %v2488_v53 }
 0x58d   : > { %v2501_v11 = vadd.f32 %v2500_v49, %v2499_v8 }
 0x58e   : > { %v2491_v34 = vrot.slane %v2490_v14, 2 }
 0x58f   : > { %v2518_v52 = vmul.f32 0.0625, %v2501_v11 }
 0x590   : > { %v2492_v21 = vadd.f32 %v2491_v34, %v2490_v14 }
 0x591   : > { %v2575_v28 = vpack.c.bf16 %v2518_v52, %v2518_v52 }
 0x592   : > { %v2493_v22 = vrot.slane %v2492_v21, 1 }
 0x593   : > { %v2630_v37 = vunpack.c.l.b16 %v2575_v28 }
 0x594   : > { %v2494_v57 = vadd.f32 %v2493_v22, %v2492_v21 }
 0x596   : > { %v2517_v33 = vmul.f32 0.0625, %v2494_v57 }
 0x598   : > { %v2574_v59 = vpack.c.bf16 %v2517_v33, %v2517_v33  ;;  %v2554_v6 = vsel %vm2545_vm7, %v2517_v33, %v2553_v46 }
 0x599   : > { %v2555_v16 = vsel %vm2547_vm8, %v2518_v52, %v2554_v6 }
 0x59a   : > { %v2629_v54 = vunpack.c.l.b16 %v2574_v59  ;;  %2559 = vst [vmem:[%s5128_s14 + $0x8] sm:$0xff] %v2555_v16 }
 0x59c   : > { %v2643_v17 = vsel %vm2545_vm7, %v2629_v54, %v2642_v0 }
 0x59d   : > { %v2644_v26 = vsel %vm2547_vm8, %v2630_v37, %v2643_v17 }
 0x59e   : > { %v2645_v55 = vpack.c.b16 %v2644_v26, %v5113_v63 }
 0x5a0   : > { %3323 = vmatmul.mubr.bf16.vlgmr.msra.gmra.mrb[96].mxu1 %v2645_v55 }
 0x5a1   : > { %3651 = shalt.err (!%p3648_p4)
}
 0x5a2   : > { %s3652_s14 = scalar_lea.hbm %s5189_s26, 256  ;;  %s3656_s27 = scalar_lea.hbm %s5251_s8, 512 }
 0x5a3   : > { %p3653_p5 = scmp.ne.s32.totalorder %s5189_s26, %s3652_s14  ;;  %p3657_p1 = scmp.lt.u32.totalorder %s5189_s26, %s5251_s8 }
 0x5a4   : > { %p3658_p3 = scmp.lt.u32.totalorder %s3656_s27, %s3652_s14  ;;  %p3660_p6 = scmp.lt.u32.totalorder %s3652_s14, %s5189_s26 }
 0x5a5   : > { %p3654_p7 = pnand %p3653_p5, %p5371_p12 }
 0x5a6   : > { %p3659_p11 = por %p3658_p3, %p3657_p1 }
 0x5a7   : > { %p3655_p9 = pneg %p3654_p7 }
 0x5a8   : > { %p3661_p13 = por %p3660_p6, %p3659_p11 }
 0x5aa   : > { %p3662_p8 = pnand %p3661_p13, %p3655_p9 }
 0x5ac   : > { %3665 = shalt.err (!%p3662_p8)
}
 0x5ad   : > { %s3712_s24 = smov 128   ;;  %s3713_s20 = smov 8   ;;  %v2930_v63 = vld [vmem:[%s5250_s7] ss:$0 sm:$0xff]  ;;  %vm2736_vm9 = vcmask 31744  }
 0x5ae   : > { %3328 = dma.vmem_to_hbm [thread:$0]  (%p5371_p12), %s5192_s25, 256, %s5189_s26, %s2740_s23, %s3712_s24, %s3712_s24, %s3713_s20  }
 0x5af   : > { %s2884_s16 = sshll.u32 %s3785_s13, 1 }
 0x5b0   : > { %p385_p10 = scmp.lt.s32.totalorder %s2884_s16, 3 }
 0x5b2   : > { %s5381_s16 = smov (!%p385_p10, %s2884_s16), 3 }
 0x5b3   : > { %s2885_s17 = sshll.u32 %s5381_s16, 3 }
 0x5b4   : > { %s388_s0 = scalar_lea.vmem %s5252_s9, %s2885_s17 }
 0x673   : > { %v2729_v24 = vpop.f32.mrb[96].mxu1 }
 0x674   : > { %v2730_v1 = vadd.f32 %v2930_v63, %v2729_v24  ;;  %v3324_v32 = vpop.f32.mrb[97].mxu1 }
 0x675   : > { %v2732_v62 = vpop.f32.mrb[98].mxu1 }
 0x676   : > { %2737 = vst.msk [vmem:[%s388_s0] sm:$0xff] %vm2736_vm9, %v2730_v1  ;;  %v2733_v5 = vadd.f32 %v2930_v63, %v2732_v62  ;;  %v3325_v10 = vpop.f32.mrb[99].mxu1 }
 0x678   : > { %2738 = vst.msk [vmem:[%s388_s0 + $0x8] sm:$0xff] %vm2736_vm9, %v2733_v5 }
 0x679 PF: > { %s2777_s13 = sand.u32 1, %s3692_s30   ;;  %p5372_p12 = scmp.ne.s32.totalorder %s5292_s22, 0 }
 0x67a   : > { %p5373_p0 = scmp.ge.s32.totalorder %s3704_s12, 2  ;;  %s2778_s21 = scalar_lea.sflag [#allocation4], %s2777_s13 }
 0x67c   : > { %p3335_p2 = pnand %p5373_p0, %p5372_p12 }
 0x67e   : > { %3687 = dma.done.wait (!%p3335_p2), %s2778_s21, 256  }
 0x67f   : > { %3689 = vsyncadd (!%p3335_p2), %s2778_s21, 4294967040  ;;  %p23_p4 = scmp.ge.s32.totalorder %s3789_s15, 4   ;;  %s5374_s30 = smov %s3696_s10 }
 0x680   : > { %s5375_s10 = smov %s3700_s11  ;;  %s5376_s11 = smov %s3801_s18 }
 0x681   : > { %s5377_s12 = smov %s3789_s15  ;;  %25 = sbr.rel (!%p23_p4) target bundleno = 7 (0x7), region = 112 }
 0x688   :  { %2791 = vsyncpa [#allocation3], 1 }
 0x689   :  { %2793 = vsyncpa [#allocation3 + $0x1], 1 }
 0x68a   :  { %2794 = vsyncpa [#allocation4], 1 }
 0x68b   :  { %2796 = vsyncpa [#allocation4 + $0x1], 1 }

</bundles_post_ra>
